<compile_context>
chip_gen: v7x
topology: tpu7x:2x2x1
jax: 0.10.0
libtpu: 0.0.40
codegen_flags: <defaults>
</compile_context>

<pallas_src>
import functools

import jax
import jax.numpy as jnp
from jax.experimental import pallas as pl
from jax.experimental.pallas import tpu as pltpu

EPS = 1e-5
LANE = 128


def _round_up(x, m):
    return (x + m - 1) // m * m


def _conv_stats_kernel(x_ref, w_ref, mask_ref, y_ref, psum_ref, psq_ref,
                       *, offsets, guard, rows):
    # x_ref   : (rows + 2*guard, Cin)  flattened padded image (+ zero guard rows)
    # w_ref   : (9, Cin, Coutp)        conv weight, tap-major (kh*3 + kw)
    # mask_ref: (rows, 1)              1.0 on interior (valid output) rows, else 0.0
    # y_ref   : (rows, Coutp)          "wide" conv output (border rows are garbage)
    # psum_ref, psq_ref : (8, Coutp)   per-image masked sum / sum-of-squares
    coutp = y_ref.shape[-1]
    acc = jnp.zeros((rows, coutp), jnp.float32)
    for t, off in enumerate(offsets):
        # Static row-shifted view of the flattened image: tap (kh, kw) of every
        # output pixel lives at a fixed row offset in this layout.
        xs = x_ref[pl.ds(guard + off, rows), :]
        acc += jnp.dot(xs, w_ref[t], preferred_element_type=jnp.float32)  # MXU
    y_ref[...] = acc.astype(y_ref.dtype)

    # BN partial statistics (garbage border rows masked to zero).
    masked = acc * mask_ref[...]
    s = jnp.sum(masked, axis=0, keepdims=True)           # (1, Coutp)
    sq = jnp.sum(masked * acc, axis=0, keepdims=True)    # sum(mask * y^2)
    psum_ref[...] = jnp.broadcast_to(s, psum_ref.shape)
    psq_ref[...] = jnp.broadcast_to(sq, psq_ref.shape)


def _bn_relu_kernel(y_ref, scale_ref, shift_ref, o_ref, *, activation):
    out = y_ref[...].astype(jnp.float32) * scale_ref[...] + shift_ref[...]
    if activation:
        out = jnp.maximum(out, 0.0)
    o_ref[...] = out.astype(o_ref.dtype)


def basic_conv2d(x_nchw, w_oihw, gamma, beta, *, activation=True,
                 compute_dtype=jnp.float32, tile_rows=1024):
    """Forward of BasicConv2d(Cin, Cout, kernel_size=3, padding=1) in train mode."""
    # TODO(synk): only kernel_size=3, stride=1, padding=1 (the common PeleeNet config)
    #             is implemented; other Conv2d kwargs are not supported.
    N, Cin, H, W = x_nchw.shape
    Cout = w_oihw.shape[0]
    assert w_oihw.shape == (Cout, Cin, 3, 3)

    coutp = _round_up(max(Cout, LANE), LANE)   # lane-dense channel padding
    Wp = W + 2                                  # spatially padded width
    rows = (H + 2) * Wp                         # flattened padded image rows
    guard = W + 3                               # max |row shift| of any 3x3 tap

    # ---- host-side glue: layout only (no inflated intermediates) ----------------
    x_nhwc = jnp.transpose(x_nchw, (0, 2, 3, 1))                       # NCHW -> NHWC
    xpad = jnp.pad(x_nhwc, ((0, 0), (1, 1), (1, 1), (0, 0)))           # conv padding
    xflat = xpad.reshape(N, rows, Cin)
    xflat = jnp.pad(xflat, ((0, 0), (guard, guard), (0, 0)))           # guard rows keep
    xflat = xflat.astype(compute_dtype)                                # tap slices in-bounds

    # torch (Cout, Cin, 3, 3) -> (kh*3+kw, Cin, Coutp), zero-padded channels
    w_taps = jnp.transpose(w_oihw, (2, 3, 1, 0)).reshape(9, Cin, Cout)
    w_taps = jnp.pad(w_taps, ((0, 0), (0, 0), (0, coutp - Cout))).astype(compute_dtype)

    # interior mask over flattened padded rows (1 = real output pixel)
    hh = jnp.arange(H + 2)
    ww = jnp.arange(Wp)
    m2d = ((hh[:, None] >= 1) & (hh[:, None] <= H)
           & (ww[None, :] >= 1) & (ww[None, :] <= W))
    mask = m2d.astype(jnp.float32).reshape(rows, 1)

    # flattened-row offset of tap (kh, kw) relative to its output pixel
    offsets = tuple((kh - 1) * Wp + (kw - 1) for kh in range(3) for kw in range(3))

    # ---- pass 1: conv (9 shifted MXU dots) + per-image BN partial sums ----------
    kernel1 = functools.partial(_conv_stats_kernel, offsets=offsets,
                                guard=guard, rows=rows)
    y_wide, psum, psq = pl.pallas_call(
        kernel1,
        out_shape=(
            jax.ShapeDtypeStruct((N, rows, coutp), compute_dtype),
            jax.ShapeDtypeStruct((N, 8, coutp), jnp.float32),
            jax.ShapeDtypeStruct((N, 8, coutp), jnp.float32),
        ),
        grid=(N,),
        in_specs=[
            pl.BlockSpec((None, rows + 2 * guard, Cin), lambda i: (i, 0, 0)),
            pl.BlockSpec((9, Cin, coutp), lambda i: (0, 0, 0)),   # resident, no re-DMA
            pl.BlockSpec((rows, 1), lambda i: (0, 0)),            # resident, no re-DMA
        ],
        out_specs=(
            pl.BlockSpec((None, rows, coutp), lambda i: (i, 0, 0)),
            pl.BlockSpec((None, 8, coutp), lambda i: (i, 0, 0)),
            pl.BlockSpec((None, 8, coutp), lambda i: (i, 0, 0)),
        ),
        compiler_params=pltpu.CompilerParams(
            dimension_semantics=("parallel",),        # images independent -> megacore
            vmem_limit_bytes=32 * 1024 * 1024,
        ),
    )(xflat, w_taps, mask)
    # TODO(synk): for large images (one image's y tile ~ VMEM), add an H-tiled grid
    #             axis with halo rows instead of one whole image per grid step.

    # ---- finalize BN: fold batch stats into one scale/shift per channel ---------
    count = float(N * H * W)
    ssum = jnp.sum(psum[:, 0, :], axis=0)
    ssq = jnp.sum(psq[:, 0, :], axis=0)
    mean = ssum / count
    var = jnp.maximum(ssq / count - mean * mean, 0.0)   # biased variance, clamped
    gamma_p = jnp.pad(gamma.astype(jnp.float32), (0, coutp - Cout))
    beta_p = jnp.pad(beta.astype(jnp.float32), (0, coutp - Cout))
    inv = jax.lax.rsqrt(var + EPS)
    scale = (gamma_p * inv).reshape(1, coutp)           # padded channels -> scale 0
    shift = (beta_p - mean * gamma_p * inv).reshape(1, coutp)

    # ---- pass 2: tiled, lane-dense y*scale + shift (+ ReLU) ----------------------
    total = N * rows
    trows = total if total <= tile_rows else tile_rows  # ragged tail masked by Pallas
    y_flat = y_wide.reshape(total, coutp)
    kernel2 = functools.partial(_bn_relu_kernel, activation=activation)
    out_flat = pl.pallas_call(
        kernel2,
        out_shape=jax.ShapeDtypeStruct((total, coutp), jnp.float32),
        grid=(pl.cdiv(total, trows),),
        in_specs=[
            pl.BlockSpec((trows, coutp), lambda i: (i, 0)),
            pl.BlockSpec((1, coutp), lambda i: (0, 0)),
            pl.BlockSpec((1, coutp), lambda i: (0, 0)),
        ],
        out_specs=pl.BlockSpec((trows, coutp), lambda i: (i, 0)),
        compiler_params=pltpu.CompilerParams(
            dimension_semantics=("parallel",),
            vmem_limit_bytes=32 * 1024 * 1024,
        ),
    )(y_flat, scale, shift)

    # ---- host-side glue: drop padded rows/channels, back to NCHW -----------------
    out_wide = out_flat.reshape(N, H + 2, Wp, coutp)
    out_nhwc = out_wide[:, 1:H + 1, 1:W + 1, :Cout]
    return jnp.transpose(out_nhwc, (0, 3, 1, 2))


def reference(x_nchw, w_oihw, gamma, beta):
    """Pure-JAX reference matching the PyTorch forward (train-mode BN + ReLU)."""
    y = jax.lax.conv_general_dilated(
        x_nchw, w_oihw, window_strides=(1, 1), padding=((1, 1), (1, 1)),
        dimension_numbers=("NCHW", "OIHW", "NCHW"))
    mean = jnp.mean(y, axis=(0, 2, 3), keepdims=True)
    var = jnp.mean((y - mean) ** 2, axis=(0, 2, 3), keepdims=True)
    y_hat = (y - mean) * jax.lax.rsqrt(var + EPS)
    out = y_hat * gamma.reshape(1, -1, 1, 1) + beta.reshape(1, -1, 1, 1)
    return jnp.maximum(out, 0.0)


if __name__ == "__main__":
    # Small shapes consistent with BasicConv2d(4, 8, kernel_size=3, padding=1)
    N, Cin, H, W, Cout = 2, 4, 16, 16, 8

    key = jax.random.PRNGKey(0)
    kx, kw, kg, kb = jax.random.split(key, 4)
    x = jax.random.normal(kx, (N, Cin, H, W), dtype=jnp.float32)
    w = jax.random.normal(kw, (Cout, Cin, 3, 3), dtype=jnp.float32) * 0.1
    gamma = 1.0 + 0.1 * jax.random.normal(kg, (Cout,), dtype=jnp.float32)
    beta = 0.1 * jax.random.normal(kb, (Cout,), dtype=jnp.float32)

    ref = reference(x, w, gamma, beta)

    # f32 compute path: tight tolerance
    out = jax.block_until_ready(basic_conv2d(x, w, gamma, beta))
    assert out.shape == (N, Cout, H, W)
    assert jnp.allclose(out, ref, atol=1e-4, rtol=1e-4), "f32 path mismatch vs reference"

    # bf16 matmul/intermediate path (f32 accumulation + stats): loose tolerance
    out_bf16 = jax.block_until_ready(
        basic_conv2d(x, w, gamma, beta, compute_dtype=jnp.bfloat16))
    assert out_bf16.shape == (N, Cout, H, W)
    assert jnp.allclose(out_bf16, ref, atol=5e-2, rtol=5e-2), "bf16 path mismatch vs reference"

    print("KERNEL_OK")
</pallas_src>

<mosaic_0001>
module attributes {stable_mosaic.version = 11 : i64} {
  func.func @_conv_stats_kernel(%arg0: i32, %arg1: memref<1x362x4xf32, #tpu.memory_space<vmem>>, %arg2: memref<9x4x128xf32, #tpu.memory_space<vmem>>, %arg3: memref<324x1xf32, #tpu.memory_space<vmem>>, %arg4: memref<1x324x128xf32, #tpu.memory_space<vmem>>, %arg5: memref<1x8x128xf32, #tpu.memory_space<vmem>>, %arg6: memref<1x8x128xf32, #tpu.memory_space<vmem>>) attributes {dimension_semantics = [#tpu.dimension_semantics<parallel>], iteration_bounds = array<i64: 2>, scalar_prefetch = 0 : i64, scratch_operands = 0 : i64, tpu.core_type = #tpu.core_type<tc>, window_params = [{transform_indices = @transform_0, window_bounds = array<i64: 1, 362, 4>}, {pipeline_mode = #tpu.pipeline_mode<synchronous>, transform_indices = @transform_1, window_bounds = array<i64: 9, 4, 128>}, {pipeline_mode = #tpu.pipeline_mode<synchronous>, transform_indices = @transform_2, window_bounds = array<i64: 324, 1>}, {transform_indices = @transform_3, window_bounds = array<i64: 1, 324, 128>}, {transform_indices = @transform_4, window_bounds = array<i64: 1, 8, 128>}, {transform_indices = @transform_5, window_bounds = array<i64: 1, 8, 128>}]} {
    %cst = arith.constant 0.000000e+00 : f32
    %0 = vector.broadcast %cst : f32 to vector<324x128xf32>
    %c0 = arith.constant 0 : index
    %c0_0 = arith.constant 0 : index
    %c0_1 = arith.constant 0 : index
    %1 = vector.load %arg1[%c0, %c0_0, %c0_1] : memref<1x362x4xf32, #tpu.memory_space<vmem>>, vector<1x324x4xf32>
    %2 = vector.shape_cast %1 : vector<1x324x4xf32> to vector<324x4xf32>
    %c0_2 = arith.constant 0 : index
    %c0_3 = arith.constant 0 : index
    %c0_4 = arith.constant 0 : index
    %3 = vector.load %arg2[%c0_2, %c0_3, %c0_4] : memref<9x4x128xf32, #tpu.memory_space<vmem>>, vector<1x4x128xf32>
    %4 = vector.shape_cast %3 : vector<1x4x128xf32> to vector<4x128xf32>
    %cst_5 = arith.constant dense<0.000000e+00> : vector<324x128xf32>
    %5 = tpu.matmul %2, %4, %cst_5 {dimension_numbers = #tpu.dot_dimension_numbers<[1], [0], [0], [1], [0, 0, 1, 1], [], []>} : vector<324x4xf32>, vector<4x128xf32>, vector<324x128xf32> -> vector<324x128xf32>
    %6 = arith.addf %0, %5 : vector<324x128xf32>
    %c0_6 = arith.constant 0 : index
    %c1 = arith.constant 1 : index
    %c0_7 = arith.constant 0 : index
    %7 = vector.load %arg1[%c0_6, %c1, %c0_7] : memref<1x362x4xf32, #tpu.memory_space<vmem>>, vector<1x324x4xf32>
    %8 = vector.shape_cast %7 : vector<1x324x4xf32> to vector<324x4xf32>
    %c1_8 = arith.constant 1 : index
    %c0_9 = arith.constant 0 : index
    %c0_10 = arith.constant 0 : index
    %9 = vector.load %arg2[%c1_8, %c0_9, %c0_10] : memref<9x4x128xf32, #tpu.memory_space<vmem>>, vector<1x4x128xf32>
    %10 = vector.shape_cast %9 : vector<1x4x128xf32> to vector<4x128xf32>
    %cst_11 = arith.constant dense<0.000000e+00> : vector<324x128xf32>
    %11 = tpu.matmul %8, %10, %cst_11 {dimension_numbers = #tpu.dot_dimension_numbers<[1], [0], [0], [1], [0, 0, 1, 1], [], []>} : vector<324x4xf32>, vector<4x128xf32>, vector<324x128xf32> -> vector<324x128xf32>
    %12 = arith.addf %6, %11 : vector<324x128xf32>
    %c0_12 = arith.constant 0 : index
    %c2 = arith.constant 2 : index
    %c0_13 = arith.constant 0 : index
    %13 = vector.load %arg1[%c0_12, %c2, %c0_13] : memref<1x362x4xf32, #tpu.memory_space<vmem>>, vector<1x324x4xf32>
    %14 = vector.shape_cast %13 : vector<1x324x4xf32> to vector<324x4xf32>
    %c2_14 = arith.constant 2 : index
    %c0_15 = arith.constant 0 : index
    %c0_16 = arith.constant 0 : index
    %15 = vector.load %arg2[%c2_14, %c0_15, %c0_16] : memref<9x4x128xf32, #tpu.memory_space<vmem>>, vector<1x4x128xf32>
    %16 = vector.shape_cast %15 : vector<1x4x128xf32> to vector<4x128xf32>
    %cst_17 = arith.constant dense<0.000000e+00> : vector<324x128xf32>
    %17 = tpu.matmul %14, %16, %cst_17 {dimension_numbers = #tpu.dot_dimension_numbers<[1], [0], [0], [1], [0, 0, 1, 1], [], []>} : vector<324x4xf32>, vector<4x128xf32>, vector<324x128xf32> -> vector<324x128xf32>
    %18 = arith.addf %12, %17 : vector<324x128xf32>
    %c0_18 = arith.constant 0 : index
    %c18 = arith.constant 18 : index
    %c0_19 = arith.constant 0 : index
    %19 = vector.load %arg1[%c0_18, %c18, %c0_19] : memref<1x362x4xf32, #tpu.memory_space<vmem>>, vector<1x324x4xf32>
    %20 = vector.shape_cast %19 : vector<1x324x4xf32> to vector<324x4xf32>
    %c3 = arith.constant 3 : index
    %c0_20 = arith.constant 0 : index
    %c0_21 = arith.constant 0 : index
    %21 = vector.load %arg2[%c3, %c0_20, %c0_21] : memref<9x4x128xf32, #tpu.memory_space<vmem>>, vector<1x4x128xf32>
    %22 = vector.shape_cast %21 : vector<1x4x128xf32> to vector<4x128xf32>
    %cst_22 = arith.constant dense<0.000000e+00> : vector<324x128xf32>
    %23 = tpu.matmul %20, %22, %cst_22 {dimension_numbers = #tpu.dot_dimension_numbers<[1], [0], [0], [1], [0, 0, 1, 1], [], []>} : vector<324x4xf32>, vector<4x128xf32>, vector<324x128xf32> -> vector<324x128xf32>
    %24 = arith.addf %18, %23 : vector<324x128xf32>
    %c0_23 = arith.constant 0 : index
    %c19 = arith.constant 19 : index
    %c0_24 = arith.constant 0 : index
    %25 = vector.load %arg1[%c0_23, %c19, %c0_24] : memref<1x362x4xf32, #tpu.memory_space<vmem>>, vector<1x324x4xf32>
    %26 = vector.shape_cast %25 : vector<1x324x4xf32> to vector<324x4xf32>
    %c4 = arith.constant 4 : index
    %c0_25 = arith.constant 0 : index
    %c0_26 = arith.constant 0 : index
    %27 = vector.load %arg2[%c4, %c0_25, %c0_26] : memref<9x4x128xf32, #tpu.memory_space<vmem>>, vector<1x4x128xf32>
    %28 = vector.shape_cast %27 : vector<1x4x128xf32> to vector<4x128xf32>
    %cst_27 = arith.constant dense<0.000000e+00> : vector<324x128xf32>
    %29 = tpu.matmul %26, %28, %cst_27 {dimension_numbers = #tpu.dot_dimension_numbers<[1], [0], [0], [1], [0, 0, 1, 1], [], []>} : vector<324x4xf32>, vector<4x128xf32>, vector<324x128xf32> -> vector<324x128xf32>
    %30 = arith.addf %24, %29 : vector<324x128xf32>
    %c0_28 = arith.constant 0 : index
    %c20 = arith.constant 20 : index
    %c0_29 = arith.constant 0 : index
    %31 = vector.load %arg1[%c0_28, %c20, %c0_29] : memref<1x362x4xf32, #tpu.memory_space<vmem>>, vector<1x324x4xf32>
    %32 = vector.shape_cast %31 : vector<1x324x4xf32> to vector<324x4xf32>
    %c5 = arith.constant 5 : index
    %c0_30 = arith.constant 0 : index
    %c0_31 = arith.constant 0 : index
    %33 = vector.load %arg2[%c5, %c0_30, %c0_31] : memref<9x4x128xf32, #tpu.memory_space<vmem>>, vector<1x4x128xf32>
    %34 = vector.shape_cast %33 : vector<1x4x128xf32> to vector<4x128xf32>
    %cst_32 = arith.constant dense<0.000000e+00> : vector<324x128xf32>
    %35 = tpu.matmul %32, %34, %cst_32 {dimension_numbers = #tpu.dot_dimension_numbers<[1], [0], [0], [1], [0, 0, 1, 1], [], []>} : vector<324x4xf32>, vector<4x128xf32>, vector<324x128xf32> -> vector<324x128xf32>
    %36 = arith.addf %30, %35 : vector<324x128xf32>
    %c0_33 = arith.constant 0 : index
    %c36 = arith.constant 36 : index
    %c0_34 = arith.constant 0 : index
    %37 = vector.load %arg1[%c0_33, %c36, %c0_34] : memref<1x362x4xf32, #tpu.memory_space<vmem>>, vector<1x324x4xf32>
    %38 = vector.shape_cast %37 : vector<1x324x4xf32> to vector<324x4xf32>
    %c6 = arith.constant 6 : index
    %c0_35 = arith.constant 0 : index
    %c0_36 = arith.constant 0 : index
    %39 = vector.load %arg2[%c6, %c0_35, %c0_36] : memref<9x4x128xf32, #tpu.memory_space<vmem>>, vector<1x4x128xf32>
    %40 = vector.shape_cast %39 : vector<1x4x128xf32> to vector<4x128xf32>
    %cst_37 = arith.constant dense<0.000000e+00> : vector<324x128xf32>
    %41 = tpu.matmul %38, %40, %cst_37 {dimension_numbers = #tpu.dot_dimension_numbers<[1], [0], [0], [1], [0, 0, 1, 1], [], []>} : vector<324x4xf32>, vector<4x128xf32>, vector<324x128xf32> -> vector<324x128xf32>
    %42 = arith.addf %36, %41 : vector<324x128xf32>
    %c0_38 = arith.constant 0 : index
    %c37 = arith.constant 37 : index
    %c0_39 = arith.constant 0 : index
    %43 = vector.load %arg1[%c0_38, %c37, %c0_39] : memref<1x362x4xf32, #tpu.memory_space<vmem>>, vector<1x324x4xf32>
    %44 = vector.shape_cast %43 : vector<1x324x4xf32> to vector<324x4xf32>
    %c7 = arith.constant 7 : index
    %c0_40 = arith.constant 0 : index
    %c0_41 = arith.constant 0 : index
    %45 = vector.load %arg2[%c7, %c0_40, %c0_41] : memref<9x4x128xf32, #tpu.memory_space<vmem>>, vector<1x4x128xf32>
    %46 = vector.shape_cast %45 : vector<1x4x128xf32> to vector<4x128xf32>
    %cst_42 = arith.constant dense<0.000000e+00> : vector<324x128xf32>
    %47 = tpu.matmul %44, %46, %cst_42 {dimension_numbers = #tpu.dot_dimension_numbers<[1], [0], [0], [1], [0, 0, 1, 1], [], []>} : vector<324x4xf32>, vector<4x128xf32>, vector<324x128xf32> -> vector<324x128xf32>
    %48 = arith.addf %42, %47 : vector<324x128xf32>
    %c0_43 = arith.constant 0 : index
    %c38 = arith.constant 38 : index
    %c0_44 = arith.constant 0 : index
    %49 = vector.load %arg1[%c0_43, %c38, %c0_44] : memref<1x362x4xf32, #tpu.memory_space<vmem>>, vector<1x324x4xf32>
    %50 = vector.shape_cast %49 : vector<1x324x4xf32> to vector<324x4xf32>
    %c8 = arith.constant 8 : index
    %c0_45 = arith.constant 0 : index
    %c0_46 = arith.constant 0 : index
    %51 = vector.load %arg2[%c8, %c0_45, %c0_46] : memref<9x4x128xf32, #tpu.memory_space<vmem>>, vector<1x4x128xf32>
    %52 = vector.shape_cast %51 : vector<1x4x128xf32> to vector<4x128xf32>
    %cst_47 = arith.constant dense<0.000000e+00> : vector<324x128xf32>
    %53 = tpu.matmul %50, %52, %cst_47 {dimension_numbers = #tpu.dot_dimension_numbers<[1], [0], [0], [1], [0, 0, 1, 1], [], []>} : vector<324x4xf32>, vector<4x128xf32>, vector<324x128xf32> -> vector<324x128xf32>
    %54 = arith.addf %48, %53 : vector<324x128xf32>
    %c0_48 = arith.constant 0 : index
    %c0_49 = arith.constant 0 : index
    %c0_50 = arith.constant 0 : index
    %55 = vector.load %arg4[%c0_48, %c0_49, %c0_50] : memref<1x324x128xf32, #tpu.memory_space<vmem>>, vector<1x324x128xf32>
    %56 = vector.shape_cast %55 : vector<1x324x128xf32> to vector<324x128xf32>
    %57 = vector.shape_cast %54 : vector<324x128xf32> to vector<1x324x128xf32>
    tpu.vector_store %arg4[%c0_48, %c0_49, %c0_50], %57 {strides = array<i32>} : memref<1x324x128xf32, #tpu.memory_space<vmem>>, vector<1x324x128xf32>,
    %c0_51 = arith.constant 0 : index
    %c0_52 = arith.constant 0 : index
    %58 = vector.load %arg3[%c0_51, %c0_52] : memref<324x1xf32, #tpu.memory_space<vmem>>, vector<324x1xf32>
    %59 = vector.broadcast %58 : vector<324x1xf32> to vector<324x128xf32>
    %60 = arith.mulf %54, %59 : vector<324x128xf32>
    %cst_53 = arith.constant dense<0.000000e+00> : vector<128xf32>
    %61 = vector.multi_reduction <add>, %60, %cst_53 [0] : vector<324x128xf32> to vector<128xf32>
    %62 = vector.shape_cast %61 : vector<128xf32> to vector<1x128xf32>
    %63 = arith.mulf %60, %54 : vector<324x128xf32>
    %cst_54 = arith.constant dense<0.000000e+00> : vector<128xf32>
    %64 = vector.multi_reduction <add>, %63, %cst_54 [0] : vector<324x128xf32> to vector<128xf32>
    %65 = vector.shape_cast %64 : vector<128xf32> to vector<1x128xf32>
    %66 = vector.shape_cast %62 : vector<1x128xf32> to vector<1x128xf32>
    %67 = vector.broadcast %66 : vector<1x128xf32> to vector<8x128xf32>
    %c0_55 = arith.constant 0 : index
    %c0_56 = arith.constant 0 : index
    %c0_57 = arith.constant 0 : index
    %68 = vector.load %arg5[%c0_55, %c0_56, %c0_57] : memref<1x8x128xf32, #tpu.memory_space<vmem>>, vector<1x8x128xf32>
    %69 = vector.shape_cast %68 : vector<1x8x128xf32> to vector<8x128xf32>
    %70 = vector.shape_cast %67 : vector<8x128xf32> to vector<1x8x128xf32>
    tpu.vector_store %arg5[%c0_55, %c0_56, %c0_57], %70 {strides = array<i32>} : memref<1x8x128xf32, #tpu.memory_space<vmem>>, vector<1x8x128xf32>,
    %71 = vector.shape_cast %65 : vector<1x128xf32> to vector<1x128xf32>
    %72 = vector.broadcast %71 : vector<1x128xf32> to vector<8x128xf32>
    %c0_58 = arith.constant 0 : index
    %c0_59 = arith.constant 0 : index
    %c0_60 = arith.constant 0 : index
    %73 = vector.load %arg6[%c0_58, %c0_59, %c0_60] : memref<1x8x128xf32, #tpu.memory_space<vmem>>, vector<1x8x128xf32>
    %74 = vector.shape_cast %73 : vector<1x8x128xf32> to vector<8x128xf32>
    %75 = vector.shape_cast %72 : vector<8x128xf32> to vector<1x8x128xf32>
    tpu.vector_store %arg6[%c0_58, %c0_59, %c0_60], %75 {strides = array<i32>} : memref<1x8x128xf32, #tpu.memory_space<vmem>>, vector<1x8x128xf32>,
    return
  }
  func.func @transform_0(%arg0: i32) -> (i32, i32, i32) {
    %c0_i32 = arith.constant 0 : i32
    %c0_i32_0 = arith.constant 0 : i32
    %c0_i32_1 = arith.constant 0 : i32
    return %arg0, %c0_i32, %c0_i32_0 : i32, i32, i32
  }
  func.func @transform_1(%arg0: i32) -> (i32, i32, i32) {
    %c0_i32 = arith.constant 0 : i32
    %c0_i32_0 = arith.constant 0 : i32
    %c0_i32_1 = arith.constant 0 : i32
    %c0_i32_2 = arith.constant 0 : i32
    return %c0_i32, %c0_i32_0, %c0_i32_1 : i32, i32, i32
  }
  func.func @transform_2(%arg0: i32) -> (i32, i32) {
    %c0_i32 = arith.constant 0 : i32
    %c0_i32_0 = arith.constant 0 : i32
    %c0_i32_1 = arith.constant 0 : i32
    return %c0_i32, %c0_i32_0 : i32, i32
  }
  func.func @transform_3(%arg0: i32) -> (i32, i32, i32) {
    %c0_i32 = arith.constant 0 : i32
    %c0_i32_0 = arith.constant 0 : i32
    %c0_i32_1 = arith.constant 0 : i32
    return %arg0, %c0_i32, %c0_i32_0 : i32, i32, i32
  }
  func.func @transform_4(%arg0: i32) -> (i32, i32, i32) {
    %c0_i32 = arith.constant 0 : i32
    %c0_i32_0 = arith.constant 0 : i32
    %c0_i32_1 = arith.constant 0 : i32
    return %arg0, %c0_i32, %c0_i32_0 : i32, i32, i32
  }
  func.func @transform_5(%arg0: i32) -> (i32, i32, i32) {
    %c0_i32 = arith.constant 0 : i32
    %c0_i32_0 = arith.constant 0 : i32
    %c0_i32_1 = arith.constant 0 : i32
    return %arg0, %c0_i32, %c0_i32_0 : i32, i32, i32
  }
}

</mosaic_0001>

<bundles_post_ra>
// kernel: tpu_custom_call.1
= control target key start
LH: loop header
LB: loop body
LE: loop exit
PB: predicated region body
PF: predicated region fallthrough
CT: control target
= control target key end

     0   :  { %11 = vsyncpa [#allocation3], 0  ;;  %s9940_s0 = inlined_call_operand.vmem [shape: f32[2,362,4], index: 0, kind: input, shape index: {}]   ;;  %s9941_s1 = inlined_call_operand.vmem [shape: f32[9,4,128], index: 1, kind: input, shape index: {}]   ;;  %s9942_s2 = inlined_call_operand.vmem [shape: f32[324,1], index: 2, kind: input, shape index: {}]   ;;  %s9943_s3 = inlined_call_operand.vmem [shape: f32[2,324,128], index: 3, kind: output, shape index: {0}]   ;;  %s9944_s4 = inlined_call_operand.hbm [shape: f32[2,8,128], index: 4, kind: output, shape index: {1}]   ;;  %s9945_s5 = inlined_call_operand.hbm [shape: f32[2,8,128], index: 5, kind: output, shape index: {2}]  }
   0x1   :  { %13 = vsyncpa [#allocation3 + $0x1], 0 }
   0x2   :  { %14 = vsyncpa [#allocation5], 0 }
   0x3   :  { %16 = vsyncpa [#allocation5 + $0x1], 0  ;;  %s7809_s18 = smov 0   ;;  %s7811_s19 = smov 0  }
   0x4   :  { %s7813_s20 = smov 0   ;;  %s7815_s21 = smov 0  }
   0x5 LB: > { %s7830_s22 = sadd.s32 4294967295, %s7772_s21   ;;  %s5106_s23 = sadd.s32 4294967294, %s7772_s21   ;;  %s7772_s21 = sphi %s7815_s21, %s9951_s21   ;;  %s7768_s20 = sphi %s7813_s20, %s9950_s20   ;;  %s7764_s19 = sphi %s7811_s19, %s9949_s19   ;;  %s7760_s18 = sphi %s7809_s18, %s9948_s18  }
   0x6   : > { %s7834_s24 = sadd.s32 1, %s7772_s21   ;;  %s123_s25 = sadd.s32 1, %s7768_s20 }
   0x7   : > { %s120_s26 = ssub.s32 %s7772_s21, %s7834_s24  ;;  %p133_p0 = scmp.ne.s32.totalorder %s7768_s20, %s7764_s19 }
   0x8   : > { %p121_p1 = scmp.eq.s32.totalorder %s120_s26, 0  ;;  %p134_p2 = scmp.eq.s32.totalorder %s7830_s22, 1 }
   0x9   : > { %p139_p3 = scmp.ne.s32.totalorder %s7764_s19, %s7760_s18  ;;  %p140_p4 = scmp.eq.s32.totalorder %s5106_s23, 1 }
   0xa   : > { %s7845_s27 = scalar_select %p121_p1, %s7768_s20, %s123_s25  }
   0xb   : > { %p7847_p5 = por %p134_p2, %p133_p0  ;;  %p7851_p6 = por %p140_p4, %p139_p3 }
   0xc   : > { %p5109_p7 = scmp.ge.s32.totalorder %s7772_s21, 1  ;;  %p198_p8 = scmp.lt.s32.totalorder %s7772_s21, 3 }
   0xe   : > { %p199_p9 = pnand %p5109_p7, %p198_p8 }
   0xf   : > { %vm455_vm0 = vcmask (!%p199_p9), 1043456   ;;  %v5285_v0 = vld [vmem:[%s9941_s1 + $0x10] sm:$0xf] (!%p199_p9)  ;;  %v5114_v1 = vld [vmem:[%s9941_s1 + $0x4] sm:$0xf] (!%p199_p9)  ;;  %v7774_v2 = vmov (!%p199_p9), 0.0  }
  0x10   : > { %202 = sbr.rel (%p199_p9) target bundleno = 1033 (0x409), region = 32  ;;  %6384 = vmatprep.subr.mxu0 (!%p199_p9), %v7774_v2  ;;  %5884 = vmatprep.subr.mxu1 (!%p199_p9), %v7774_v2  ;;  %p236_p10 = scmp.lt.s32.totalorder (!%p199_p9), %s7830_s22, 1  ;;  %vm7775_vm1 = vmmov (!%p199_p9), 0   ;;  %vm331_vm2 = vcmask (!%p199_p9), 31744   ;;  %v5328_v3 = vld [vmem:[%s9941_s1 + $0x14] sm:$0xf] (!%p199_p9) }
  0x11   : > { %6385 = vmatpush3.msk.msra.mxu0 (!%p199_p9), %vm455_vm0, %v5285_v0  ;;  %5885 = vmatpush3.msk.msra.mxu1 (!%p199_p9), %vm455_vm0, %v5114_v1  ;;  %v287_v6 = vld [vmem:[%s9941_s1] sm:$0xf] (!%p199_p9)  ;;  %v5371_v49 = vld [vmem:[%s9941_s1 + $0x18] sm:$0xf] (!%p199_p9)  ;;  %s5502_s23 = sshll.u32 (!%p199_p9), %s7830_s22, 7  ;;  %s7777_s15 = smov (!%p199_p9), [#allocation2]  }
  0x12   : > { %5886 = vmatprep.mubr.msk.f32.mxu1 (!%p199_p9), %vm7775_vm1, %v7774_v2  ;;  %6386 = vmatprep.mubr.msk.f32.mxu0 (!%p199_p9), %vm7775_vm1, %v7774_v2  ;;  %s9874_s12 = scalar_lea.hbm (!%p199_p9), %s9945_s5, %s5502_s23 }
  0x13   : > { %6509 = vmatprep.subr.mxu0 (!%p199_p9), %v7774_v2  ;;  %6009 = vmatprep.subr.mxu1 (!%p199_p9), %v7774_v2 }
  0x17   : > { %s7873_s9 = scalar_select %p236_p10, %s7830_s22, 1 }
  0x19   : > { %s7626_s10 = smul.u32 368, %s7873_s9 }
  0x1b   : > { %s7881_s13 = scalar_lea.vmem %s9940_s0, %s7626_s10  ;;  %s9867_s10 = scalar_lea.hbm %s9944_s4, %s5502_s23 }
  0x1c   : > { %v288_v4 = vld [vmem:[%s7881_s13 + $0x1] sm:$0xff]  ;;  %v2085_v5 = vld [vmem:[%s7881_s13 + $0x13] sm:$0xff]  ;;  %v289_v7 = vld [vmem:[%s7881_s13 + $0x9] sm:$0xff] }
  0x1d   : > { %5887 = vmatmul.mubr.msk.f32.vlgmr.msra.gmra.mrb[0].mxu1 %vm331_vm2, %v288_v4  ;;  %6387 = vmatmul.mubr.msk.f32.vlgmr.msra.gmra.mrb[0].mxu0 %vm331_vm2, %v2085_v5  ;;  %v2086_v8 = vld [vmem:[%s7881_s13 + $0x1b] sm:$0xff]  ;;  %v290_v9 = vld [vmem:[%s7881_s13 + $0x11] sm:$0xff]  ;;  %v2087_v10 = vld [vmem:[%s7881_s13 + $0x23] sm:$0xff] }
  0x1e   : > { %6510 = vmatpush3.msk.msra.mxu0 %vm455_vm0, %v5328_v3  ;;  %5889 = vmatprep.mubr.msk.f32.mxu1 %vm7775_vm1, %v7774_v2  ;;  %v291_v11 = vld [vmem:[%s7881_s13 + $0x19] sm:$0xff]  ;;  %v2088_v12 = vld [vmem:[%s7881_s13 + $0x2b] sm:$0xff]  ;;  %v292_v13 = vld [vmem:[%s7881_s13 + $0x21] sm:$0xff] }
  0x1f   : > { %6389 = vmatprep.mubr.msk.f32.mxu0 %vm7775_vm1, %v7774_v2  ;;  %6010 = vmatpush3.msk.msra.mxu1 %vm455_vm0, %v287_v6  ;;  %v2089_v14 = vld [vmem:[%s7881_s13 + $0x33] sm:$0xff]  ;;  %v293_v15 = vld [vmem:[%s7881_s13 + $0x29] sm:$0xff]  ;;  %v2090_v16 = vld [vmem:[%s7881_s13 + $0x3b] sm:$0xff] }
  0x20   : > { %6634 = vmatprep.subr.mxu0 %v7774_v2  ;;  %6134 = vmatprep.subr.mxu1 %v7774_v2  ;;  %v294_v17 = vld [vmem:[%s7881_s13 + $0x31] sm:$0xff]  ;;  %v2091_v18 = vld [vmem:[%s7881_s13 + $0x43] sm:$0xff]  ;;  %v295_v19 = vld [vmem:[%s7881_s13 + $0x39] sm:$0xff] }
  0x21   : > { %5890 = vmatmul.mubr.msk.f32.gmra.mrb[2].mxu1 %vm331_vm2, %v289_v7  ;;  %6390 = vmatmul.mubr.msk.f32.gmra.mrb[2].mxu0 %vm331_vm2, %v2086_v8  ;;  %v2092_v20 = vld [vmem:[%s7881_s13 + $0x4b] sm:$0xff]  ;;  %v296_v21 = vld [vmem:[%s7881_s13 + $0x41] sm:$0xff]  ;;  %v2093_v22 = vld [vmem:[%s7881_s13 + $0x53] sm:$0xff] }
  0x22   : > { %5892 = vmatprep.mubr.msk.f32.mxu1 %vm7775_vm1, %v7774_v2  ;;  %6392 = vmatprep.mubr.msk.f32.mxu0 %vm7775_vm1, %v7774_v2  ;;  %v297_v23 = vld [vmem:[%s7881_s13 + $0x49] sm:$0xff]  ;;  %v2094_v24 = vld [vmem:[%s7881_s13 + $0x5b] sm:$0xff]  ;;  %v298_v25 = vld [vmem:[%s7881_s13 + $0x51] sm:$0xff] }
  0x23   : > { %v2095_v26 = vld [vmem:[%s7881_s13 + $0x63] sm:$0xff]  ;;  %v299_v27 = vld [vmem:[%s7881_s13 + $0x59] sm:$0xff]  ;;  %v2096_v28 = vld [vmem:[%s7881_s13 + $0x6b] sm:$0xff] }
  0x24   : > { %v300_v29 = vld [vmem:[%s7881_s13 + $0x61] sm:$0xff]  ;;  %v2097_v30 = vld [vmem:[%s7881_s13 + $0x73] sm:$0xff]  ;;  %v301_v31 = vld [vmem:[%s7881_s13 + $0x69] sm:$0xff] }
  0x25   : > { %5893 = vmatmul.mubr.msk.f32.gmra.mrb[4].mxu1 %vm331_vm2, %v290_v9  ;;  %6393 = vmatmul.mubr.msk.f32.gmra.mrb[4].mxu0 %vm331_vm2, %v2087_v10  ;;  %v2098_v32 = vld [vmem:[%s7881_s13 + $0x7b] sm:$0xff]  ;;  %v302_v33 = vld [vmem:[%s7881_s13 + $0x71] sm:$0xff]  ;;  %v2099_v34 = vld [vmem:[%s7881_s13 + $0x83] sm:$0xff] }
  0x26   : > { %5895 = vmatprep.mubr.msk.f32.mxu1 %vm7775_vm1, %v7774_v2  ;;  %6395 = vmatprep.mubr.msk.f32.mxu0 %vm7775_vm1, %v7774_v2  ;;  %v303_v35 = vld [vmem:[%s7881_s13 + $0x79] sm:$0xff]  ;;  %v2100_v36 = vld [vmem:[%s7881_s13 + $0x8b] sm:$0xff]  ;;  %v304_v37 = vld [vmem:[%s7881_s13 + $0x81] sm:$0xff] }
  0x27   : > { %v2101_v38 = vld [vmem:[%s7881_s13 + $0x93] sm:$0xff]  ;;  %v305_v39 = vld [vmem:[%s7881_s13 + $0x89] sm:$0xff]  ;;  %v2102_v40 = vld [vmem:[%s7881_s13 + $0x9b] sm:$0xff] }
  0x28   : > { %v306_v41 = vld [vmem:[%s7881_s13 + $0x91] sm:$0xff]  ;;  %v2103_v42 = vld [vmem:[%s7881_s13 + $0xa3] sm:$0xff]  ;;  %v307_v43 = vld [vmem:[%s7881_s13 + $0x99] sm:$0xff] }
  0x29   : > { %5896 = vmatmul.mubr.msk.f32.gmra.mrb[6].mxu1 %vm331_vm2, %v291_v11  ;;  %6396 = vmatmul.mubr.msk.f32.gmra.mrb[6].mxu0 %vm331_vm2, %v2088_v12  ;;  %v2104_v44 = vld [vmem:[%s7881_s13 + $0xab] sm:$0xff]  ;;  %v308_v45 = vld [vmem:[%s7881_s13 + $0xa1] sm:$0xff]  ;;  %v2105_v46 = vld [vmem:[%s7881_s13 + $0xb3] sm:$0xff] }
  0x2a   : > { %5898 = vmatprep.mubr.msk.f32.mxu1 %vm7775_vm1, %v7774_v2  ;;  %6398 = vmatprep.mubr.msk.f32.mxu0 %vm7775_vm1, %v7774_v2  ;;  %v309_v47 = vld [vmem:[%s7881_s13 + $0xa9] sm:$0xff]  ;;  %v2565_v48 = vld [vmem:[%s7881_s13 + $0x14] sm:$0xff]  ;;  %v2566_v51 = vld [vmem:[%s7881_s13 + $0x1c] sm:$0xff] }
  0x2b   : > { %v310_v50 = vld [vmem:[%s7881_s13 + $0xb1] sm:$0xff]  ;;  %v311_v52 = vld [vmem:[%s7881_s13 + $0xb9] sm:$0xff]  ;;  %v8084_v53 = vld [vmem:[%s7881_s13 + $0x24] sm:$0xff] }
  0x2c   : > { %v312_v54 = vld [vmem:[%s7881_s13 + $0xc1] sm:$0xff]  ;;  %v8095_v55 = vld [vmem:[%s7881_s13 + $0x2c] sm:$0xff]  ;;  %v8106_v57 = vld [vmem:[%s7881_s13 + $0x34] sm:$0xff] }
  0x2d   : > { %5899 = vmatmul.mubr.msk.f32.gmra.mrb[8].mxu1 %vm331_vm2, %v292_v13  ;;  %6399 = vmatmul.mubr.msk.f32.gmra.mrb[8].mxu0 %vm331_vm2, %v2089_v14  ;;  %v313_v56 = vld [vmem:[%s7881_s13 + $0xc9] sm:$0xff]  ;;  %v314_v58 = vld [vmem:[%s7881_s13 + $0xd1] sm:$0xff]  ;;  %v8117_v59 = vld [vmem:[%s7881_s13 + $0x3c] sm:$0xff] }
  0x2e   : > { %5901 = vmatprep.mubr.msk.f32.mxu1 %vm7775_vm1, %v7774_v2  ;;  %6401 = vmatprep.mubr.msk.f32.mxu0 %vm7775_vm1, %v7774_v2  ;;  %v315_v60 = vld [vmem:[%s7881_s13 + $0xd9] sm:$0xff]  ;;  %v8128_v61 = vld [vmem:[%s7881_s13 + $0x44] sm:$0xff]  ;;  %v8139_v63 = vld [vmem:[%s7881_s13 + $0x4c] sm:$0xff] }
  0x2f   : > { %v316_v62 = vld [vmem:[%s7881_s13 + $0xe1] sm:$0xff]  ;;  %v317_v0 = vld [vmem:[%s7881_s13 + $0xe9] sm:$0xff]  ;;  %v8150_v1 = vld [vmem:[%s7881_s13 + $0x54] sm:$0xff] }
  0x30   : > { %v318_v3 = vld [vmem:[%s7881_s13 + $0xf1] sm:$0xff]  ;;  %v8161_v4 = vld [vmem:[%s7881_s13 + $0x5c] sm:$0xff]  ;;  %v8172_v6 = vld [vmem:[%s7881_s13 + $0x64] sm:$0xff] }
  0x31   : > { %5902 = vmatmul.mubr.msk.f32.gmra.mrb[10].mxu1 %vm331_vm2, %v293_v15  ;;  %6402 = vmatmul.mubr.msk.f32.gmra.mrb[10].mxu0 %vm331_vm2, %v2090_v16  ;;  %v319_v5 = vld [vmem:[%s7881_s13 + $0xf9] sm:$0xff]  ;;  %v320_v7 = vld [vmem:[%s7881_s13 + $0x101] sm:$0xff]  ;;  %v8183_v8 = vld [vmem:[%s7881_s13 + $0x6c] sm:$0xff] }
  0x32   : > { %5904 = vmatprep.mubr.msk.f32.mxu1 %vm7775_vm1, %v7774_v2  ;;  %6404 = vmatprep.mubr.msk.f32.mxu0 %vm7775_vm1, %v7774_v2  ;;  %v321_v9 = vld [vmem:[%s7881_s13 + $0x109] sm:$0xff]  ;;  %v8194_v10 = vld [vmem:[%s7881_s13 + $0x74] sm:$0xff]  ;;  %v8205_v12 = vld [vmem:[%s7881_s13 + $0x7c] sm:$0xff] }
  0x33   : > { %v322_v11 = vld [vmem:[%s7881_s13 + $0x111] sm:$0xff]  ;;  %v323_v13 = vld [vmem:[%s7881_s13 + $0x119] sm:$0xff]  ;;  %v8216_v14 = vld [vmem:[%s7881_s13 + $0x84] sm:$0xff] }
  0x34   : > { %v324_v15 = vld [vmem:[%s7881_s13 + $0x121] sm:$0xff]  ;;  %v8227_v16 = vld [vmem:[%s7881_s13 + $0x8c] sm:$0xff] }
  0x35   : > { %5905 = vmatmul.mubr.msk.f32.gmra.mrb[12].mxu1 %vm331_vm2, %v294_v17  ;;  %6405 = vmatmul.mubr.msk.f32.gmra.mrb[12].mxu0 %vm331_vm2, %v2091_v18  ;;  %v325_v17 = vld [vmem:[%s7881_s13 + $0x129] sm:$0xff]  ;;  %v8238_v18 = vld [vmem:[%s7881_s13 + $0x94] sm:$0xff] }
  0x36   : > { %5907 = vmatprep.mubr.msk.f32.mxu1 %vm7775_vm1, %v7774_v2  ;;  %6407 = vmatprep.mubr.msk.f32.mxu0 %vm7775_vm1, %v7774_v2 }
  0x39   : > { %5908 = vmatmul.mubr.msk.f32.gmra.mrb[14].mxu1 %vm331_vm2, %v295_v19  ;;  %6408 = vmatmul.mubr.msk.f32.gmra.mrb[14].mxu0 %vm331_vm2, %v2092_v20  ;;  %v326_v19 = vld [vmem:[%s7881_s13 + $0x131] sm:$0xff]  ;;  %v8249_v20 = vld [vmem:[%s7881_s13 + $0x9c] sm:$0xff] }
  0x3a   : > { %5910 = vmatprep.mubr.msk.f32.mxu1 %vm7775_vm1, %v7774_v2  ;;  %6410 = vmatprep.mubr.msk.f32.mxu0 %vm7775_vm1, %v7774_v2 }
  0x3d   : > { %5911 = vmatmul.mubr.msk.f32.gmra.mrb[16].mxu1 %vm331_vm2, %v296_v21  ;;  %6411 = vmatmul.mubr.msk.f32.gmra.mrb[16].mxu0 %vm331_vm2, %v2093_v22  ;;  %v327_v21 = vld [vmem:[%s7881_s13 + $0x139] sm:$0xff]  ;;  %v8260_v22 = vld [vmem:[%s7881_s13 + $0xa4] sm:$0xff] }
  0x3e   : > { %5913 = vmatprep.mubr.msk.f32.mxu1 %vm7775_vm1, %v7774_v2  ;;  %6413 = vmatprep.mubr.msk.f32.mxu0 %vm7775_vm1, %v7774_v2 }
  0x41   : > { %5914 = vmatmul.mubr.msk.f32.gmra.mrb[18].mxu1 %vm331_vm2, %v297_v23  ;;  %6414 = vmatmul.mubr.msk.f32.gmra.mrb[18].mxu0 %vm331_vm2, %v2094_v24  ;;  %v328_v23 = vld [vmem:[%s7881_s13 + $0x141] sm:$0xf]  ;;  %v8271_v24 = vld [vmem:[%s7881_s13 + $0xac] sm:$0xff] }
  0x42   : > { %5916 = vmatprep.mubr.msk.f32.mxu1 %vm7775_vm1, %v7774_v2  ;;  %6416 = vmatprep.mubr.msk.f32.mxu0 %vm7775_vm1, %v7774_v2 }
  0x45   : > { %5917 = vmatmul.mubr.msk.f32.gmra.mrb[20].mxu1 %vm331_vm2, %v298_v25  ;;  %6417 = vmatmul.mubr.msk.f32.gmra.mrb[20].mxu0 %vm331_vm2, %v2095_v26  ;;  %v246_v25 = vld [vmem:[%s7881_s13] sm:$0xff]  ;;  %v8282_v26 = vld [vmem:[%s7881_s13 + $0xb4] sm:$0xff] }
  0x46   : > { %5919 = vmatprep.mubr.msk.f32.mxu1 %vm7775_vm1, %v7774_v2  ;;  %6419 = vmatprep.mubr.msk.f32.mxu0 %vm7775_vm1, %v7774_v2 }
  0x49   : > { %5920 = vmatmul.mubr.msk.f32.gmra.mrb[22].mxu1 %vm331_vm2, %v299_v27  ;;  %6420 = vmatmul.mubr.msk.f32.gmra.mrb[22].mxu0 %vm331_vm2, %v2096_v28  ;;  %v5199_v27 = vld [vmem:[%s9941_s1 + $0x8] sm:$0xf] }
  0x4a   : > { %5922 = vmatprep.mubr.msk.f32.mxu1 %vm7775_vm1, %v7774_v2  ;;  %6422 = vmatprep.mubr.msk.f32.mxu0 %vm7775_vm1, %v7774_v2  ;;  %v247_v28 = vld [vmem:[%s7881_s13 + $0x8] sm:$0xff] }
  0x4d   : > { %5923 = vmatmul.mubr.msk.f32.gmra.mrb[24].mxu1 %vm331_vm2, %v300_v29  ;;  %6423 = vmatmul.mubr.msk.f32.gmra.mrb[24].mxu0 %vm331_vm2, %v2097_v30  ;;  %v8296_v29 = vld [vmem:[%s7881_s13 + $0xbc] sm:$0xff]  ;;  %v248_v30 = vld [vmem:[%s7881_s13 + $0x10] sm:$0xff] }
  0x4e   : > { %5925 = vmatprep.mubr.msk.f32.mxu1 %vm7775_vm1, %v7774_v2  ;;  %6425 = vmatprep.mubr.msk.f32.mxu0 %vm7775_vm1, %v7774_v2 }
  0x51   : > { %5926 = vmatmul.mubr.msk.f32.gmra.mrb[26].mxu1 %vm331_vm2, %v301_v31  ;;  %6426 = vmatmul.mubr.msk.f32.gmra.mrb[26].mxu0 %vm331_vm2, %v2098_v32  ;;  %v8309_v31 = vld [vmem:[%s7881_s13 + $0xc4] sm:$0xff]  ;;  %v249_v32 = vld [vmem:[%s7881_s13 + $0x18] sm:$0xff] }
  0x52   : > { %5928 = vmatprep.mubr.msk.f32.mxu1 %vm7775_vm1, %v7774_v2  ;;  %6428 = vmatprep.mubr.msk.f32.mxu0 %vm7775_vm1, %v7774_v2 }
  0x55   : > { %5929 = vmatmul.mubr.msk.f32.gmra.mrb[28].mxu1 %vm331_vm2, %v302_v33  ;;  %6429 = vmatmul.mubr.msk.f32.gmra.mrb[28].mxu0 %vm331_vm2, %v2099_v34  ;;  %v8320_v33 = vld [vmem:[%s7881_s13 + $0xcc] sm:$0xff]  ;;  %v250_v34 = vld [vmem:[%s7881_s13 + $0x20] sm:$0xff] }
  0x56   : > { %5931 = vmatprep.mubr.msk.f32.mxu1 %vm7775_vm1, %v7774_v2  ;;  %6431 = vmatprep.mubr.msk.f32.mxu0 %vm7775_vm1, %v7774_v2 }
  0x59   : > { %5932 = vmatmul.mubr.msk.f32.gmra.mrb[30].mxu1 %vm331_vm2, %v303_v35  ;;  %6432 = vmatmul.mubr.msk.f32.gmra.mrb[30].mxu0 %vm331_vm2, %v2100_v36  ;;  %v8331_v35 = vld [vmem:[%s7881_s13 + $0xd4] sm:$0xff]  ;;  %v251_v36 = vld [vmem:[%s7881_s13 + $0x28] sm:$0xff] }
  0x5a   : > { %5934 = vmatprep.mubr.msk.f32.mxu1 %vm7775_vm1, %v7774_v2  ;;  %6434 = vmatprep.mubr.msk.f32.mxu0 %vm7775_vm1, %v7774_v2 }
  0x5d   : > { %5935 = vmatmul.mubr.msk.f32.gmra.mrb[32].mxu1 %vm331_vm2, %v304_v37  ;;  %6435 = vmatmul.mubr.msk.f32.gmra.mrb[32].mxu0 %vm331_vm2, %v2101_v38  ;;  %v8342_v37 = vld [vmem:[%s7881_s13 + $0xdc] sm:$0xff]  ;;  %v252_v38 = vld [vmem:[%s7881_s13 + $0x30] sm:$0xff] }
  0x5e   : > { %5937 = vmatprep.mubr.msk.f32.mxu1 %vm7775_vm1, %v7774_v2  ;;  %6437 = vmatprep.mubr.msk.f32.mxu0 %vm7775_vm1, %v7774_v2 }
  0x61   : > { %5938 = vmatmul.mubr.msk.f32.gmra.mrb[34].mxu1 %vm331_vm2, %v305_v39  ;;  %6438 = vmatmul.mubr.msk.f32.gmra.mrb[34].mxu0 %vm331_vm2, %v2102_v40  ;;  %v8353_v39 = vld [vmem:[%s7881_s13 + $0xe4] sm:$0xff]  ;;  %v253_v40 = vld [vmem:[%s7881_s13 + $0x38] sm:$0xff] }
  0x62   : > { %5940 = vmatprep.mubr.msk.f32.mxu1 %vm7775_vm1, %v7774_v2  ;;  %6440 = vmatprep.mubr.msk.f32.mxu0 %vm7775_vm1, %v7774_v2 }
  0x65   : > { %5941 = vmatmul.mubr.msk.f32.gmra.mrb[36].mxu1 %vm331_vm2, %v306_v41  ;;  %6441 = vmatmul.mubr.msk.f32.gmra.mrb[36].mxu0 %vm331_vm2, %v2103_v42  ;;  %v8364_v41 = vld [vmem:[%s7881_s13 + $0xec] sm:$0xff]  ;;  %v254_v42 = vld [vmem:[%s7881_s13 + $0x40] sm:$0xff] }
  0x66   : > { %5943 = vmatprep.mubr.msk.f32.mxu1 %vm7775_vm1, %v7774_v2  ;;  %6443 = vmatprep.mubr.msk.f32.mxu0 %vm7775_vm1, %v7774_v2 }
  0x69   : > { %5944 = vmatmul.mubr.msk.f32.gmra.mrb[38].mxu1 %vm331_vm2, %v307_v43  ;;  %6444 = vmatmul.mubr.msk.f32.gmra.mrb[38].mxu0 %vm331_vm2, %v2104_v44  ;;  %v8375_v43 = vld [vmem:[%s7881_s13 + $0xf4] sm:$0xff]  ;;  %v255_v44 = vld [vmem:[%s7881_s13 + $0x48] sm:$0xff] }
  0x6a   : > { %5946 = vmatprep.mubr.msk.f32.mxu1 %vm7775_vm1, %v7774_v2  ;;  %6446 = vmatprep.mubr.msk.f32.mxu0 %vm7775_vm1, %v7774_v2 }
  0x6d   : > { %5947 = vmatmul.mubr.msk.f32.gmra.mrb[40].mxu1 %vm331_vm2, %v308_v45  ;;  %6447 = vmatmul.mubr.msk.f32.gmra.mrb[40].mxu0 %vm331_vm2, %v2105_v46  ;;  %v8386_v45 = vld [vmem:[%s7881_s13 + $0xfc] sm:$0xff]  ;;  %v256_v46 = vld [vmem:[%s7881_s13 + $0x50] sm:$0xff] }
  0x6e   : > { %5949 = vmatprep.mubr.msk.f32.mxu1 %vm7775_vm1, %v7774_v2  ;;  %6511 = vmatprep.mubr.msk.f32.mxu0 %vm7775_vm1, %v7774_v2 }
  0x71   : > { %5950 = vmatmul.mubr.msk.f32.gmra.mrb[42].mxu1 %vm331_vm2, %v309_v47  ;;  %6512 = vmatmul.mubr.msk.f32.vlgmr.msra.gmra.mrb[0].mxu0 %vm331_vm2, %v2565_v48  ;;  %v8397_v47 = vld [vmem:[%s7881_s13 + $0x104] sm:$0xff]  ;;  %v257_v48 = vld [vmem:[%s7881_s13 + $0x58] sm:$0xff] }
  0x72   : > { %6635 = vmatpush3.msk.msra.mxu0 %vm455_vm0, %v5371_v49  ;;  %5952 = vmatprep.mubr.msk.f32.mxu1 %vm7775_vm1, %v7774_v2  ;;  %v8408_v49 = vld [vmem:[%s7881_s13 + $0x10c] sm:$0xff] }
  0x73   : > { %6514 = vmatprep.mubr.msk.f32.mxu0 %vm7775_vm1, %v7774_v2  ;;  %6759 = vmatprep.subr.mxu0 %v7774_v2 }
  0x75   : > { %5953 = vmatmul.mubr.msk.f32.gmra.mrb[44].mxu1 %vm331_vm2, %v310_v50  ;;  %6515 = vmatmul.mubr.msk.f32.gmra.mrb[2].mxu0 %vm331_vm2, %v2566_v51  ;;  %v258_v50 = vld [vmem:[%s7881_s13 + $0x60] sm:$0xff]  ;;  %v8419_v51 = vld [vmem:[%s7881_s13 + $0x114] sm:$0xff] }
  0x76   : > { %5955 = vmatprep.mubr.msk.f32.mxu1 %vm7775_vm1, %v7774_v2  ;;  %6517 = vmatprep.mubr.msk.f32.mxu0 %vm7775_vm1, %v7774_v2 }
  0x79   : > { %5956 = vmatmul.mubr.msk.f32.gmra.mrb[46].mxu1 %vm331_vm2, %v311_v52  ;;  %6518 = vmatmul.mubr.msk.f32.gmra.mrb[4].mxu0 %vm331_vm2, %v8084_v53  ;;  %v259_v52 = vld [vmem:[%s7881_s13 + $0x68] sm:$0xff] }
  0x7a   : > { %5958 = vmatprep.mubr.msk.f32.mxu1 %vm7775_vm1, %v7774_v2  ;;  %6520 = vmatprep.mubr.msk.f32.mxu0 %vm7775_vm1, %v7774_v2 }
  0x7d   : > { %5959 = vmatmul.mubr.msk.f32.gmra.mrb[48].mxu1 %vm331_vm2, %v312_v54  ;;  %6521 = vmatmul.mubr.msk.f32.gmra.mrb[6].mxu0 %vm331_vm2, %v8095_v55  ;;  %v8430_v54 = vld [vmem:[%s7881_s13 + $0x11c] sm:$0xff] }
  0x7e   : > { %5961 = vmatprep.mubr.msk.f32.mxu1 %vm7775_vm1, %v7774_v2  ;;  %6523 = vmatprep.mubr.msk.f32.mxu0 %vm7775_vm1, %v7774_v2 }
  0x81   : > { %5962 = vmatmul.mubr.msk.f32.gmra.mrb[50].mxu1 %vm331_vm2, %v313_v56  ;;  %6524 = vmatmul.mubr.msk.f32.gmra.mrb[8].mxu0 %vm331_vm2, %v8106_v57  ;;  %v260_v56 = vld [vmem:[%s7881_s13 + $0x70] sm:$0xff] }
  0x82   : > { %5964 = vmatprep.mubr.msk.f32.mxu1 %vm7775_vm1, %v7774_v2  ;;  %6526 = vmatprep.mubr.msk.f32.mxu0 %vm7775_vm1, %v7774_v2 }
  0x85   : > { %5965 = vmatmul.mubr.msk.f32.gmra.mrb[52].mxu1 %vm331_vm2, %v314_v58  ;;  %6527 = vmatmul.mubr.msk.f32.gmra.mrb[10].mxu0 %vm331_vm2, %v8117_v59  ;;  %v8441_v58 = vld [vmem:[%s7881_s13 + $0x124] sm:$0xff] }
  0x86   : > { %5967 = vmatprep.mubr.msk.f32.mxu1 %vm7775_vm1, %v7774_v2  ;;  %6529 = vmatprep.mubr.msk.f32.mxu0 %vm7775_vm1, %v7774_v2 }
  0x89   : > { %5968 = vmatmul.mubr.msk.f32.gmra.mrb[54].mxu1 %vm331_vm2, %v315_v60  ;;  %6530 = vmatmul.mubr.msk.f32.gmra.mrb[12].mxu0 %vm331_vm2, %v8128_v61  ;;  %v261_v60 = vld [vmem:[%s7881_s13 + $0x78] sm:$0xff] }
  0x8a   : > { %5970 = vmatprep.mubr.msk.f32.mxu1 %vm7775_vm1, %v7774_v2  ;;  %6532 = vmatprep.mubr.msk.f32.mxu0 %vm7775_vm1, %v7774_v2 }
  0x8d   : > { %5971 = vmatmul.mubr.msk.f32.gmra.mrb[56].mxu1 %vm331_vm2, %v316_v62  ;;  %6533 = vmatmul.mubr.msk.f32.gmra.mrb[14].mxu0 %vm331_vm2, %v8139_v63  ;;  %v8452_v62 = vld [vmem:[%s7881_s13 + $0x12c] sm:$0xff] }
  0x8e   : > { %5973 = vmatprep.mubr.msk.f32.mxu1 %vm7775_vm1, %v7774_v2  ;;  %6535 = vmatprep.mubr.msk.f32.mxu0 %vm7775_vm1, %v7774_v2 }
  0x91   : > { %5974 = vmatmul.mubr.msk.f32.gmra.mrb[58].mxu1 %vm331_vm2, %v317_v0  ;;  %6536 = vmatmul.mubr.msk.f32.gmra.mrb[16].mxu0 %vm331_vm2, %v8150_v1  ;;  %v262_v0 = vld [vmem:[%s7881_s13 + $0x80] sm:$0xff] }
  0x92   : > { %5976 = vmatprep.mubr.msk.f32.mxu1 %vm7775_vm1, %v7774_v2  ;;  %6538 = vmatprep.mubr.msk.f32.mxu0 %vm7775_vm1, %v7774_v2 }
  0x95   : > { %5977 = vmatmul.mubr.msk.f32.gmra.mrb[60].mxu1 %vm331_vm2, %v318_v3  ;;  %6539 = vmatmul.mubr.msk.f32.gmra.mrb[18].mxu0 %vm331_vm2, %v8161_v4  ;;  %v8463_v3 = vld [vmem:[%s7881_s13 + $0x134] sm:$0xff] }
  0x96   : > { %5979 = vmatprep.mubr.msk.f32.mxu1 %vm7775_vm1, %v7774_v2  ;;  %6541 = vmatprep.mubr.msk.f32.mxu0 %vm7775_vm1, %v7774_v2 }
  0x99   : > { %5980 = vmatmul.mubr.msk.f32.gmra.mrb[62].mxu1 %vm331_vm2, %v319_v5  ;;  %6542 = vmatmul.mubr.msk.f32.gmra.mrb[20].mxu0 %vm331_vm2, %v8172_v6  ;;  %v263_v5 = vld [vmem:[%s7881_s13 + $0x88] sm:$0xff] }
  0x9a   : > { %5982 = vmatprep.mubr.msk.f32.mxu1 %vm7775_vm1, %v7774_v2  ;;  %6544 = vmatprep.mubr.msk.f32.mxu0 %vm7775_vm1, %v7774_v2 }
  0x9d   : > { %5983 = vmatmul.mubr.msk.f32.gmra.mrb[64].mxu1 %vm331_vm2, %v320_v7  ;;  %6545 = vmatmul.mubr.msk.f32.gmra.mrb[22].mxu0 %vm331_vm2, %v8183_v8  ;;  %v8474_v7 = vld [vmem:[%s7881_s13 + $0x13c] sm:$0xff] }
  0x9e   : > { %5985 = vmatprep.mubr.msk.f32.mxu1 %vm7775_vm1, %v7774_v2  ;;  %6547 = vmatprep.mubr.msk.f32.mxu0 %vm7775_vm1, %v7774_v2 }
  0xa1   : > { %5986 = vmatmul.mubr.msk.f32.gmra.mrb[66].mxu1 %vm331_vm2, %v321_v9  ;;  %6548 = vmatmul.mubr.msk.f32.gmra.mrb[24].mxu0 %vm331_vm2, %v8194_v10  ;;  %v264_v9 = vld [vmem:[%s7881_s13 + $0x90] sm:$0xff] }
  0xa2   : > { %5988 = vmatprep.mubr.msk.f32.mxu1 %vm7775_vm1, %v7774_v2  ;;  %6550 = vmatprep.mubr.msk.f32.mxu0 %vm7775_vm1, %v7774_v2 }
  0xa5   : > { %5989 = vmatmul.mubr.msk.f32.gmra.mrb[68].mxu1 %vm331_vm2, %v322_v11  ;;  %6551 = vmatmul.mubr.msk.f32.gmra.mrb[26].mxu0 %vm331_vm2, %v8205_v12  ;;  %v8485_v11 = vld [vmem:[%s7881_s13 + $0x144] sm:$0xff] }
  0xa6   : > { %5991 = vmatprep.mubr.msk.f32.mxu1 %vm7775_vm1, %v7774_v2  ;;  %6553 = vmatprep.mubr.msk.f32.mxu0 %vm7775_vm1, %v7774_v2 }
  0xa9   : > { %5992 = vmatmul.mubr.msk.f32.gmra.mrb[70].mxu1 %vm331_vm2, %v323_v13  ;;  %6554 = vmatmul.mubr.msk.f32.gmra.mrb[28].mxu0 %vm331_vm2, %v8216_v14  ;;  %v265_v13 = vld [vmem:[%s7881_s13 + $0x98] sm:$0xff] }
  0xaa   : > { %5994 = vmatprep.mubr.msk.f32.mxu1 %vm7775_vm1, %v7774_v2  ;;  %6556 = vmatprep.mubr.msk.f32.mxu0 %vm7775_vm1, %v7774_v2 }
  0xad   : > { %5995 = vmatmul.mubr.msk.f32.gmra.mrb[72].mxu1 %vm331_vm2, %v324_v15  ;;  %6557 = vmatmul.mubr.msk.f32.gmra.mrb[30].mxu0 %vm331_vm2, %v8227_v16  ;;  %v8496_v15 = vld [vmem:[%s7881_s13 + $0x14c] sm:$0xff] }
  0xae   : > { %5997 = vmatprep.mubr.msk.f32.mxu1 %vm7775_vm1, %v7774_v2  ;;  %6559 = vmatprep.mubr.msk.f32.mxu0 %vm7775_vm1, %v7774_v2 }
  0xb1   : > { %5998 = vmatmul.mubr.msk.f32.gmra.mrb[74].mxu1 %vm331_vm2, %v325_v17  ;;  %6560 = vmatmul.mubr.msk.f32.gmra.mrb[32].mxu0 %vm331_vm2, %v8238_v18  ;;  %v266_v17 = vld [vmem:[%s7881_s13 + $0xa0] sm:$0xff] }
  0xb2   : > { %6000 = vmatprep.mubr.msk.f32.mxu1 %vm7775_vm1, %v7774_v2  ;;  %6562 = vmatprep.mubr.msk.f32.mxu0 %vm7775_vm1, %v7774_v2 }
  0xb5   : > { %6001 = vmatmul.mubr.msk.f32.gmra.mrb[76].mxu1 %vm331_vm2, %v326_v19  ;;  %6563 = vmatmul.mubr.msk.f32.gmra.mrb[34].mxu0 %vm331_vm2, %v8249_v20  ;;  %v2605_v19 = vld [vmem:[%s7881_s13 + $0x154] sm:$0xf] }
  0xb6   : > { %6003 = vmatprep.mubr.msk.f32.mxu1 %vm7775_vm1, %v7774_v2  ;;  %6565 = vmatprep.mubr.msk.f32.mxu0 %vm7775_vm1, %v7774_v2 }
  0xb9   : > { %6004 = vmatmul.mubr.msk.f32.gmra.mrb[78].mxu1 %vm331_vm2, %v327_v21  ;;  %6566 = vmatmul.mubr.msk.f32.gmra.mrb[36].mxu0 %vm331_vm2, %v8260_v22  ;;  %v267_v21 = vld [vmem:[%s7881_s13 + $0xa8] sm:$0xff] }
  0xba   : > { %6006 = vmatprep.mubr.msk.f32.mxu1 %vm7775_vm1, %v7774_v2  ;;  %6568 = vmatprep.mubr.msk.f32.mxu0 %vm7775_vm1, %v7774_v2 }
  0xbd   : > { %6007 = vmatmul.mubr.msk.f32.gmra.mrb[80].mxu1 %vm331_vm2, %v328_v23  ;;  %6569 = vmatmul.mubr.msk.f32.gmra.mrb[38].mxu0 %vm331_vm2, %v8271_v24  ;;  %v5414_v23 = vld [vmem:[%s9941_s1 + $0x1c] sm:$0xf] }
  0xbe   : > { %6011 = vmatprep.mubr.msk.f32.mxu1 %vm7775_vm1, %v7774_v2  ;;  %6571 = vmatprep.mubr.msk.f32.mxu0 %vm7775_vm1, %v7774_v2 }
  0xc1   : > { %6012 = vmatmul.mubr.msk.f32.vlgmr.msra.gmra.mrb[0].mxu1 %vm331_vm2, %v246_v25  ;;  %6572 = vmatmul.mubr.msk.f32.gmra.mrb[40].mxu0 %vm331_vm2, %v8282_v26  ;;  %v268_v25 = vld [vmem:[%s7881_s13 + $0xb0] sm:$0xff] }
  0xc2   : > { %6014 = vmatprep.mubr.msk.f32.mxu1 %vm7775_vm1, %v7774_v2  ;;  %6574 = vmatprep.mubr.msk.f32.mxu0 %vm7775_vm1, %v7774_v2 }
  0xc3   : > { %6135 = vmatpush3.msk.msra.mxu1 %vm455_vm0, %v5199_v27  ;;  %v5242_v27 = vld [vmem:[%s9941_s1 + $0xc] sm:$0xf] }
  0xc4   : > { %6259 = vmatprep.subr.mxu1 %v7774_v2 }
  0xc5   : > { %6015 = vmatmul.mubr.msk.f32.gmra.mrb[2].mxu1 %vm331_vm2, %v247_v28  ;;  %6575 = vmatmul.mubr.msk.f32.gmra.mrb[42].mxu0 %vm331_vm2, %v8296_v29  ;;  %v1126_v28 = vld [vmem:[%s7881_s13 + $0xa] sm:$0xff] }
  0xc6   : > { %6017 = vmatprep.mubr.msk.f32.mxu1 %vm7775_vm1, %v7774_v2  ;;  %6577 = vmatprep.mubr.msk.f32.mxu0 %vm7775_vm1, %v7774_v2 }
  0xc9   : > { %6018 = vmatmul.mubr.msk.f32.gmra.mrb[4].mxu1 %vm331_vm2, %v248_v30  ;;  %6578 = vmatmul.mubr.msk.f32.gmra.mrb[44].mxu0 %vm331_vm2, %v8309_v31  ;;  %v8711_v30 = vld [vmem:[%s7881_s13 + $0x1a] sm:$0xff] }
  0xca   : > { %6020 = vmatprep.mubr.msk.f32.mxu1 %vm7775_vm1, %v7774_v2  ;;  %6580 = vmatprep.mubr.msk.f32.mxu0 %vm7775_vm1, %v7774_v2 }
  0xcd   : > { %6021 = vmatmul.mubr.msk.f32.gmra.mrb[6].mxu1 %vm331_vm2, %v249_v32  ;;  %6581 = vmatmul.mubr.msk.f32.gmra.mrb[46].mxu0 %vm331_vm2, %v8320_v33  ;;  %v8733_v32 = vld [vmem:[%s7881_s13 + $0x2a] sm:$0xff] }
  0xce   : > { %6023 = vmatprep.mubr.msk.f32.mxu1 %vm7775_vm1, %v7774_v2  ;;  %6583 = vmatprep.mubr.msk.f32.mxu0 %vm7775_vm1, %v7774_v2 }
  0xd1   : > { %6024 = vmatmul.mubr.msk.f32.gmra.mrb[8].mxu1 %vm331_vm2, %v250_v34  ;;  %6584 = vmatmul.mubr.msk.f32.gmra.mrb[48].mxu0 %vm331_vm2, %v8331_v35  ;;  %v8755_v34 = vld [vmem:[%s7881_s13 + $0x3a] sm:$0xff] }
  0xd2   : > { %6026 = vmatprep.mubr.msk.f32.mxu1 %vm7775_vm1, %v7774_v2  ;;  %6586 = vmatprep.mubr.msk.f32.mxu0 %vm7775_vm1, %v7774_v2 }
  0xd5   : > { %6027 = vmatmul.mubr.msk.f32.gmra.mrb[10].mxu1 %vm331_vm2, %v251_v36  ;;  %6587 = vmatmul.mubr.msk.f32.gmra.mrb[50].mxu0 %vm331_vm2, %v8342_v37  ;;  %v8777_v36 = vld [vmem:[%s7881_s13 + $0x4a] sm:$0xff] }
  0xd6   : > { %6029 = vmatprep.mubr.msk.f32.mxu1 %vm7775_vm1, %v7774_v2  ;;  %6589 = vmatprep.mubr.msk.f32.mxu0 %vm7775_vm1, %v7774_v2 }
  0xd9   : > { %6030 = vmatmul.mubr.msk.f32.gmra.mrb[12].mxu1 %vm331_vm2, %v252_v38  ;;  %6590 = vmatmul.mubr.msk.f32.gmra.mrb[52].mxu0 %vm331_vm2, %v8353_v39  ;;  %v8799_v38 = vld [vmem:[%s7881_s13 + $0x5a] sm:$0xff] }
  0xda   : > { %6032 = vmatprep.mubr.msk.f32.mxu1 %vm7775_vm1, %v7774_v2  ;;  %6592 = vmatprep.mubr.msk.f32.mxu0 %vm7775_vm1, %v7774_v2 }
  0xdd   : > { %6033 = vmatmul.mubr.msk.f32.gmra.mrb[14].mxu1 %vm331_vm2, %v253_v40  ;;  %6593 = vmatmul.mubr.msk.f32.gmra.mrb[54].mxu0 %vm331_vm2, %v8364_v41  ;;  %v8821_v40 = vld [vmem:[%s7881_s13 + $0x6a] sm:$0xff] }
  0xde   : > { %6035 = vmatprep.mubr.msk.f32.mxu1 %vm7775_vm1, %v7774_v2  ;;  %6595 = vmatprep.mubr.msk.f32.mxu0 %vm7775_vm1, %v7774_v2 }
  0xe1   : > { %6036 = vmatmul.mubr.msk.f32.gmra.mrb[16].mxu1 %vm331_vm2, %v254_v42  ;;  %6596 = vmatmul.mubr.msk.f32.gmra.mrb[56].mxu0 %vm331_vm2, %v8375_v43  ;;  %v8843_v42 = vld [vmem:[%s7881_s13 + $0x7a] sm:$0xff] }
  0xe2   : > { %6038 = vmatprep.mubr.msk.f32.mxu1 %vm7775_vm1, %v7774_v2  ;;  %6598 = vmatprep.mubr.msk.f32.mxu0 %vm7775_vm1, %v7774_v2 }
  0xe5   : > { %6039 = vmatmul.mubr.msk.f32.gmra.mrb[18].mxu1 %vm331_vm2, %v255_v44  ;;  %6599 = vmatmul.mubr.msk.f32.gmra.mrb[58].mxu0 %vm331_vm2, %v8386_v45  ;;  %v8865_v44 = vld [vmem:[%s7881_s13 + $0x8a] sm:$0xff] }
  0xe6   : > { %6041 = vmatprep.mubr.msk.f32.mxu1 %vm7775_vm1, %v7774_v2  ;;  %6601 = vmatprep.mubr.msk.f32.mxu0 %vm7775_vm1, %v7774_v2 }
  0xe9   : > { %6042 = vmatmul.mubr.msk.f32.gmra.mrb[20].mxu1 %vm331_vm2, %v256_v46  ;;  %6602 = vmatmul.mubr.msk.f32.gmra.mrb[60].mxu0 %vm331_vm2, %v8397_v47  ;;  %v3083_v46 = vld [vmem:[%s7881_s13 + $0x154] sm:$0xff] }
  0xea   : > { %6044 = vmatprep.mubr.msk.f32.mxu1 %vm7775_vm1, %v7774_v2  ;;  %6604 = vmatprep.mubr.msk.f32.mxu0 %vm7775_vm1, %v7774_v2 }
  0xed   : > { %6045 = vmatmul.mubr.msk.f32.gmra.mrb[22].mxu1 %vm331_vm2, %v257_v48  ;;  %6605 = vmatmul.mubr.msk.f32.gmra.mrb[62].mxu0 %vm331_vm2, %v8408_v49  ;;  %v3084_v48 = vld [vmem:[%s7881_s13 + $0x15c] sm:$0xff] }
  0xee   : > { %6047 = vmatprep.mubr.msk.f32.mxu1 %vm7775_vm1, %v7774_v2  ;;  %6607 = vmatprep.mubr.msk.f32.mxu0 %vm7775_vm1, %v7774_v2 }
  0xf1   : > { %6048 = vmatmul.mubr.msk.f32.gmra.mrb[24].mxu1 %vm331_vm2, %v258_v50  ;;  %6608 = vmatmul.mubr.msk.f32.gmra.mrb[64].mxu0 %vm331_vm2, %v8419_v51  ;;  %v3085_v50 = vld [vmem:[%s7881_s13 + $0x164] sm:$0xf] }
  0xf2   : > { %6050 = vmatprep.mubr.msk.f32.mxu1 %vm7775_vm1, %v7774_v2  ;;  %6610 = vmatprep.mubr.msk.f32.mxu0 %vm7775_vm1, %v7774_v2 }
  0xf5   : > { %6051 = vmatmul.mubr.msk.f32.gmra.mrb[26].mxu1 %vm331_vm2, %v259_v52  ;;  %6611 = vmatmul.mubr.msk.f32.gmra.mrb[66].mxu0 %vm331_vm2, %v8430_v54  ;;  %v3525_v52 = vld [vmem:[%s7881_s13 + $0x25] sm:$0xff] }
  0xf6   : > { %6053 = vmatprep.mubr.msk.f32.mxu1 %vm7775_vm1, %v7774_v2  ;;  %6613 = vmatprep.mubr.msk.f32.mxu0 %vm7775_vm1, %v7774_v2 }
  0xf9   : > { %6054 = vmatmul.mubr.msk.f32.gmra.mrb[28].mxu1 %vm331_vm2, %v260_v56  ;;  %6614 = vmatmul.mubr.msk.f32.gmra.mrb[68].mxu0 %vm331_vm2, %v8441_v58  ;;  %v8922_v56 = vld [vmem:[%s7881_s13 + $0xb2] sm:$0xff] }
  0xfa   : > { %6056 = vmatprep.mubr.msk.f32.mxu1 %vm7775_vm1, %v7774_v2  ;;  %6616 = vmatprep.mubr.msk.f32.mxu0 %vm7775_vm1, %v7774_v2 }
  0xfd   : > { %6057 = vmatmul.mubr.msk.f32.gmra.mrb[30].mxu1 %vm331_vm2, %v261_v60  ;;  %6617 = vmatmul.mubr.msk.f32.gmra.mrb[70].mxu0 %vm331_vm2, %v8452_v62  ;;  %v8935_v60 = vld [vmem:[%s7881_s13 + $0xba] sm:$0xff] }
  0xfe   : > { %6059 = vmatprep.mubr.msk.f32.mxu1 %vm7775_vm1, %v7774_v2  ;;  %6619 = vmatprep.mubr.msk.f32.mxu0 %vm7775_vm1, %v7774_v2 }
 0x101   : > { %6060 = vmatmul.mubr.msk.f32.gmra.mrb[32].mxu1 %vm331_vm2, %v262_v0  ;;  %6620 = vmatmul.mubr.msk.f32.gmra.mrb[72].mxu0 %vm331_vm2, %v8463_v3  ;;  %v8946_v0 = vld [vmem:[%s7881_s13 + $0xc2] sm:$0xff] }
 0x102   : > { %6062 = vmatprep.mubr.msk.f32.mxu1 %vm7775_vm1, %v7774_v2  ;;  %6622 = vmatprep.mubr.msk.f32.mxu0 %vm7775_vm1, %v7774_v2 }
 0x105   : > { %6063 = vmatmul.mubr.msk.f32.gmra.mrb[34].mxu1 %vm331_vm2, %v263_v5  ;;  %6623 = vmatmul.mubr.msk.f32.gmra.mrb[74].mxu0 %vm331_vm2, %v8474_v7  ;;  %v8957_v5 = vld [vmem:[%s7881_s13 + $0xca] sm:$0xff] }
 0x106   : > { %6065 = vmatprep.mubr.msk.f32.mxu1 %vm7775_vm1, %v7774_v2  ;;  %6625 = vmatprep.mubr.msk.f32.mxu0 %vm7775_vm1, %v7774_v2 }
 0x109   : > { %6066 = vmatmul.mubr.msk.f32.gmra.mrb[36].mxu1 %vm331_vm2, %v264_v9  ;;  %6626 = vmatmul.mubr.msk.f32.gmra.mrb[76].mxu0 %vm331_vm2, %v8485_v11  ;;  %v8968_v9 = vld [vmem:[%s7881_s13 + $0xd2] sm:$0xff] }
 0x10a   : > { %6068 = vmatprep.mubr.msk.f32.mxu1 %vm7775_vm1, %v7774_v2  ;;  %6628 = vmatprep.mubr.msk.f32.mxu0 %vm7775_vm1, %v7774_v2 }
 0x10d   : > { %6069 = vmatmul.mubr.msk.f32.gmra.mrb[38].mxu1 %vm331_vm2, %v265_v13  ;;  %6629 = vmatmul.mubr.msk.f32.gmra.mrb[78].mxu0 %vm331_vm2, %v8496_v15  ;;  %v8979_v13 = vld [vmem:[%s7881_s13 + $0xda] sm:$0xff] }
 0x10e   : > { %6071 = vmatprep.mubr.msk.f32.mxu1 %vm7775_vm1, %v7774_v2  ;;  %6631 = vmatprep.mubr.msk.f32.mxu0 %vm7775_vm1, %v7774_v2 }
 0x111   : > { %6072 = vmatmul.mubr.msk.f32.gmra.mrb[40].mxu1 %vm331_vm2, %v266_v17  ;;  %6632 = vmatmul.mubr.msk.f32.gmra.mrb[80].mxu0 %vm331_vm2, %v2605_v19  ;;  %v8990_v17 = vld [vmem:[%s7881_s13 + $0xe2] sm:$0xff] }
 0x112   : > { %6074 = vmatprep.mubr.msk.f32.mxu1 %vm7775_vm1, %v7774_v2  ;;  %6636 = vmatprep.mubr.msk.f32.mxu0 %vm7775_vm1, %v7774_v2  ;;  %v3532_v19 = vld [vmem:[%s7881_s13 + $0x5d] sm:$0xff] }
 0x115   : > { %6075 = vmatmul.mubr.msk.f32.gmra.mrb[42].mxu1 %vm331_vm2, %v267_v21  ;;  %6637 = vmatmul.mubr.msk.f32.vlgmr.msra.gmra.mrb[0].mxu0 %vm331_vm2, %v8084_v53  ;;  %v269_v53 = vld [vmem:[%s7881_s13 + $0xb8] sm:$0xff]  ;;  %v9001_v21 = vld [vmem:[%s7881_s13 + $0xea] sm:$0xff] }
 0x116   : > { %6760 = vmatpush3.msk.msra.mxu0 %vm455_vm0, %v5414_v23  ;;  %6077 = vmatprep.mubr.msk.f32.mxu1 %vm7775_vm1, %v7774_v2  ;;  %v3533_v23 = vld [vmem:[%s7881_s13 + $0x65] sm:$0xff] }
 0x117   : > { %6639 = vmatprep.mubr.msk.f32.mxu0 %vm7775_vm1, %v7774_v2  ;;  %6884 = vmatprep.subr.mxu0 %v7774_v2 }
 0x119   : > { %6078 = vmatmul.mubr.msk.f32.gmra.mrb[44].mxu1 %vm331_vm2, %v268_v25  ;;  %6640 = vmatmul.mubr.msk.f32.gmra.mrb[2].mxu0 %vm331_vm2, %v8095_v55  ;;  %v270_v55 = vld [vmem:[%s7881_s13 + $0xc0] sm:$0xff]  ;;  %v9012_v25 = vld [vmem:[%s7881_s13 + $0xf2] sm:$0xff] }
 0x11a   : > { %6080 = vmatprep.mubr.msk.f32.mxu1 %vm7775_vm1, %v7774_v2  ;;  %6642 = vmatprep.mubr.msk.f32.mxu0 %vm7775_vm1, %v7774_v2 }
 0x11d   : > { %6081 = vmatmul.mubr.msk.f32.gmra.mrb[46].mxu1 %vm331_vm2, %v269_v53  ;;  %6643 = vmatmul.mubr.msk.f32.gmra.mrb[4].mxu0 %vm331_vm2, %v8106_v57  ;;  %v271_v57 = vld [vmem:[%s7881_s13 + $0xc8] sm:$0xff] }
 0x11e   : > { %6083 = vmatprep.mubr.msk.f32.mxu1 %vm7775_vm1, %v7774_v2  ;;  %6645 = vmatprep.mubr.msk.f32.mxu0 %vm7775_vm1, %v7774_v2  ;;  %v3534_v53 = vld [vmem:[%s7881_s13 + $0x6d] sm:$0xff] }
 0x121   : > { %6084 = vmatmul.mubr.msk.f32.gmra.mrb[48].mxu1 %vm331_vm2, %v270_v55  ;;  %6646 = vmatmul.mubr.msk.f32.gmra.mrb[6].mxu0 %vm331_vm2, %v8117_v59  ;;  %v272_v59 = vld [vmem:[%s7881_s13 + $0xd0] sm:$0xff]  ;;  %v9023_v55 = vld [vmem:[%s7881_s13 + $0xfa] sm:$0xff] }
 0x122   : > { %6086 = vmatprep.mubr.msk.f32.mxu1 %vm7775_vm1, %v7774_v2  ;;  %6648 = vmatprep.mubr.msk.f32.mxu0 %vm7775_vm1, %v7774_v2 }
 0x125   : > { %6087 = vmatmul.mubr.msk.f32.gmra.mrb[50].mxu1 %vm331_vm2, %v271_v57  ;;  %6649 = vmatmul.mubr.msk.f32.gmra.mrb[8].mxu0 %vm331_vm2, %v8128_v61  ;;  %v273_v61 = vld [vmem:[%s7881_s13 + $0xd8] sm:$0xff] }
 0x126   : > { %6089 = vmatprep.mubr.msk.f32.mxu1 %vm7775_vm1, %v7774_v2  ;;  %6651 = vmatprep.mubr.msk.f32.mxu0 %vm7775_vm1, %v7774_v2  ;;  %v3535_v57 = vld [vmem:[%s7881_s13 + $0x75] sm:$0xff] }
 0x129   : > { %6090 = vmatmul.mubr.msk.f32.gmra.mrb[52].mxu1 %vm331_vm2, %v272_v59  ;;  %6652 = vmatmul.mubr.msk.f32.gmra.mrb[10].mxu0 %vm331_vm2, %v8139_v63  ;;  %v274_v63 = vld [vmem:[%s7881_s13 + $0xe0] sm:$0xff] }
 0x12a   : > { %6092 = vmatprep.mubr.msk.f32.mxu1 %vm7775_vm1, %v7774_v2  ;;  %6654 = vmatprep.mubr.msk.f32.mxu0 %vm7775_vm1, %v7774_v2  ;;  %v9034_v59 = vld [vmem:[%s7881_s13 + $0x102] sm:$0xff] }
 0x12d   : > { %6093 = vmatmul.mubr.msk.f32.gmra.mrb[54].mxu1 %vm331_vm2, %v273_v61  ;;  %6655 = vmatmul.mubr.msk.f32.gmra.mrb[12].mxu0 %vm331_vm2, %v8150_v1  ;;  %v275_v1 = vld [vmem:[%s7881_s13 + $0xe8] sm:$0xff]  ;;  %v3536_v61 = vld [vmem:[%s7881_s13 + $0x7d] sm:$0xff] }
 0x12e   : > { %6095 = vmatprep.mubr.msk.f32.mxu1 %vm7775_vm1, %v7774_v2  ;;  %6657 = vmatprep.mubr.msk.f32.mxu0 %vm7775_vm1, %v7774_v2 }
 0x131   : > { %6096 = vmatmul.mubr.msk.f32.gmra.mrb[56].mxu1 %vm331_vm2, %v274_v63  ;;  %6658 = vmatmul.mubr.msk.f32.gmra.mrb[14].mxu0 %vm331_vm2, %v8161_v4  ;;  %v276_v4 = vld [vmem:[%s7881_s13 + $0xf0] sm:$0xff] }
 0x132   : > { %6098 = vmatprep.mubr.msk.f32.mxu1 %vm7775_vm1, %v7774_v2  ;;  %6660 = vmatprep.mubr.msk.f32.mxu0 %vm7775_vm1, %v7774_v2  ;;  %v9045_v63 = vld [vmem:[%s7881_s13 + $0x10a] sm:$0xff] }
 0x135   : > { %6099 = vmatmul.mubr.msk.f32.gmra.mrb[58].mxu1 %vm331_vm2, %v275_v1  ;;  %6661 = vmatmul.mubr.msk.f32.gmra.mrb[16].mxu0 %vm331_vm2, %v8172_v6  ;;  %v277_v6 = vld [vmem:[%s7881_s13 + $0xf8] sm:$0xff]  ;;  %v3537_v1 = vld [vmem:[%s7881_s13 + $0x85] sm:$0xff] }
 0x136   : > { %6101 = vmatprep.mubr.msk.f32.mxu1 %vm7775_vm1, %v7774_v2  ;;  %6663 = vmatprep.mubr.msk.f32.mxu0 %vm7775_vm1, %v7774_v2 }
 0x139   : > { %6102 = vmatmul.mubr.msk.f32.gmra.mrb[60].mxu1 %vm331_vm2, %v276_v4  ;;  %6664 = vmatmul.mubr.msk.f32.gmra.mrb[18].mxu0 %vm331_vm2, %v8183_v8  ;;  %v278_v8 = vld [vmem:[%s7881_s13 + $0x100] sm:$0xff]  ;;  %v9056_v4 = vld [vmem:[%s7881_s13 + $0x112] sm:$0xff] }
 0x13a   : > { %6104 = vmatprep.mubr.msk.f32.mxu1 %vm7775_vm1, %v7774_v2  ;;  %6666 = vmatprep.mubr.msk.f32.mxu0 %vm7775_vm1, %v7774_v2 }
 0x13d   : > { %6105 = vmatmul.mubr.msk.f32.gmra.mrb[62].mxu1 %vm331_vm2, %v277_v6  ;;  %6667 = vmatmul.mubr.msk.f32.gmra.mrb[20].mxu0 %vm331_vm2, %v8194_v10  ;;  %v279_v10 = vld [vmem:[%s7881_s13 + $0x108] sm:$0xff] }
 0x13e   : > { %6107 = vmatprep.mubr.msk.f32.mxu1 %vm7775_vm1, %v7774_v2  ;;  %6669 = vmatprep.mubr.msk.f32.mxu0 %vm7775_vm1, %v7774_v2  ;;  %v3538_v6 = vld [vmem:[%s7881_s13 + $0x8d] sm:$0xff] }
 0x141   : > { %6108 = vmatmul.mubr.msk.f32.gmra.mrb[64].mxu1 %vm331_vm2, %v278_v8  ;;  %6670 = vmatmul.mubr.msk.f32.gmra.mrb[22].mxu0 %vm331_vm2, %v8205_v12  ;;  %v280_v12 = vld [vmem:[%s7881_s13 + $0x110] sm:$0xff]  ;;  %v9067_v8 = vld [vmem:[%s7881_s13 + $0x11a] sm:$0xff] }
 0x142   : > { %6110 = vmatprep.mubr.msk.f32.mxu1 %vm7775_vm1, %v7774_v2  ;;  %6672 = vmatprep.mubr.msk.f32.mxu0 %vm7775_vm1, %v7774_v2 }
 0x145   : > { %6111 = vmatmul.mubr.msk.f32.gmra.mrb[66].mxu1 %vm331_vm2, %v279_v10  ;;  %6673 = vmatmul.mubr.msk.f32.gmra.mrb[24].mxu0 %vm331_vm2, %v8216_v14  ;;  %v281_v14 = vld [vmem:[%s7881_s13 + $0x118] sm:$0xff] }
 0x146   : > { %6113 = vmatprep.mubr.msk.f32.mxu1 %vm7775_vm1, %v7774_v2  ;;  %6675 = vmatprep.mubr.msk.f32.mxu0 %vm7775_vm1, %v7774_v2  ;;  %v3539_v10 = vld [vmem:[%s7881_s13 + $0x95] sm:$0xff] }
 0x149   : > { %6114 = vmatmul.mubr.msk.f32.gmra.mrb[68].mxu1 %vm331_vm2, %v280_v12  ;;  %6676 = vmatmul.mubr.msk.f32.gmra.mrb[26].mxu0 %vm331_vm2, %v8227_v16  ;;  %v282_v16 = vld [vmem:[%s7881_s13 + $0x120] sm:$0xff] }
 0x14a   : > { %6116 = vmatprep.mubr.msk.f32.mxu1 %vm7775_vm1, %v7774_v2  ;;  %6678 = vmatprep.mubr.msk.f32.mxu0 %vm7775_vm1, %v7774_v2  ;;  %v9078_v12 = vld [vmem:[%s7881_s13 + $0x122] sm:$0xff] }
 0x14d   : > { %6117 = vmatmul.mubr.msk.f32.gmra.mrb[70].mxu1 %vm331_vm2, %v281_v14  ;;  %6679 = vmatmul.mubr.msk.f32.gmra.mrb[28].mxu0 %vm331_vm2, %v8238_v18  ;;  %v283_v18 = vld [vmem:[%s7881_s13 + $0x128] sm:$0xff]  ;;  %v3540_v14 = vld [vmem:[%s7881_s13 + $0x9d] sm:$0xff] }
 0x14e   : > { %6119 = vmatprep.mubr.msk.f32.mxu1 %vm7775_vm1, %v7774_v2  ;;  %6681 = vmatprep.mubr.msk.f32.mxu0 %vm7775_vm1, %v7774_v2 }
 0x151   : > { %6120 = vmatmul.mubr.msk.f32.gmra.mrb[72].mxu1 %vm331_vm2, %v282_v16  ;;  %6682 = vmatmul.mubr.msk.f32.gmra.mrb[30].mxu0 %vm331_vm2, %v8249_v20  ;;  %v284_v20 = vld [vmem:[%s7881_s13 + $0x130] sm:$0xff] }
 0x152   : > { %6122 = vmatprep.mubr.msk.f32.mxu1 %vm7775_vm1, %v7774_v2  ;;  %6684 = vmatprep.mubr.msk.f32.mxu0 %vm7775_vm1, %v7774_v2  ;;  %v9089_v16 = vld [vmem:[%s7881_s13 + $0x12a] sm:$0xff] }
 0x155   : > { %6123 = vmatmul.mubr.msk.f32.gmra.mrb[74].mxu1 %vm331_vm2, %v283_v18  ;;  %6685 = vmatmul.mubr.msk.f32.gmra.mrb[32].mxu0 %vm331_vm2, %v8260_v22  ;;  %v285_v22 = vld [vmem:[%s7881_s13 + $0x138] sm:$0xff]  ;;  %v3541_v18 = vld [vmem:[%s7881_s13 + $0xa5] sm:$0xff] }
 0x156   : > { %6125 = vmatprep.mubr.msk.f32.mxu1 %vm7775_vm1, %v7774_v2  ;;  %6687 = vmatprep.mubr.msk.f32.mxu0 %vm7775_vm1, %v7774_v2 }
 0x159   : > { %6126 = vmatmul.mubr.msk.f32.gmra.mrb[76].mxu1 %vm331_vm2, %v284_v20  ;;  %6688 = vmatmul.mubr.msk.f32.gmra.mrb[34].mxu0 %vm331_vm2, %v8271_v24  ;;  %v286_v24 = vld [vmem:[%s7881_s13 + $0x140] sm:$0xf]  ;;  %v9100_v20 = vld [vmem:[%s7881_s13 + $0x132] sm:$0xff] }
 0x15a   : > { %6128 = vmatprep.mubr.msk.f32.mxu1 %vm7775_vm1, %v7774_v2  ;;  %6690 = vmatprep.mubr.msk.f32.mxu0 %vm7775_vm1, %v7774_v2 }
 0x15d   : > { %6129 = vmatmul.mubr.msk.f32.gmra.mrb[78].mxu1 %vm331_vm2, %v285_v22  ;;  %6691 = vmatmul.mubr.msk.f32.gmra.mrb[36].mxu0 %vm331_vm2, %v8282_v26  ;;  %v1125_v26 = vld [vmem:[%s7881_s13 + $0x2] sm:$0xff]  ;;  %v3542_v22 = vld [vmem:[%s7881_s13 + $0xad] sm:$0xff] }
 0x15e   : > { %6131 = vmatprep.mubr.msk.f32.mxu1 %vm7775_vm1, %v7774_v2  ;;  %6693 = vmatprep.mubr.msk.f32.mxu0 %vm7775_vm1, %v7774_v2 }
 0x161   : > { %6132 = vmatmul.mubr.msk.f32.gmra.mrb[80].mxu1 %vm331_vm2, %v286_v24  ;;  %6694 = vmatmul.mubr.msk.f32.gmra.mrb[38].mxu0 %vm331_vm2, %v8296_v29  ;;  %v8700_v29 = vld [vmem:[%s7881_s13 + $0x12] sm:$0xff]  ;;  %v9111_v24 = vld [vmem:[%s7881_s13 + $0x13a] sm:$0xff] }
 0x162   : > { %6136 = vmatprep.mubr.msk.f32.mxu1 %vm7775_vm1, %v7774_v2  ;;  %6696 = vmatprep.mubr.msk.f32.mxu0 %vm7775_vm1, %v7774_v2 }
 0x165   : > { %6137 = vmatmul.mubr.msk.f32.vlgmr.msra.gmra.mrb[0].mxu1 %vm331_vm2, %v1125_v26  ;;  %6697 = vmatmul.mubr.msk.f32.gmra.mrb[40].mxu0 %vm331_vm2, %v8309_v31  ;;  %v8722_v31 = vld [vmem:[%s7881_s13 + $0x22] sm:$0xff]  ;;  %v3543_v26 = vld [vmem:[%s7881_s13 + $0xb5] sm:$0xff] }
 0x166   : > { %6139 = vmatprep.mubr.msk.f32.mxu1 %vm7775_vm1, %v7774_v2  ;;  %6699 = vmatprep.mubr.msk.f32.mxu0 %vm7775_vm1, %v7774_v2 }
 0x167   : > { %6260 = vmatpush3.msk.msra.mxu1 %vm455_vm0, %v5242_v27  ;;  %v1165_v27 = vld [vmem:[%s7881_s13 + $0x142] sm:$0xf] }
 0x168   : > { %7009 = vmatprep.subr.mxu1 %v7774_v2 }
 0x169   : > { %6140 = vmatmul.mubr.msk.f32.gmra.mrb[2].mxu1 %vm331_vm2, %v1126_v28  ;;  %6700 = vmatmul.mubr.msk.f32.gmra.mrb[42].mxu0 %vm331_vm2, %v8320_v33  ;;  %v8744_v33 = vld [vmem:[%s7881_s13 + $0x32] sm:$0xff]  ;;  %v3544_v28 = vld [vmem:[%s7881_s13 + $0xbd] sm:$0xff] }
 0x16a   : > { %6142 = vmatprep.mubr.msk.f32.mxu1 %vm7775_vm1, %v7774_v2  ;;  %6702 = vmatprep.mubr.msk.f32.mxu0 %vm7775_vm1, %v7774_v2 }
 0x16d   : > { %6143 = vmatmul.mubr.msk.f32.gmra.mrb[4].mxu1 %vm331_vm2, %v8700_v29  ;;  %6703 = vmatmul.mubr.msk.f32.gmra.mrb[44].mxu0 %vm331_vm2, %v8331_v35  ;;  %v8766_v35 = vld [vmem:[%s7881_s13 + $0x42] sm:$0xff] }
 0x16e   : > { %6145 = vmatprep.mubr.msk.f32.mxu1 %vm7775_vm1, %v7774_v2  ;;  %6705 = vmatprep.mubr.msk.f32.mxu0 %vm7775_vm1, %v7774_v2 }
 0x171   : > { %6146 = vmatmul.mubr.msk.f32.gmra.mrb[6].mxu1 %vm331_vm2, %v8711_v30  ;;  %6706 = vmatmul.mubr.msk.f32.gmra.mrb[46].mxu0 %vm331_vm2, %v8342_v37  ;;  %v8788_v37 = vld [vmem:[%s7881_s13 + $0x52] sm:$0xff] }
 0x172   : > { %6148 = vmatprep.mubr.msk.f32.mxu1 %vm7775_vm1, %v7774_v2  ;;  %6708 = vmatprep.mubr.msk.f32.mxu0 %vm7775_vm1, %v7774_v2 }
 0x175   : > { %6149 = vmatmul.mubr.msk.f32.gmra.mrb[8].mxu1 %vm331_vm2, %v8722_v31  ;;  %6709 = vmatmul.mubr.msk.f32.gmra.mrb[48].mxu0 %vm331_vm2, %v8353_v39  ;;  %v8810_v39 = vld [vmem:[%s7881_s13 + $0x62] sm:$0xff] }
 0x176   : > { %6151 = vmatprep.mubr.msk.f32.mxu1 %vm7775_vm1, %v7774_v2  ;;  %6711 = vmatprep.mubr.msk.f32.mxu0 %vm7775_vm1, %v7774_v2 }
 0x179   : > { %6152 = vmatmul.mubr.msk.f32.gmra.mrb[10].mxu1 %vm331_vm2, %v8733_v32  ;;  %6712 = vmatmul.mubr.msk.f32.gmra.mrb[50].mxu0 %vm331_vm2, %v8364_v41  ;;  %v8832_v41 = vld [vmem:[%s7881_s13 + $0x72] sm:$0xff] }
 0x17a   : > { %6154 = vmatprep.mubr.msk.f32.mxu1 %vm7775_vm1, %v7774_v2  ;;  %6714 = vmatprep.mubr.msk.f32.mxu0 %vm7775_vm1, %v7774_v2 }
 0x17d   : > { %6155 = vmatmul.mubr.msk.f32.gmra.mrb[12].mxu1 %vm331_vm2, %v8744_v33  ;;  %6715 = vmatmul.mubr.msk.f32.gmra.mrb[52].mxu0 %vm331_vm2, %v8375_v43  ;;  %v8854_v43 = vld [vmem:[%s7881_s13 + $0x82] sm:$0xff] }
 0x17e   : > { %6157 = vmatprep.mubr.msk.f32.mxu1 %vm7775_vm1, %v7774_v2  ;;  %6717 = vmatprep.mubr.msk.f32.mxu0 %vm7775_vm1, %v7774_v2 }
 0x181   : > { %6158 = vmatmul.mubr.msk.f32.gmra.mrb[14].mxu1 %vm331_vm2, %v8755_v34  ;;  %6718 = vmatmul.mubr.msk.f32.gmra.mrb[54].mxu0 %vm331_vm2, %v8386_v45  ;;  %v8876_v45 = vld [vmem:[%s7881_s13 + $0x92] sm:$0xff] }
 0x182   : > { %6160 = vmatprep.mubr.msk.f32.mxu1 %vm7775_vm1, %v7774_v2  ;;  %6720 = vmatprep.mubr.msk.f32.mxu0 %vm7775_vm1, %v7774_v2 }
 0x185   : > { %6161 = vmatmul.mubr.msk.f32.gmra.mrb[16].mxu1 %vm331_vm2, %v8766_v35  ;;  %6721 = vmatmul.mubr.msk.f32.gmra.mrb[56].mxu0 %vm331_vm2, %v8397_v47  ;;  %v8887_v47 = vld [vmem:[%s7881_s13 + $0x9a] sm:$0xff] }
 0x186   : > { %6163 = vmatprep.mubr.msk.f32.mxu1 %vm7775_vm1, %v7774_v2  ;;  %6723 = vmatprep.mubr.msk.f32.mxu0 %vm7775_vm1, %v7774_v2 }
 0x189   : > { %6164 = vmatmul.mubr.msk.f32.gmra.mrb[18].mxu1 %vm331_vm2, %v8777_v36  ;;  %6724 = vmatmul.mubr.msk.f32.gmra.mrb[58].mxu0 %vm331_vm2, %v8408_v49  ;;  %v8898_v49 = vld [vmem:[%s7881_s13 + $0xa2] sm:$0xff] }
 0x18a   : > { %6166 = vmatprep.mubr.msk.f32.mxu1 %vm7775_vm1, %v7774_v2  ;;  %6726 = vmatprep.mubr.msk.f32.mxu0 %vm7775_vm1, %v7774_v2 }
 0x18d   : > { %6167 = vmatmul.mubr.msk.f32.gmra.mrb[20].mxu1 %vm331_vm2, %v8788_v37  ;;  %6727 = vmatmul.mubr.msk.f32.gmra.mrb[60].mxu0 %vm331_vm2, %v8419_v51  ;;  %v8909_v51 = vld [vmem:[%s7881_s13 + $0xaa] sm:$0xff] }
 0x18e   : > { %6169 = vmatprep.mubr.msk.f32.mxu1 %vm7775_vm1, %v7774_v2  ;;  %6729 = vmatprep.mubr.msk.f32.mxu0 %vm7775_vm1, %v7774_v2 }
 0x191   : > { %6170 = vmatmul.mubr.msk.f32.gmra.mrb[22].mxu1 %vm331_vm2, %v8799_v38  ;;  %6730 = vmatmul.mubr.msk.f32.gmra.mrb[62].mxu0 %vm331_vm2, %v8430_v54  ;;  %v5457_v54 = vld [vmem:[%s9941_s1 + $0x20] sm:$0xf] }
 0x192   : > { %6172 = vmatprep.mubr.msk.f32.mxu1 %vm7775_vm1, %v7774_v2  ;;  %6732 = vmatprep.mubr.msk.f32.mxu0 %vm7775_vm1, %v7774_v2 }
 0x195   : > { %6173 = vmatmul.mubr.msk.f32.gmra.mrb[24].mxu1 %vm331_vm2, %v8810_v39  ;;  %6733 = vmatmul.mubr.msk.f32.gmra.mrb[64].mxu0 %vm331_vm2, %v8441_v58  ;;  %v3526_v58 = vld [vmem:[%s7881_s13 + $0x2d] sm:$0xff] }
 0x196   : > { %6175 = vmatprep.mubr.msk.f32.mxu1 %vm7775_vm1, %v7774_v2  ;;  %6735 = vmatprep.mubr.msk.f32.mxu0 %vm7775_vm1, %v7774_v2 }
 0x199   : > { %6176 = vmatmul.mubr.msk.f32.gmra.mrb[26].mxu1 %vm331_vm2, %v8821_v40  ;;  %6736 = vmatmul.mubr.msk.f32.gmra.mrb[66].mxu0 %vm331_vm2, %v8452_v62  ;;  %v3527_v62 = vld [vmem:[%s7881_s13 + $0x35] sm:$0xff] }
 0x19a   : > { %6178 = vmatprep.mubr.msk.f32.mxu1 %vm7775_vm1, %v7774_v2  ;;  %6738 = vmatprep.mubr.msk.f32.mxu0 %vm7775_vm1, %v7774_v2 }
 0x19d   : > { %6179 = vmatmul.mubr.msk.f32.gmra.mrb[28].mxu1 %vm331_vm2, %v8832_v41  ;;  %6739 = vmatmul.mubr.msk.f32.gmra.mrb[68].mxu0 %vm331_vm2, %v8463_v3  ;;  %v3528_v3 = vld [vmem:[%s7881_s13 + $0x3d] sm:$0xff] }
 0x19e   : > { %6181 = vmatprep.mubr.msk.f32.mxu1 %vm7775_vm1, %v7774_v2  ;;  %6741 = vmatprep.mubr.msk.f32.mxu0 %vm7775_vm1, %v7774_v2 }
 0x1a1   : > { %6182 = vmatmul.mubr.msk.f32.gmra.mrb[30].mxu1 %vm331_vm2, %v8843_v42  ;;  %6742 = vmatmul.mubr.msk.f32.gmra.mrb[70].mxu0 %vm331_vm2, %v8474_v7  ;;  %v3529_v7 = vld [vmem:[%s7881_s13 + $0x45] sm:$0xff] }
 0x1a2   : > { %6184 = vmatprep.mubr.msk.f32.mxu1 %vm7775_vm1, %v7774_v2  ;;  %6744 = vmatprep.mubr.msk.f32.mxu0 %vm7775_vm1, %v7774_v2 }
 0x1a5   : > { %6185 = vmatmul.mubr.msk.f32.gmra.mrb[32].mxu1 %vm331_vm2, %v8854_v43  ;;  %6745 = vmatmul.mubr.msk.f32.gmra.mrb[72].mxu0 %vm331_vm2, %v8485_v11  ;;  %v3530_v11 = vld [vmem:[%s7881_s13 + $0x4d] sm:$0xff] }
 0x1a6   : > { %6187 = vmatprep.mubr.msk.f32.mxu1 %vm7775_vm1, %v7774_v2  ;;  %6747 = vmatprep.mubr.msk.f32.mxu0 %vm7775_vm1, %v7774_v2 }
 0x1a9   : > { %6188 = vmatmul.mubr.msk.f32.gmra.mrb[34].mxu1 %vm331_vm2, %v8865_v44  ;;  %6748 = vmatmul.mubr.msk.f32.gmra.mrb[74].mxu0 %vm331_vm2, %v8496_v15  ;;  %v3531_v15 = vld [vmem:[%s7881_s13 + $0x55] sm:$0xff] }
 0x1aa   : > { %6190 = vmatprep.mubr.msk.f32.mxu1 %vm7775_vm1, %v7774_v2  ;;  %6750 = vmatprep.mubr.msk.f32.mxu0 %vm7775_vm1, %v7774_v2 }
 0x1ad   : > { %6191 = vmatmul.mubr.msk.f32.gmra.mrb[36].mxu1 %vm331_vm2, %v8876_v45  ;;  %6751 = vmatmul.mubr.msk.f32.gmra.mrb[76].mxu0 %vm331_vm2, %v3083_v46  ;;  %v3545_v46 = vld [vmem:[%s7881_s13 + $0xc5] sm:$0xff] }
 0x1ae   : > { %6193 = vmatprep.mubr.msk.f32.mxu1 %vm7775_vm1, %v7774_v2  ;;  %6753 = vmatprep.mubr.msk.f32.mxu0 %vm7775_vm1, %v7774_v2 }
 0x1b1   : > { %6194 = vmatmul.mubr.msk.f32.gmra.mrb[38].mxu1 %vm331_vm2, %v8887_v47  ;;  %6754 = vmatmul.mubr.msk.f32.gmra.mrb[78].mxu0 %vm331_vm2, %v3084_v48  ;;  %v3546_v48 = vld [vmem:[%s7881_s13 + $0xcd] sm:$0xff] }
 0x1b2   : > { %6196 = vmatprep.mubr.msk.f32.mxu1 %vm7775_vm1, %v7774_v2  ;;  %6756 = vmatprep.mubr.msk.f32.mxu0 %vm7775_vm1, %v7774_v2 }
 0x1b5   : > { %6197 = vmatmul.mubr.msk.f32.gmra.mrb[40].mxu1 %vm331_vm2, %v8898_v49  ;;  %6757 = vmatmul.mubr.msk.f32.gmra.mrb[80].mxu0 %vm331_vm2, %v3085_v50  ;;  %v7677_v50 = vld [vmem:[%s9941_s1 + $0x10] sm:$0xf] }
 0x1b6   : > { %6199 = vmatprep.mubr.msk.f32.mxu1 %vm7775_vm1, %v7774_v2  ;;  %6761 = vmatprep.mubr.msk.f32.mxu0 %vm7775_vm1, %v7774_v2 }
 0x1b9   : > { %6200 = vmatmul.mubr.msk.f32.gmra.mrb[42].mxu1 %vm331_vm2, %v8909_v51  ;;  %6762 = vmatmul.mubr.msk.f32.vlgmr.msra.gmra.mrb[0].mxu0 %vm331_vm2, %v3525_v52  ;;  %v7776_v52 = vmov 0  }
 0x1ba   : > { %6885 = vmatpush3.msk.msra.mxu0 %vm455_vm0, %v5457_v54  ;;  %6202 = vmatprep.mubr.msk.f32.mxu1 %vm7775_vm1, %v7774_v2  ;;  %v3556_v54 = vld [vmem:[%s7881_s13 + $0x11d] sm:$0xff] }
 0x1bb   : > { %6764 = vmatprep.mubr.msk.f32.mxu0 %vm7775_vm1, %v7774_v2  ;;  %7675 = vset.pattern.permute.xlu0 %v7776_v52 }
 0x1bc   : > { %7676 = vset.pattern.permute.xlu1 %v7776_v52  ;;  %v4012_v52 = vld [vmem:[%s7881_s13 + $0x5e] sm:$0xff] }
 0x1bd   : > { %6203 = vmatmul.mubr.msk.f32.gmra.mrb[44].mxu1 %vm331_vm2, %v8922_v56  ;;  %6765 = vmatmul.mubr.msk.f32.gmra.mrb[2].mxu0 %vm331_vm2, %v3526_v58  ;;  %v3557_v58 = vld [vmem:[%s7881_s13 + $0x125] sm:$0xff] }
 0x1be   : > { %6205 = vmatprep.mubr.msk.f32.mxu1 %vm7775_vm1, %v7774_v2  ;;  %6767 = vmatprep.mubr.msk.f32.mxu0 %vm7775_vm1, %v7774_v2 }
 0x1c1   : > { %6206 = vmatmul.mubr.msk.f32.gmra.mrb[46].mxu1 %vm331_vm2, %v8935_v60  ;;  %6768 = vmatmul.mubr.msk.f32.gmra.mrb[4].mxu0 %vm331_vm2, %v3527_v62  ;;  %v4530_v62 = vld [vmem:[%s9942_s2 + $0x20] sm:$0xff] }
 0x1c2   : > { %6208 = vmatprep.mubr.msk.f32.mxu1 %vm7775_vm1, %v7774_v2  ;;  %6770 = vmatprep.mubr.msk.f32.mxu0 %vm7775_vm1, %v7774_v2 }
 0x1c5   : > { %6209 = vmatmul.mubr.msk.f32.gmra.mrb[48].mxu1 %vm331_vm2, %v8946_v0  ;;  %6771 = vmatmul.mubr.msk.f32.gmra.mrb[6].mxu0 %vm331_vm2, %v3528_v3  ;;  %v3558_v3 = vld [vmem:[%s7881_s13 + $0x12d] sm:$0xff] }
 0x1c6   : > { %6211 = vmatprep.mubr.msk.f32.mxu1 %vm7775_vm1, %v7774_v2  ;;  %6773 = vmatprep.mubr.msk.f32.mxu0 %vm7775_vm1, %v7774_v2 }
 0x1c9   : > { %6212 = vmatmul.mubr.msk.f32.gmra.mrb[50].mxu1 %vm331_vm2, %v8957_v5  ;;  %6774 = vmatmul.mubr.msk.f32.gmra.mrb[8].mxu0 %vm331_vm2, %v3529_v7  ;;  %v4532_v7 = vld [vmem:[%s9942_s2 + $0x30] sm:$0xff] }
 0x1ca   : > { %6214 = vmatprep.mubr.msk.f32.mxu1 %vm7775_vm1, %v7774_v2  ;;  %6776 = vmatprep.mubr.msk.f32.mxu0 %vm7775_vm1, %v7774_v2 }
 0x1cd   : > { %6215 = vmatmul.mubr.msk.f32.gmra.mrb[52].mxu1 %vm331_vm2, %v8968_v9  ;;  %6777 = vmatmul.mubr.msk.f32.gmra.mrb[10].mxu0 %vm331_vm2, %v3530_v11  ;;  %v3559_v11 = vld [vmem:[%s7881_s13 + $0x135] sm:$0xff] }
 0x1ce   : > { %6217 = vmatprep.mubr.msk.f32.mxu1 %vm7775_vm1, %v7774_v2  ;;  %6779 = vmatprep.mubr.msk.f32.mxu0 %vm7775_vm1, %v7774_v2 }
 0x1d1   : > { %6218 = vmatmul.mubr.msk.f32.gmra.mrb[54].mxu1 %vm331_vm2, %v8979_v13  ;;  %6780 = vmatmul.mubr.msk.f32.gmra.mrb[12].mxu0 %vm331_vm2, %v3531_v15  ;;  %v4534_v15 = vld [vmem:[%s9942_s2 + $0x40] sm:$0xff] }
 0x1d2   : > { %6220 = vmatprep.mubr.msk.f32.mxu1 %vm7775_vm1, %v7774_v2  ;;  %6782 = vmatprep.mubr.msk.f32.mxu0 %vm7775_vm1, %v7774_v2 }
 0x1d5   : > { %6221 = vmatmul.mubr.msk.f32.gmra.mrb[56].mxu1 %vm331_vm2, %v8990_v17  ;;  %6783 = vmatmul.mubr.msk.f32.gmra.mrb[14].mxu0 %vm331_vm2, %v3532_v19  ;;  %v3560_v19 = vld [vmem:[%s7881_s13 + $0x13d] sm:$0xff] }
 0x1d6   : > { %6223 = vmatprep.mubr.msk.f32.mxu1 %vm7775_vm1, %v7774_v2  ;;  %6785 = vmatprep.mubr.msk.f32.mxu0 %vm7775_vm1, %v7774_v2 }
 0x1d9   : > { %6224 = vmatmul.mubr.msk.f32.gmra.mrb[58].mxu1 %vm331_vm2, %v9001_v21  ;;  %6786 = vmatmul.mubr.msk.f32.gmra.mrb[16].mxu0 %vm331_vm2, %v3533_v23  ;;  %v4536_v23 = vld [vmem:[%s9942_s2 + $0x50] sm:$0xff] }
 0x1da   : > { %6226 = vmatprep.mubr.msk.f32.mxu1 %vm7775_vm1, %v7774_v2  ;;  %6788 = vmatprep.mubr.msk.f32.mxu0 %vm7775_vm1, %v7774_v2 }
 0x1dd   : > { %6227 = vmatmul.mubr.msk.f32.gmra.mrb[60].mxu1 %vm331_vm2, %v9012_v25  ;;  %6789 = vmatmul.mubr.msk.f32.gmra.mrb[18].mxu0 %vm331_vm2, %v3534_v53  ;;  %v3561_v53 = vld [vmem:[%s7881_s13 + $0x145] sm:$0xff] }
 0x1de   : > { %6229 = vmatprep.mubr.msk.f32.mxu1 %vm7775_vm1, %v7774_v2  ;;  %6791 = vmatprep.mubr.msk.f32.mxu0 %vm7775_vm1, %v7774_v2 }
 0x1e1   : > { %6230 = vmatmul.mubr.msk.f32.gmra.mrb[62].mxu1 %vm331_vm2, %v9023_v55  ;;  %6792 = vmatmul.mubr.msk.f32.gmra.mrb[20].mxu0 %vm331_vm2, %v3535_v57  ;;  %v4538_v57 = vld [vmem:[%s9942_s2 + $0x60] sm:$0xff] }
 0x1e2   : > { %6232 = vmatprep.mubr.msk.f32.mxu1 %vm7775_vm1, %v7774_v2  ;;  %6794 = vmatprep.mubr.msk.f32.mxu0 %vm7775_vm1, %v7774_v2 }
 0x1e5   : > { %6233 = vmatmul.mubr.msk.f32.gmra.mrb[64].mxu1 %vm331_vm2, %v9034_v59  ;;  %6795 = vmatmul.mubr.msk.f32.gmra.mrb[22].mxu0 %vm331_vm2, %v3536_v61  ;;  %v3562_v61 = vld [vmem:[%s7881_s13 + $0x14d] sm:$0xff] }
 0x1e6   : > { %6235 = vmatprep.mubr.msk.f32.mxu1 %vm7775_vm1, %v7774_v2  ;;  %6797 = vmatprep.mubr.msk.f32.mxu0 %vm7775_vm1, %v7774_v2 }
 0x1e9   : > { %6236 = vmatmul.mubr.msk.f32.gmra.mrb[66].mxu1 %vm331_vm2, %v9045_v63  ;;  %6798 = vmatmul.mubr.msk.f32.gmra.mrb[24].mxu0 %vm331_vm2, %v3537_v1  ;;  %v4540_v1 = vld [vmem:[%s9942_s2 + $0x70] sm:$0xff] }
 0x1ea   : > { %6238 = vmatprep.mubr.msk.f32.mxu1 %vm7775_vm1, %v7774_v2  ;;  %6800 = vmatprep.mubr.msk.f32.mxu0 %vm7775_vm1, %v7774_v2 }
 0x1ed   : > { %6239 = vmatmul.mubr.msk.f32.gmra.mrb[68].mxu1 %vm331_vm2, %v9056_v4  ;;  %6801 = vmatmul.mubr.msk.f32.gmra.mrb[26].mxu0 %vm331_vm2, %v3538_v6  ;;  %v3563_v6 = vld [vmem:[%s7881_s13 + $0x155] sm:$0xff] }
 0x1ee   : > { %6241 = vmatprep.mubr.msk.f32.mxu1 %vm7775_vm1, %v7774_v2  ;;  %6803 = vmatprep.mubr.msk.f32.mxu0 %vm7775_vm1, %v7774_v2 }
 0x1f1   : > { %6242 = vmatmul.mubr.msk.f32.gmra.mrb[70].mxu1 %vm331_vm2, %v9067_v8  ;;  %6804 = vmatmul.mubr.msk.f32.gmra.mrb[28].mxu0 %vm331_vm2, %v3539_v10  ;;  %v4542_v10 = vld [vmem:[%s9942_s2 + $0x80] sm:$0xff] }
 0x1f2   : > { %6244 = vmatprep.mubr.msk.f32.mxu1 %vm7775_vm1, %v7774_v2  ;;  %6806 = vmatprep.mubr.msk.f32.mxu0 %vm7775_vm1, %v7774_v2 }
 0x1f5   : > { %6245 = vmatmul.mubr.msk.f32.gmra.mrb[72].mxu1 %vm331_vm2, %v9078_v12  ;;  %6807 = vmatmul.mubr.msk.f32.gmra.mrb[30].mxu0 %vm331_vm2, %v3540_v14  ;;  %v3564_v14 = vld [vmem:[%s7881_s13 + $0x15d] sm:$0xff] }
 0x1f6   : > { %6247 = vmatprep.mubr.msk.f32.mxu1 %vm7775_vm1, %v7774_v2  ;;  %6809 = vmatprep.mubr.msk.f32.mxu0 %vm7775_vm1, %v7774_v2 }
 0x1f9   : > { %6248 = vmatmul.mubr.msk.f32.gmra.mrb[74].mxu1 %vm331_vm2, %v9089_v16  ;;  %6810 = vmatmul.mubr.msk.f32.gmra.mrb[32].mxu0 %vm331_vm2, %v3541_v18  ;;  %v4544_v18 = vld [vmem:[%s9942_s2 + $0x90] sm:$0xff] }
 0x1fa   : > { %6250 = vmatprep.mubr.msk.f32.mxu1 %vm7775_vm1, %v7774_v2  ;;  %6812 = vmatprep.mubr.msk.f32.mxu0 %vm7775_vm1, %v7774_v2 }
 0x1fd   : > { %6251 = vmatmul.mubr.msk.f32.gmra.mrb[76].mxu1 %vm331_vm2, %v9100_v20  ;;  %6813 = vmatmul.mubr.msk.f32.gmra.mrb[34].mxu0 %vm331_vm2, %v3542_v22  ;;  %v3565_v22 = vld [vmem:[%s7881_s13 + $0x165] sm:$0xf] }
 0x1fe   : > { %6253 = vmatprep.mubr.msk.f32.mxu1 %vm7775_vm1, %v7774_v2  ;;  %6815 = vmatprep.mubr.msk.f32.mxu0 %vm7775_vm1, %v7774_v2 }
 0x201   : > { %6254 = vmatmul.mubr.msk.f32.gmra.mrb[78].mxu1 %vm331_vm2, %v9111_v24  ;;  %6816 = vmatmul.mubr.msk.f32.gmra.mrb[36].mxu0 %vm331_vm2, %v3543_v26  ;;  %v4546_v26 = vld [vmem:[%s9942_s2 + $0xa0] sm:$0xff] }
 0x202   : > { %6256 = vmatprep.mubr.msk.f32.mxu1 %vm7775_vm1, %v7774_v2  ;;  %6818 = vmatprep.mubr.msk.f32.mxu0 %vm7775_vm1, %v7774_v2 }
 0x205   : > { %6257 = vmatmul.mubr.msk.f32.gmra.mrb[80].mxu1 %vm331_vm2, %v1165_v27  ;;  %6819 = vmatmul.mubr.msk.f32.gmra.mrb[38].mxu0 %vm331_vm2, %v3544_v28  ;;  %v4005_v27 = vld [vmem:[%s7881_s13 + $0x26] sm:$0xff]  ;;  %v4548_v28 = vld [vmem:[%s9942_s2 + $0xb0] sm:$0xff] }
 0x206   : > { %6261 = vmatprep.mubr.msk.f32.mxu1 %vm7775_vm1, %v7774_v2  ;;  %6821 = vmatprep.mubr.msk.f32.mxu0 %vm7775_vm1, %v7774_v2 }
 0x209   : > { %6262 = vmatmul.mubr.msk.f32.vlgmr.msra.gmra.mrb[0].mxu1 %vm331_vm2, %v8700_v29  ;;  %6822 = vmatmul.mubr.msk.f32.gmra.mrb[40].mxu0 %vm331_vm2, %v3545_v46  ;;  %v3547_v29 = vld [vmem:[%s7881_s13 + $0xd5] sm:$0xff] }
 0x20a   : > { %6264 = vmatprep.mubr.msk.f32.mxu1 %vm7775_vm1, %v7774_v2  ;;  %6824 = vmatprep.mubr.msk.f32.mxu0 %vm7775_vm1, %v7774_v2  ;;  %v4006_v46 = vld [vmem:[%s7881_s13 + $0x2e] sm:$0xff] }
 0x20b   : > { %7010 = vmatpush3.msk.msra.mxu1 %vm455_vm0, %v7677_v50  ;;  %v4007_v50 = vld [vmem:[%s7881_s13 + $0x36] sm:$0xff] }
 0x20d   : > { %6265 = vmatmul.mubr.msk.f32.gmra.mrb[2].mxu1 %vm331_vm2, %v8711_v30  ;;  %6825 = vmatmul.mubr.msk.f32.gmra.mrb[42].mxu0 %vm331_vm2, %v3546_v48  ;;  %v3548_v30 = vld [vmem:[%s7881_s13 + $0xdd] sm:$0xff] }
 0x20e   : > { %6267 = vmatprep.mubr.msk.f32.mxu1 %vm7775_vm1, %v7774_v2  ;;  %6827 = vmatprep.mubr.msk.f32.mxu0 %vm7775_vm1, %v7774_v2  ;;  %v4550_v48 = vld [vmem:[%s9942_s2 + $0xc0] sm:$0xff] }
 0x211   : > { %6268 = vmatmul.mubr.msk.f32.gmra.mrb[4].mxu1 %vm331_vm2, %v8722_v31  ;;  %6828 = vmatmul.mubr.msk.f32.gmra.mrb[44].mxu0 %vm331_vm2, %v3547_v29  ;;  %v3549_v31 = vld [vmem:[%s7881_s13 + $0xe5] sm:$0xff]  ;;  %v4552_v29 = vld [vmem:[%s9942_s2 + $0xd0] sm:$0xff] }
 0x212   : > { %6270 = vmatprep.mubr.msk.f32.mxu1 %vm7775_vm1, %v7774_v2  ;;  %6830 = vmatprep.mubr.msk.f32.mxu0 %vm7775_vm1, %v7774_v2 }
 0x215   : > { %6271 = vmatmul.mubr.msk.f32.gmra.mrb[6].mxu1 %vm331_vm2, %v8733_v32  ;;  %6831 = vmatmul.mubr.msk.f32.gmra.mrb[46].mxu0 %vm331_vm2, %v3548_v30  ;;  %v3550_v32 = vld [vmem:[%s7881_s13 + $0xed] sm:$0xff]  ;;  %v4008_v30 = vld [vmem:[%s7881_s13 + $0x3e] sm:$0xff] }
 0x216   : > { %6273 = vmatprep.mubr.msk.f32.mxu1 %vm7775_vm1, %v7774_v2  ;;  %6833 = vmatprep.mubr.msk.f32.mxu0 %vm7775_vm1, %v7774_v2 }
 0x219   : > { %6274 = vmatmul.mubr.msk.f32.gmra.mrb[8].mxu1 %vm331_vm2, %v8744_v33  ;;  %6834 = vmatmul.mubr.msk.f32.gmra.mrb[48].mxu0 %vm331_vm2, %v3549_v31  ;;  %v3551_v33 = vld [vmem:[%s7881_s13 + $0xf5] sm:$0xff]  ;;  %v4554_v31 = vld [vmem:[%s9942_s2 + $0xe0] sm:$0xff] }
 0x21a   : > { %6276 = vmatprep.mubr.msk.f32.mxu1 %vm7775_vm1, %v7774_v2  ;;  %6836 = vmatprep.mubr.msk.f32.mxu0 %vm7775_vm1, %v7774_v2 }
 0x21d   : > { %6277 = vmatmul.mubr.msk.f32.gmra.mrb[10].mxu1 %vm331_vm2, %v8755_v34  ;;  %6837 = vmatmul.mubr.msk.f32.gmra.mrb[50].mxu0 %vm331_vm2, %v3550_v32  ;;  %v3552_v34 = vld [vmem:[%s7881_s13 + $0xfd] sm:$0xff]  ;;  %v4009_v32 = vld [vmem:[%s7881_s13 + $0x46] sm:$0xff] }
 0x21e   : > { %6279 = vmatprep.mubr.msk.f32.mxu1 %vm7775_vm1, %v7774_v2  ;;  %6839 = vmatprep.mubr.msk.f32.mxu0 %vm7775_vm1, %v7774_v2 }
 0x221   : > { %6280 = vmatmul.mubr.msk.f32.gmra.mrb[12].mxu1 %vm331_vm2, %v8766_v35  ;;  %6840 = vmatmul.mubr.msk.f32.gmra.mrb[52].mxu0 %vm331_vm2, %v3551_v33  ;;  %v3553_v35 = vld [vmem:[%s7881_s13 + $0x105] sm:$0xff]  ;;  %v4556_v33 = vld [vmem:[%s9942_s2 + $0xf0] sm:$0xff] }
 0x222   : > { %6282 = vmatprep.mubr.msk.f32.mxu1 %vm7775_vm1, %v7774_v2  ;;  %6842 = vmatprep.mubr.msk.f32.mxu0 %vm7775_vm1, %v7774_v2 }
 0x225   : > { %6283 = vmatmul.mubr.msk.f32.gmra.mrb[14].mxu1 %vm331_vm2, %v8777_v36  ;;  %6843 = vmatmul.mubr.msk.f32.gmra.mrb[54].mxu0 %vm331_vm2, %v3552_v34  ;;  %v3554_v36 = vld [vmem:[%s7881_s13 + $0x10d] sm:$0xff] }
 0x226   : > { %6285 = vmatprep.mubr.msk.f32.mxu1 %vm7775_vm1, %v7774_v2  ;;  %6845 = vmatprep.mubr.msk.f32.mxu0 %vm7775_vm1, %v7774_v2  ;;  %v4010_v34 = vld [vmem:[%s7881_s13 + $0x4e] sm:$0xff] }
 0x229   : > { %6286 = vmatmul.mubr.msk.f32.gmra.mrb[16].mxu1 %vm331_vm2, %v8788_v37  ;;  %6846 = vmatmul.mubr.msk.f32.gmra.mrb[56].mxu0 %vm331_vm2, %v3553_v35  ;;  %v3555_v37 = vld [vmem:[%s7881_s13 + $0x115] sm:$0xff]  ;;  %v4558_v35 = vld [vmem:[%s9942_s2 + $0x100] sm:$0xff] }
 0x22a   : > { %6288 = vmatprep.mubr.msk.f32.mxu1 %vm7775_vm1, %v7774_v2  ;;  %6848 = vmatprep.mubr.msk.f32.mxu0 %vm7775_vm1, %v7774_v2 }
 0x22d   : > { %6289 = vmatmul.mubr.msk.f32.gmra.mrb[18].mxu1 %vm331_vm2, %v8799_v38  ;;  %6849 = vmatmul.mubr.msk.f32.gmra.mrb[58].mxu0 %vm331_vm2, %v3554_v36  ;;  %v4526_v38 = vld [vmem:[%s9942_s2] sm:$0xff]  ;;  %v4011_v36 = vld [vmem:[%s7881_s13 + $0x56] sm:$0xff] }
 0x22e   : > { %6291 = vmatprep.mubr.msk.f32.mxu1 %vm7775_vm1, %v7774_v2  ;;  %6851 = vmatprep.mubr.msk.f32.mxu0 %vm7775_vm1, %v7774_v2 }
 0x22f   : > { %4569 = vperm.xlu0 %7675, %v4526_v38   ;;  %v4562_v38 = vld [vmem:[%s9942_s2 + $0x120] sm:$0xff] }
 0x231   : > { %6292 = vmatmul.mubr.msk.f32.gmra.mrb[20].mxu1 %vm331_vm2, %v8810_v39  ;;  %6852 = vmatmul.mubr.msk.f32.gmra.mrb[60].mxu0 %vm331_vm2, %v3555_v37  ;;  %v4527_v39 = vld [vmem:[%s9942_s2 + $0x8] sm:$0xff]  ;;  %v4560_v37 = vld [vmem:[%s9942_s2 + $0x110] sm:$0xff] }
 0x232   : > { %6294 = vmatprep.mubr.msk.f32.mxu1 %vm7775_vm1, %v7774_v2  ;;  %6854 = vmatprep.mubr.msk.f32.mxu0 %vm7775_vm1, %v7774_v2 }
 0x233   : > { %4574 = vperm.xlu0 %7675, %v4527_v39   ;;  %v4564_v39 = vld [vmem:[%s9942_s2 + $0x130] sm:$0xff] }
 0x235   : > { %6295 = vmatmul.mubr.msk.f32.gmra.mrb[22].mxu1 %vm331_vm2, %v8821_v40  ;;  %6855 = vmatmul.mubr.msk.f32.gmra.mrb[62].mxu0 %vm331_vm2, %v3556_v54  ;;  %v4528_v40 = vld [vmem:[%s9942_s2 + $0x10] sm:$0xff]  ;;  %v4013_v54 = vld [vmem:[%s7881_s13 + $0x66] sm:$0xff] }
 0x236   : > { %6297 = vmatprep.mubr.msk.f32.mxu1 %vm7775_vm1, %v7774_v2  ;;  %6857 = vmatprep.mubr.msk.f32.mxu0 %vm7775_vm1, %v7774_v2 }
 0x237   : > { %4579 = vperm.xlu1 %7676, %v4528_v40   ;;  %4589 = vperm.xlu0 %7675, %v4530_v62   ;;  %v4566_v40 = vld [vmem:[%s9942_s2 + $0x140] sm:$0xf]  ;;  %v4015_v62 = vld [vmem:[%s7881_s13 + $0x76] sm:$0xff] }
 0x239   : > { %6298 = vmatmul.mubr.msk.f32.gmra.mrb[24].mxu1 %vm331_vm2, %v8832_v41  ;;  %6858 = vmatmul.mubr.msk.f32.gmra.mrb[64].mxu0 %vm331_vm2, %v3557_v58  ;;  %v4529_v41 = vld [vmem:[%s9942_s2 + $0x18] sm:$0xff]  ;;  %v4014_v58 = vld [vmem:[%s7881_s13 + $0x6e] sm:$0xff] }
 0x23a   : > { %6300 = vmatprep.mubr.msk.f32.mxu1 %vm7775_vm1, %v7774_v2  ;;  %6860 = vmatprep.mubr.msk.f32.mxu0 %vm7775_vm1, %v7774_v2 }
 0x23b   : > { %4584 = vperm.xlu1 %7676, %v4529_v41   ;;  %4599 = vperm.xlu0 %7675, %v4532_v7   ;;  %v4022_v41 = vld [vmem:[%s7881_s13 + $0xae] sm:$0xff]  ;;  %v4023_v7 = vld [vmem:[%s7881_s13 + $0xb6] sm:$0xff] }
 0x23d   : > { %6301 = vmatmul.mubr.msk.f32.gmra.mrb[26].mxu1 %vm331_vm2, %v8843_v42  ;;  %6861 = vmatmul.mubr.msk.f32.gmra.mrb[66].mxu0 %vm331_vm2, %v3558_v3  ;;  %v4531_v42 = vld [vmem:[%s9942_s2 + $0x28] sm:$0xff]  ;;  %v4016_v3 = vld [vmem:[%s7881_s13 + $0x7e] sm:$0xff] }
 0x23e   : > { %6303 = vmatprep.mubr.msk.f32.mxu1 %vm7775_vm1, %v7774_v2  ;;  %6863 = vmatprep.mubr.msk.f32.mxu0 %vm7775_vm1, %v7774_v2 }
 0x23f   : > { %4594 = vperm.xlu1 %7676, %v4531_v42   ;;  %4609 = vperm.xlu0 %7675, %v4534_v15   ;;  %v4024_v42 = vld [vmem:[%s7881_s13 + $0xbe] sm:$0xff] }
 0x240   : > { %v2106_v15 = vld [vmem:[%s7881_s13 + $0xbb] sm:$0xff] }
 0x241   : > { %6304 = vmatmul.mubr.msk.f32.gmra.mrb[28].mxu1 %vm331_vm2, %v8854_v43  ;;  %6864 = vmatmul.mubr.msk.f32.gmra.mrb[68].mxu0 %vm331_vm2, %v3559_v11  ;;  %v4533_v43 = vld [vmem:[%s9942_s2 + $0x38] sm:$0xff]  ;;  %v1645_v11 = vld [vmem:[%s7881_s13 + $0x152] sm:$0xf] }
 0x242   : > { %6306 = vmatprep.mubr.msk.f32.mxu1 %vm7775_vm1, %v7774_v2  ;;  %6866 = vmatprep.mubr.msk.f32.mxu0 %vm7775_vm1, %v7774_v2 }
 0x243   : > { %4604 = vperm.xlu1 %7676, %v4533_v43   ;;  %4619 = vperm.xlu0 %7675, %v4536_v23   ;;  %v2107_v43 = vld [vmem:[%s7881_s13 + $0xc3] sm:$0xff]  ;;  %v4026_v23 = vld [vmem:[%s7881_s13 + $0xce] sm:$0xff] }
 0x245   : > { %6307 = vmatmul.mubr.msk.f32.gmra.mrb[30].mxu1 %vm331_vm2, %v8865_v44  ;;  %6867 = vmatmul.mubr.msk.f32.gmra.mrb[70].mxu0 %vm331_vm2, %v3560_v19  ;;  %v4535_v44 = vld [vmem:[%s9942_s2 + $0x48] sm:$0xff] }
 0x246   : > { %6309 = vmatprep.mubr.msk.f32.mxu1 %vm7775_vm1, %v7774_v2  ;;  %6869 = vmatprep.mubr.msk.f32.mxu0 %vm7775_vm1, %v7774_v2  ;;  %v4025_v19 = vld [vmem:[%s7881_s13 + $0xc6] sm:$0xff] }
 0x247   : > { %4614 = vperm.xlu1 %7676, %v4535_v44   ;;  %4629 = vperm.xlu0 %7675, %v4538_v57   ;;  %v4027_v44 = vld [vmem:[%s7881_s13 + $0xd6] sm:$0xff] }
 0x248   : > { %v2109_v57 = vld [vmem:[%s7881_s13 + $0xd3] sm:$0xff] }
 0x249   : > { %6310 = vmatmul.mubr.msk.f32.gmra.mrb[32].mxu1 %vm331_vm2, %v8876_v45  ;;  %6870 = vmatmul.mubr.msk.f32.gmra.mrb[72].mxu0 %vm331_vm2, %v3561_v53  ;;  %v4537_v45 = vld [vmem:[%s9942_s2 + $0x58] sm:$0xff]  ;;  %v2108_v53 = vld [vmem:[%s7881_s13 + $0xcb] sm:$0xff] }
 0x24a   : > { %6312 = vmatprep.mubr.msk.f32.mxu1 %vm7775_vm1, %v7774_v2  ;;  %6872 = vmatprep.mubr.msk.f32.mxu0 %vm7775_vm1, %v7774_v2 }
 0x24b   : > { %4624 = vperm.xlu1 %7676, %v4537_v45   ;;  %4639 = vperm.xlu0 %7675, %v4540_v1   ;;  %v2110_v45 = vld [vmem:[%s7881_s13 + $0xdb] sm:$0xff]  ;;  %v4029_v1 = vld [vmem:[%s7881_s13 + $0xe6] sm:$0xff] }
 0x24d   : > { %6313 = vmatmul.mubr.msk.f32.gmra.mrb[34].mxu1 %vm331_vm2, %v8887_v47  ;;  %6873 = vmatmul.mubr.msk.f32.gmra.mrb[74].mxu0 %vm331_vm2, %v3562_v61  ;;  %v4539_v47 = vld [vmem:[%s9942_s2 + $0x68] sm:$0xff]  ;;  %v4028_v61 = vld [vmem:[%s7881_s13 + $0xde] sm:$0xff] }
 0x24e   : > { %6315 = vmatprep.mubr.msk.f32.mxu1 %vm7775_vm1, %v7774_v2  ;;  %6875 = vmatprep.mubr.msk.f32.mxu0 %vm7775_vm1, %v7774_v2 }
 0x24f   : > { %4634 = vperm.xlu1 %7676, %v4539_v47   ;;  %4649 = vperm.xlu0 %7675, %v4542_v10   ;;  %v4030_v47 = vld [vmem:[%s7881_s13 + $0xee] sm:$0xff] }
 0x250   : > { %v2112_v10 = vld [vmem:[%s7881_s13 + $0xeb] sm:$0xff] }
 0x251   : > { %6316 = vmatmul.mubr.msk.f32.gmra.mrb[36].mxu1 %vm331_vm2, %v8898_v49  ;;  %6876 = vmatmul.mubr.msk.f32.gmra.mrb[76].mxu0 %vm331_vm2, %v3563_v6  ;;  %v4541_v49 = vld [vmem:[%s9942_s2 + $0x78] sm:$0xff]  ;;  %v2111_v6 = vld [vmem:[%s7881_s13 + $0xe3] sm:$0xff] }
 0x252   : > { %6318 = vmatprep.mubr.msk.f32.mxu1 %vm7775_vm1, %v7774_v2  ;;  %6878 = vmatprep.mubr.msk.f32.mxu0 %vm7775_vm1, %v7774_v2 }
 0x253   : > { %4644 = vperm.xlu1 %7676, %v4541_v49   ;;  %4659 = vperm.xlu0 %7675, %v4544_v18   ;;  %v2113_v49 = vld [vmem:[%s7881_s13 + $0xf3] sm:$0xff]  ;;  %v4032_v18 = vld [vmem:[%s7881_s13 + $0xfe] sm:$0xff] }
 0x255   : > { %6319 = vmatmul.mubr.msk.f32.gmra.mrb[38].mxu1 %vm331_vm2, %v8909_v51  ;;  %6879 = vmatmul.mubr.msk.f32.gmra.mrb[78].mxu0 %vm331_vm2, %v3564_v14  ;;  %v4543_v51 = vld [vmem:[%s9942_s2 + $0x88] sm:$0xff]  ;;  %v4031_v14 = vld [vmem:[%s7881_s13 + $0xf6] sm:$0xff] }
 0x256   : > { %6321 = vmatprep.mubr.msk.f32.mxu1 %vm7775_vm1, %v7774_v2  ;;  %6881 = vmatprep.mubr.msk.f32.mxu0 %vm7775_vm1, %v7774_v2 }
 0x257   : > { %4654 = vperm.xlu1 %7676, %v4543_v51   ;;  %4669 = vperm.xlu0 %7675, %v4546_v26   ;;  %v4033_v51 = vld [vmem:[%s7881_s13 + $0x106] sm:$0xff] }
 0x258   : > { %v2115_v26 = vld [vmem:[%s7881_s13 + $0x103] sm:$0xff] }
 0x259   : > { %6322 = vmatmul.mubr.msk.f32.gmra.mrb[40].mxu1 %vm331_vm2, %v8922_v56  ;;  %6882 = vmatmul.mubr.msk.f32.gmra.mrb[80].mxu0 %vm331_vm2, %v3565_v22  ;;  %v4545_v56 = vld [vmem:[%s9942_s2 + $0x98] sm:$0xff] }
 0x25a   : > { %6324 = vmatprep.mubr.msk.f32.mxu1 %vm7775_vm1, %v7774_v2  ;;  %6886 = vmatprep.mubr.msk.f32.mxu0 %vm7775_vm1, %v7774_v2  ;;  %v2114_v22 = vld [vmem:[%s7881_s13 + $0xfb] sm:$0xff] }
 0x25b   : > { %4664 = vperm.xlu1 %7676, %v4545_v56   ;;  %4679 = vperm.xlu0 %7675, %v4548_v28   ;;  %v2116_v56 = vld [vmem:[%s7881_s13 + $0x10b] sm:$0xff]  ;;  %v4035_v28 = vld [vmem:[%s7881_s13 + $0x116] sm:$0xff] }
 0x25d   : > { %6325 = vmatmul.mubr.msk.f32.gmra.mrb[42].mxu1 %vm331_vm2, %v8935_v60  ;;  %6887 = vmatmul.mubr.msk.f32.vlgmr.msra.gmra.mrb[0].mxu0 %vm331_vm2, %v4005_v27  ;;  %v4547_v60 = vld [vmem:[%s9942_s2 + $0xa8] sm:$0xff] }
 0x25e   : > { %6327 = vmatprep.mubr.msk.f32.mxu1 %vm7775_vm1, %v7774_v2  ;;  %6889 = vmatprep.mubr.msk.f32.mxu0 %vm7775_vm1, %v7774_v2  ;;  %v4034_v27 = vld [vmem:[%s7881_s13 + $0x10e] sm:$0xff] }
 0x25f   : > { %4674 = vperm.xlu1 %7676, %v4547_v60   ;;  %4689 = vperm.xlu0 %7675, %v4550_v48   ;;  %v4036_v60 = vld [vmem:[%s7881_s13 + $0x11e] sm:$0xff] }
 0x260   : > { %v2118_v48 = vld [vmem:[%s7881_s13 + $0x11b] sm:$0xff] }
 0x261   : > { %6328 = vmatmul.mubr.msk.f32.gmra.mrb[44].mxu1 %vm331_vm2, %v8946_v0  ;;  %6890 = vmatmul.mubr.msk.f32.gmra.mrb[2].mxu0 %vm331_vm2, %v4006_v46  ;;  %v4549_v0 = vld [vmem:[%s9942_s2 + $0xb8] sm:$0xff] }
 0x262   : > { %6330 = vmatprep.mubr.msk.f32.mxu1 %vm7775_vm1, %v7774_v2  ;;  %6892 = vmatprep.mubr.msk.f32.mxu0 %vm7775_vm1, %v7774_v2  ;;  %v2117_v46 = vld [vmem:[%s7881_s13 + $0x113] sm:$0xff] }
 0x263   : > { %4684 = vperm.xlu1 %7676, %v4549_v0   ;;  %4699 = vperm.xlu0 %7675, %v4552_v29  }
 0x265   : > { %6331 = vmatmul.mubr.msk.f32.gmra.mrb[46].mxu1 %vm331_vm2, %v8957_v5  ;;  %6893 = vmatmul.mubr.msk.f32.gmra.mrb[4].mxu0 %vm331_vm2, %v4007_v50  ;;  %v4551_v5 = vld [vmem:[%s9942_s2 + $0xc8] sm:$0xff] }
 0x266   : > { %6333 = vmatprep.mubr.msk.f32.mxu1 %vm7775_vm1, %v7774_v2  ;;  %6895 = vmatprep.mubr.msk.f32.mxu0 %vm7775_vm1, %v7774_v2  ;;  %v4037_v50 = vld [vmem:[%s7881_s13 + $0x126] sm:$0xff] }
 0x267   : > { %4694 = vperm.xlu1 %7676, %v4551_v5   ;;  %4709 = vperm.xlu0 %7675, %v4554_v31   ;;  %v4038_v5 = vld [vmem:[%s7881_s13 + $0x12e] sm:$0xff] }
 0x269   : > { %6334 = vmatmul.mubr.msk.f32.gmra.mrb[48].mxu1 %vm331_vm2, %v8968_v9  ;;  %6896 = vmatmul.mubr.msk.f32.gmra.mrb[6].mxu0 %vm331_vm2, %v4008_v30  ;;  %v4553_v9 = vld [vmem:[%s9942_s2 + $0xd8] sm:$0xff]  ;;  %v2119_v30 = vld [vmem:[%s7881_s13 + $0x123] sm:$0xff] }
 0x26a   : > { %6336 = vmatprep.mubr.msk.f32.mxu1 %vm7775_vm1, %v7774_v2  ;;  %6898 = vmatprep.mubr.msk.f32.mxu0 %vm7775_vm1, %v7774_v2 }
 0x26b   : > { %4704 = vperm.xlu1 %7676, %v4553_v9   ;;  %4719 = vperm.xlu0 %7675, %v4556_v33   ;;  %v2120_v9 = vld [vmem:[%s7881_s13 + $0x12b] sm:$0xff]  ;;  %v4039_v33 = vld [vmem:[%s7881_s13 + $0x136] sm:$0xff] }
 0x26d   : > { %6337 = vmatmul.mubr.msk.f32.gmra.mrb[50].mxu1 %vm331_vm2, %v8979_v13  ;;  %6899 = vmatmul.mubr.msk.f32.gmra.mrb[8].mxu0 %vm331_vm2, %v4009_v32  ;;  %v4555_v13 = vld [vmem:[%s9942_s2 + $0xe8] sm:$0xff] }
 0x26e   : > { %6339 = vmatprep.mubr.msk.f32.mxu1 %vm7775_vm1, %v7774_v2  ;;  %6901 = vmatprep.mubr.msk.f32.mxu0 %vm7775_vm1, %v7774_v2 }
 0x26f   : > { %4714 = vperm.xlu1 %7676, %v4555_v13   ;;  %4729 = vperm.xlu0 %7675, %v4558_v35   ;;  %v2121_v35 = vld [vmem:[%s7881_s13 + $0x133] sm:$0xff] }
 0x271   : > { %6340 = vmatmul.mubr.msk.f32.gmra.mrb[52].mxu1 %vm331_vm2, %v8990_v17  ;;  %6902 = vmatmul.mubr.msk.f32.gmra.mrb[10].mxu0 %vm331_vm2, %v4010_v34  ;;  %v4557_v17 = vld [vmem:[%s9942_s2 + $0xf8] sm:$0xff] }
 0x272   : > { %6342 = vmatprep.mubr.msk.f32.mxu1 %vm7775_vm1, %v7774_v2  ;;  %6904 = vmatprep.mubr.msk.f32.mxu0 %vm7775_vm1, %v7774_v2 }
 0x273   : > { %4724 = vperm.xlu1 %7676, %v4557_v17   ;;  %4739 = vperm.xlu0 %7675, %v4560_v37  }
 0x275   : > { %6343 = vmatmul.mubr.msk.f32.gmra.mrb[54].mxu1 %vm331_vm2, %v9001_v21  ;;  %6905 = vmatmul.mubr.msk.f32.gmra.mrb[12].mxu0 %vm331_vm2, %v4011_v36  ;;  %v4559_v21 = vld [vmem:[%s9942_s2 + $0x108] sm:$0xff]  ;;  %v4040_v36 = vld [vmem:[%s7881_s13 + $0x13e] sm:$0xff] }
 0x276   : > { %6345 = vmatprep.mubr.msk.f32.mxu1 %vm7775_vm1, %v7774_v2  ;;  %6907 = vmatprep.mubr.msk.f32.mxu0 %vm7775_vm1, %v7774_v2 }
 0x277   : > { %4734 = vperm.xlu1 %7676, %v4559_v21   ;;  %4749 = vperm.xlu0 %7675, %v4562_v38   ;;  %v4041_v21 = vld [vmem:[%s7881_s13 + $0x146] sm:$0xff] }
 0x279   : > { %6346 = vmatmul.mubr.msk.f32.gmra.mrb[56].mxu1 %vm331_vm2, %v9012_v25  ;;  %6908 = vmatmul.mubr.msk.f32.gmra.mrb[14].mxu0 %vm331_vm2, %v4012_v52  ;;  %v4561_v25 = vld [vmem:[%s9942_s2 + $0x118] sm:$0xff] }
 0x27a   : > { %6348 = vmatprep.mubr.msk.f32.mxu1 %vm7775_vm1, %v7774_v2  ;;  %6910 = vmatprep.mubr.msk.f32.mxu0 %vm7775_vm1, %v7774_v2  ;;  %v2122_v52 = vld [vmem:[%s7881_s13 + $0x13b] sm:$0xff] }
 0x27b   : > { %4744 = vperm.xlu1 %7676, %v4561_v25   ;;  %4759 = vperm.xlu0 %7675, %v4564_v39   ;;  %v2123_v25 = vld [vmem:[%s7881_s13 + $0x143] sm:$0xff]  ;;  %v4042_v39 = vld [vmem:[%s7881_s13 + $0x14e] sm:$0xff] }
 0x27d   : > { %6349 = vmatmul.mubr.msk.f32.gmra.mrb[58].mxu1 %vm331_vm2, %v9023_v55  ;;  %6911 = vmatmul.mubr.msk.f32.gmra.mrb[16].mxu0 %vm331_vm2, %v4013_v54  ;;  %v4563_v55 = vld [vmem:[%s9942_s2 + $0x128] sm:$0xff] }
 0x27e   : > { %6351 = vmatprep.mubr.msk.f32.mxu1 %vm7775_vm1, %v7774_v2  ;;  %6913 = vmatprep.mubr.msk.f32.mxu0 %vm7775_vm1, %v7774_v2 }
 0x27f   : > { %4754 = vperm.xlu1 %7676, %v4563_v55   ;;  %4769 = vperm.xlu0 %7675, %v4566_v40   ;;  %v2124_v40 = vld [vmem:[%s7881_s13 + $0x14b] sm:$0xff] }
 0x281   : > { %6352 = vmatmul.mubr.msk.f32.gmra.mrb[60].mxu1 %vm331_vm2, %v9034_v59  ;;  %6914 = vmatmul.mubr.msk.f32.gmra.mrb[18].mxu0 %vm331_vm2, %v4014_v58  ;;  %v4565_v59 = vld [vmem:[%s9942_s2 + $0x138] sm:$0xff] }
 0x282   : > { %6354 = vmatprep.mubr.msk.f32.mxu1 %vm7775_vm1, %v7774_v2  ;;  %6916 = vmatprep.mubr.msk.f32.mxu0 %vm7775_vm1, %v7774_v2 }
 0x283   : > { %4764 = vperm.xlu1 %7676, %v4565_v59  }
 0x285   : > { %6355 = vmatmul.mubr.msk.f32.gmra.mrb[62].mxu1 %vm331_vm2, %v9045_v63  ;;  %6917 = vmatmul.mubr.msk.f32.gmra.mrb[20].mxu0 %vm331_vm2, %v4015_v62  ;;  %v4017_v63 = vld [vmem:[%s7881_s13 + $0x86] sm:$0xff]  ;;  %v4043_v62 = vld [vmem:[%s7881_s13 + $0x156] sm:$0xff] }
 0x286   : > { %6357 = vmatprep.mubr.msk.f32.mxu1 %vm7775_vm1, %v7774_v2  ;;  %6919 = vmatprep.mubr.msk.f32.mxu0 %vm7775_vm1, %v7774_v2 }
 0x289   : > { %6358 = vmatmul.mubr.msk.f32.gmra.mrb[64].mxu1 %vm331_vm2, %v9056_v4  ;;  %6920 = vmatmul.mubr.msk.f32.gmra.mrb[22].mxu0 %vm331_vm2, %v4016_v3  ;;  %v4018_v4 = vld [vmem:[%s7881_s13 + $0x8e] sm:$0xff] }
 0x28a   : > { %6360 = vmatprep.mubr.msk.f32.mxu1 %vm7775_vm1, %v7774_v2  ;;  %6922 = vmatprep.mubr.msk.f32.mxu0 %vm7775_vm1, %v7774_v2 }
 0x28d   : > { %6361 = vmatmul.mubr.msk.f32.gmra.mrb[66].mxu1 %vm331_vm2, %v9067_v8  ;;  %6923 = vmatmul.mubr.msk.f32.gmra.mrb[24].mxu0 %vm331_vm2, %v4017_v63  ;;  %v4019_v8 = vld [vmem:[%s7881_s13 + $0x96] sm:$0xff] }
 0x28e   : > { %6363 = vmatprep.mubr.msk.f32.mxu1 %vm7775_vm1, %v7774_v2  ;;  %6925 = vmatprep.mubr.msk.f32.mxu0 %vm7775_vm1, %v7774_v2  ;;  %v2125_v63 = vld [vmem:[%s7881_s13 + $0x153] sm:$0xf] }
 0x291   : > { %6364 = vmatmul.mubr.msk.f32.gmra.mrb[68].mxu1 %vm331_vm2, %v9078_v12  ;;  %6926 = vmatmul.mubr.msk.f32.gmra.mrb[26].mxu0 %vm331_vm2, %v4018_v4  ;;  %v4020_v12 = vld [vmem:[%s7881_s13 + $0x9e] sm:$0xff] }
 0x292   : > { %6366 = vmatprep.mubr.msk.f32.mxu1 %vm7775_vm1, %v7774_v2  ;;  %6928 = vmatprep.mubr.msk.f32.mxu0 %vm7775_vm1, %v7774_v2  ;;  %v4044_v4 = vld [vmem:[%s7881_s13 + $0x15e] sm:$0xff] }
 0x295   : > { %6367 = vmatmul.mubr.msk.f32.gmra.mrb[70].mxu1 %vm331_vm2, %v9089_v16  ;;  %6929 = vmatmul.mubr.msk.f32.gmra.mrb[28].mxu0 %vm331_vm2, %v4019_v8  ;;  %v4021_v16 = vld [vmem:[%s7881_s13 + $0xa6] sm:$0xff] }
 0x296   : > { %6369 = vmatprep.mubr.msk.f32.mxu1 %vm7775_vm1, %v7774_v2  ;;  %6931 = vmatprep.mubr.msk.f32.mxu0 %vm7775_vm1, %v7774_v2 }
 0x299   : > { %6370 = vmatmul.mubr.msk.f32.gmra.mrb[72].mxu1 %vm331_vm2, %v9100_v20  ;;  %6932 = vmatmul.mubr.msk.f32.gmra.mrb[30].mxu0 %vm331_vm2, %v4020_v12  ;;  %v1643_v20 = vld [vmem:[%s7881_s13 + $0x142] sm:$0xff] }
 0x29a   : > { %6372 = vmatprep.mubr.msk.f32.mxu1 %vm7775_vm1, %v7774_v2  ;;  %6934 = vmatprep.mubr.msk.f32.mxu0 %vm7775_vm1, %v7774_v2 }
 0x29d   : > { %6373 = vmatmul.mubr.msk.f32.gmra.mrb[74].mxu1 %vm331_vm2, %v9111_v24  ;;  %6935 = vmatmul.mubr.msk.f32.gmra.mrb[32].mxu0 %vm331_vm2, %v4021_v16  ;;  %v1644_v24 = vld [vmem:[%s7881_s13 + $0x14a] sm:$0xff]  ;;  %v4045_v16 = vld [vmem:[%s7881_s13 + $0x166] sm:$0xf]  ;;  %s7627_s13 = smul.u32 328, %s7873_s9  ;;  %s9856_s9 = sand.u32 1, %s7764_s19  }
 0x29e   : > { %6375 = vmatprep.mubr.msk.f32.mxu1 %vm7775_vm1, %v7774_v2  ;;  %6937 = vmatprep.mubr.msk.f32.mxu0 %vm7775_vm1, %v7774_v2  ;;  %s5110_s17 = sshll.u32 %s9856_s9, 3 }
 0x29f   : > { %s9790_s16 = scalar_lea.vmem %s9943_s3, %s7627_s13  ;;  %s228_s25 = scalar_lea.vmem [#allocation2], %s5110_s17 }
 0x2a0   : > { %s4977_s26 = sshll.u32 %s228_s25, 4  ;;  %s9861_s30 = scalar_lea.vmem [#allocation4], %s5110_s17  ;;  %s9869_s26 = int_to_ptr.vmem [resolvable:$true] %s4977_s26 }
 0x2a1   : > { %6376 = vmatmul.mubr.msk.f32.gmra.mrb[76].mxu1 %vm331_vm2, %v1643_v20  ;;  %6938 = vmatmul.mubr.msk.f32.gmra.mrb[34].mxu0 %vm331_vm2, %v4022_v41  ;;  %s4990_s6 = sshll.u32 %s9861_s30, 4  ;;  %s4956_s13 = scalar_lea.sflag [#allocation3], %s9856_s9  ;;  %s9876_s6 = int_to_ptr.vmem [resolvable:$true] %s4990_s6 }
 0x2a2   : > { %6378 = vmatprep.mubr.msk.f32.mxu1 %vm7775_vm1, %v7774_v2  ;;  %6940 = vmatprep.mubr.msk.f32.mxu0 %vm7775_vm1, %v7774_v2  ;;  %s7678_s14 = scalar_lea.vmem %s9869_s26, 128 }
 0x2a3   : > { %p7679_p11 = scmp.ne.s32.totalorder %s9869_s26, %s7678_s14 }
 0x2a5   : > { %6379 = vmatmul.mubr.msk.f32.gmra.mrb[78].mxu1 %vm331_vm2, %v1644_v24  ;;  %6941 = vmatmul.mubr.msk.f32.gmra.mrb[36].mxu0 %vm331_vm2, %v4023_v7  ;;  %p7680_p12 = pnand %p7679_p11, %p7847_p5 }
 0x2a6   : > { %6381 = vmatprep.mubr.msk.f32.mxu1 %vm7775_vm1, %v7774_v2  ;;  %6943 = vmatprep.mubr.msk.f32.mxu0 %vm7775_vm1, %v7774_v2 }
 0x2a7   : > { %p7681_p13 = pneg %p7680_p12 }
 0x2a9   : > { %6382 = vmatmul.mubr.msk.f32.gmra.mrb[80].mxu1 %vm331_vm2, %v1645_v11  ;;  %6944 = vmatmul.mubr.msk.f32.gmra.mrb[38].mxu0 %vm331_vm2, %v4024_v42 }
 0x2aa   : > { %6449 = vmatprep.mubr.msk.f32.mxu1 %vm7775_vm1, %v7774_v2  ;;  %6946 = vmatprep.mubr.msk.f32.mxu0 %vm7775_vm1, %v7774_v2 }
 0x2ad   : > { %6450 = vmatmul.mubr.msk.f32.vlgmr.msra.gmra.mrb[42].mxu1 %vm331_vm2, %v2106_v15  ;;  %6947 = vmatmul.mubr.msk.f32.gmra.mrb[40].mxu0 %vm331_vm2, %v4025_v19 }
 0x2ae   : > { %6452 = vmatprep.mubr.msk.f32.mxu1 %vm7775_vm1, %v7774_v2  ;;  %6949 = vmatprep.mubr.msk.f32.mxu0 %vm7775_vm1, %v7774_v2 }
 0x2b1   : > { %6453 = vmatmul.mubr.msk.f32.gmra.mrb[44].mxu1 %vm331_vm2, %v2107_v43  ;;  %6950 = vmatmul.mubr.msk.f32.gmra.mrb[42].mxu0 %vm331_vm2, %v4026_v23 }
 0x2b2   : > { %6455 = vmatprep.mubr.msk.f32.mxu1 %vm7775_vm1, %v7774_v2  ;;  %6952 = vmatprep.mubr.msk.f32.mxu0 %vm7775_vm1, %v7774_v2 }
 0x2b5   : > { %6456 = vmatmul.mubr.msk.f32.gmra.mrb[46].mxu1 %vm331_vm2, %v2108_v53  ;;  %6953 = vmatmul.mubr.msk.f32.gmra.mrb[44].mxu0 %vm331_vm2, %v4027_v44 }
 0x2b6   : > { %6458 = vmatprep.mubr.msk.f32.mxu1 %vm7775_vm1, %v7774_v2  ;;  %6955 = vmatprep.mubr.msk.f32.mxu0 %vm7775_vm1, %v7774_v2 }
 0x2b9   : > { %6459 = vmatmul.mubr.msk.f32.gmra.mrb[48].mxu1 %vm331_vm2, %v2109_v57  ;;  %6956 = vmatmul.mubr.msk.f32.gmra.mrb[46].mxu0 %vm331_vm2, %v4028_v61 }
 0x2ba   : > { %6461 = vmatprep.mubr.msk.f32.mxu1 %vm7775_vm1, %v7774_v2  ;;  %6958 = vmatprep.mubr.msk.f32.mxu0 %vm7775_vm1, %v7774_v2 }
 0x2bd   : > { %6462 = vmatmul.mubr.msk.f32.gmra.mrb[50].mxu1 %vm331_vm2, %v2110_v45  ;;  %6959 = vmatmul.mubr.msk.f32.gmra.mrb[48].mxu0 %vm331_vm2, %v4029_v1 }
 0x2be   : > { %6464 = vmatprep.mubr.msk.f32.mxu1 %vm7775_vm1, %v7774_v2  ;;  %6961 = vmatprep.mubr.msk.f32.mxu0 %vm7775_vm1, %v7774_v2 }
 0x2c1   : > { %6465 = vmatmul.mubr.msk.f32.gmra.mrb[52].mxu1 %vm331_vm2, %v2111_v6  ;;  %6962 = vmatmul.mubr.msk.f32.gmra.mrb[50].mxu0 %vm331_vm2, %v4030_v47 }
 0x2c2   : > { %6467 = vmatprep.mubr.msk.f32.mxu1 %vm7775_vm1, %v7774_v2  ;;  %6964 = vmatprep.mubr.msk.f32.mxu0 %vm7775_vm1, %v7774_v2 }
 0x2c5   : > { %6468 = vmatmul.mubr.msk.f32.gmra.mrb[54].mxu1 %vm331_vm2, %v2112_v10  ;;  %6965 = vmatmul.mubr.msk.f32.gmra.mrb[52].mxu0 %vm331_vm2, %v4031_v14 }
 0x2c6   : > { %6470 = vmatprep.mubr.msk.f32.mxu1 %vm7775_vm1, %v7774_v2  ;;  %6967 = vmatprep.mubr.msk.f32.mxu0 %vm7775_vm1, %v7774_v2 }
 0x2c9   : > { %6471 = vmatmul.mubr.msk.f32.gmra.mrb[56].mxu1 %vm331_vm2, %v2113_v49  ;;  %6968 = vmatmul.mubr.msk.f32.gmra.mrb[54].mxu0 %vm331_vm2, %v4032_v18 }
 0x2ca   : > { %6473 = vmatprep.mubr.msk.f32.mxu1 %vm7775_vm1, %v7774_v2  ;;  %6970 = vmatprep.mubr.msk.f32.mxu0 %vm7775_vm1, %v7774_v2 }
 0x2cd   : > { %6474 = vmatmul.mubr.msk.f32.gmra.mrb[58].mxu1 %vm331_vm2, %v2114_v22  ;;  %6971 = vmatmul.mubr.msk.f32.gmra.mrb[56].mxu0 %vm331_vm2, %v4033_v51 }
 0x2ce   : > { %6476 = vmatprep.mubr.msk.f32.mxu1 %vm7775_vm1, %v7774_v2  ;;  %6973 = vmatprep.mubr.msk.f32.mxu0 %vm7775_vm1, %v7774_v2 }
 0x2d1   : > { %6477 = vmatmul.mubr.msk.f32.gmra.mrb[60].mxu1 %vm331_vm2, %v2115_v26  ;;  %6974 = vmatmul.mubr.msk.f32.gmra.mrb[58].mxu0 %vm331_vm2, %v4034_v27  ;;  %v4570_v27 = vpop.permute.xlu0 %4569 }
 0x2d2   : > { %6479 = vmatprep.mubr.msk.f32.mxu1 %vm7775_vm1, %v7774_v2  ;;  %6976 = vmatprep.mubr.msk.f32.mxu0 %vm7775_vm1, %v7774_v2 }
 0x2d5   : > { %6480 = vmatmul.mubr.msk.f32.gmra.mrb[62].mxu1 %vm331_vm2, %v2116_v56  ;;  %6977 = vmatmul.mubr.msk.f32.gmra.mrb[60].mxu0 %vm331_vm2, %v4035_v28 }
 0x2d6   : > { %6482 = vmatprep.mubr.msk.f32.mxu1 %vm7775_vm1, %v7774_v2  ;;  %6979 = vmatprep.mubr.msk.f32.mxu0 %vm7775_vm1, %v7774_v2 }
 0x2d9   : > { %6483 = vmatmul.mubr.msk.f32.gmra.mrb[64].mxu1 %vm331_vm2, %v2117_v46  ;;  %6980 = vmatmul.mubr.msk.f32.gmra.mrb[62].mxu0 %vm331_vm2, %v4036_v60 }
 0x2da   : > { %6485 = vmatprep.mubr.msk.f32.mxu1 %vm7775_vm1, %v7774_v2  ;;  %6982 = vmatprep.mubr.msk.f32.mxu0 %vm7775_vm1, %v7774_v2 }
 0x2dc   : > { %v9682_v0 = vpop.f32.mrb[0].mxu1 }
 0x2dd   : > { %v6263_v29 = vpop.f32.mrb[1].mxu1  ;;  %6486 = vmatmul.mubr.msk.f32.gmra.mrb[66].mxu1 %vm331_vm2, %v2118_v48  ;;  %6983 = vmatmul.mubr.msk.f32.gmra.mrb[64].mxu0 %vm331_vm2, %v4037_v50  ;;  %v4575_v48 = vpop.permute.xlu0 %4574 }
 0x2de   : > { %6488 = vmatprep.mubr.msk.f32.mxu1 %vm7775_vm1, %v7774_v2  ;;  %6985 = vmatprep.mubr.msk.f32.mxu0 %vm7775_vm1, %v7774_v2 }
 0x2e0   : > { %v9692_v31 = vpop.f32.mrb[2].mxu1 }
 0x2e1   : > { %v6266_v32 = vpop.f32.mrb[3].mxu1  ;;  %6489 = vmatmul.mubr.msk.f32.gmra.mrb[68].mxu1 %vm331_vm2, %v2119_v30  ;;  %6986 = vmatmul.mubr.msk.f32.gmra.mrb[66].mxu0 %vm331_vm2, %v4038_v5  ;;  %v4580_v5 = vpop.permute.xlu1 %4579 }
 0x2e2   : > { %6491 = vmatprep.mubr.msk.f32.mxu1 %vm7775_vm1, %v7774_v2  ;;  %6988 = vmatprep.mubr.msk.f32.mxu0 %vm7775_vm1, %v7774_v2 }
 0x2e4   : > { %v9702_v34 = vpop.f32.mrb[4].mxu1 }
 0x2e5   : > { %v6269_v13 = vpop.f32.mrb[5].mxu1  ;;  %6492 = vmatmul.mubr.msk.f32.gmra.mrb[70].mxu1 %vm331_vm2, %v2120_v9  ;;  %6989 = vmatmul.mubr.msk.f32.gmra.mrb[68].mxu0 %vm331_vm2, %v4039_v33 }
 0x2e6   : > { %6494 = vmatprep.mubr.msk.f32.mxu1 %vm7775_vm1, %v7774_v2  ;;  %6991 = vmatprep.mubr.msk.f32.mxu0 %vm7775_vm1, %v7774_v2 }
 0x2e8   : > { %v9712_v17 = vpop.f32.mrb[6].mxu1 }
 0x2e9   : > { %v6272_v37 = vpop.f32.mrb[7].mxu1  ;;  %6495 = vmatmul.mubr.msk.f32.gmra.mrb[72].mxu1 %vm331_vm2, %v2121_v35  ;;  %6992 = vmatmul.mubr.msk.f32.gmra.mrb[70].mxu0 %vm331_vm2, %v4040_v36 }
 0x2ea   : > { %6497 = vmatprep.mubr.msk.f32.mxu1 %vm7775_vm1, %v7774_v2  ;;  %6994 = vmatprep.mubr.msk.f32.mxu0 %vm7775_vm1, %v7774_v2 }
 0x2ec   : > { %v9722_v38 = vpop.f32.mrb[8].mxu1 }
 0x2ed   : > { %v6275_v54 = vpop.f32.mrb[9].mxu1  ;;  %6498 = vmatmul.mubr.msk.f32.gmra.mrb[74].mxu1 %vm331_vm2, %v2122_v52  ;;  %6995 = vmatmul.mubr.msk.f32.gmra.mrb[72].mxu0 %vm331_vm2, %v4041_v21 }
 0x2ee   : > { %6500 = vmatprep.mubr.msk.f32.mxu1 %vm7775_vm1, %v7774_v2  ;;  %6997 = vmatprep.mubr.msk.f32.mxu0 %vm7775_vm1, %v7774_v2  ;;  %v4585_v54 = vpop.permute.xlu1 %4584 }
 0x2f0   : > { %v9732_v58 = vpop.f32.mrb[10].mxu1 }
 0x2f1   : > { %v6278_v55 = vpop.f32.mrb[11].mxu1  ;;  %6501 = vmatmul.mubr.msk.f32.gmra.mrb[76].mxu1 %vm331_vm2, %v2123_v25  ;;  %6998 = vmatmul.mubr.msk.f32.gmra.mrb[74].mxu0 %vm331_vm2, %v4042_v39 }
 0x2f2   : > { %6503 = vmatprep.mubr.msk.f32.mxu1 %vm7775_vm1, %v7774_v2  ;;  %7000 = vmatprep.mubr.msk.f32.mxu0 %vm7775_vm1, %v7774_v2 }
 0x2f4   : > { %v9742_v59 = vpop.f32.mrb[12].mxu1 }
 0x2f5   : > { %v6281_v3 = vpop.f32.mrb[13].mxu1  ;;  %6504 = vmatmul.mubr.msk.f32.gmra.mrb[78].mxu1 %vm331_vm2, %v2124_v40  ;;  %7001 = vmatmul.mubr.msk.f32.gmra.mrb[76].mxu0 %vm331_vm2, %v4043_v62 }
 0x2f6   : > { %6506 = vmatprep.mubr.msk.f32.mxu1 %vm7775_vm1, %v7774_v2  ;;  %7003 = vmatprep.mubr.msk.f32.mxu0 %vm7775_vm1, %v7774_v2 }
 0x2f8   : > { %v9752_v8 = vpop.f32.mrb[14].mxu1 }
 0x2f9   : > { %v6284_v12 = vpop.f32.mrb[15].mxu1  ;;  %6507 = vmatmul.mubr.msk.f32.gmra.mrb[80].mxu1 %vm331_vm2, %v2125_v63  ;;  %7004 = vmatmul.mubr.msk.f32.gmra.mrb[78].mxu0 %vm331_vm2, %v4044_v4 }
 0x2fa   : > { %7006 = vmatprep.mubr.msk.f32.mxu0 %vm7775_vm1, %v7774_v2 }
 0x2fc   : > { %v9759_v20 = vpop.f32.mrb[16].mxu1 }
 0x2fd   : > { %v6287_v41 = vpop.f32.mrb[17].mxu1  ;;  %7007 = vmatmul.mubr.msk.f32.gmra.mrb[80].mxu0 %vm331_vm2, %v4045_v16  ;;  %v4590_v16 = vpop.permute.xlu0 %4589 }
 0x300   : > { %v9762_v24 = vpop.f32.mrb[18].mxu1 }
 0x301   : > { %v6290_v7 = vpop.f32.mrb[19].mxu1 }
 0x304   : > { %v9764_v11 = vpop.f32.mrb[20].mxu1 }
 0x305   : > { %v6293_v42 = vpop.f32.mrb[21].mxu1 }
 0x308   : > { %v9766_v15 = vpop.f32.mrb[22].mxu1 }
 0x309   : > { %v6296_v19 = vpop.f32.mrb[23].mxu1 }
 0x30c   : > { %v9768_v43 = vpop.f32.mrb[24].mxu1 }
 0x30d   : > { %v6299_v23 = vpop.f32.mrb[25].mxu1 }
 0x310   : > { %v9770_v2 = vpop.f32.mrb[26].mxu1 }
 0x311   : > { %v6302_v53 = vpop.f32.mrb[27].mxu1 }
 0x314   : > { %v9772_v44 = vpop.f32.mrb[28].mxu1 }
 0x315   : > { %v6305_v57 = vpop.f32.mrb[29].mxu1 }
 0x316   : > { %v4595_v57 = vpop.permute.xlu1 %4594 }
 0x318   : > { %v9774_v61 = vpop.f32.mrb[30].mxu1 }
 0x319   : > { %v6308_v45 = vpop.f32.mrb[31].mxu1 }
 0x31c   : > { %v9776_v1 = vpop.f32.mrb[32].mxu1 }
 0x31d   : > { %v6311_v6 = vpop.f32.mrb[33].mxu1 }
 0x320   : > { %v9778_v47 = vpop.f32.mrb[34].mxu1 }
 0x321   : > { %v6314_v10 = vpop.f32.mrb[35].mxu1 }
 0x324   : > { %v9780_v14 = vpop.f32.mrb[36].mxu1 }
 0x325   : > { %v6317_v49 = vpop.f32.mrb[37].mxu1 }
 0x328   : > { %v9782_v18 = vpop.f32.mrb[38].mxu1 }
 0x329   : > { %v6320_v22 = vpop.f32.mrb[39].mxu1 }
 0x32c   : > { %v9784_v51 = vpop.f32.mrb[40].mxu1 }
 0x32d   : > { %v6323_v26 = vpop.f32.mrb[41].mxu1 }
 0x330   : > { %v4240_v56 = vpop.f32.mrb[0].mxu0 }
 0x331   : > { %v7011_v28 = vadd.f32 %v4240_v56, %v9682_v0  ;;  %v6888_v46 = vpop.f32.mrb[1].mxu0 }
 0x333   : > { %4485 = vst [vmem:[%s9790_s16] sm:$0xff] %v7011_v28  ;;  %v4772_v50 = vmul.f32 %v7011_v28, %v4570_v27  ;;  %v4600_v27 = vpop.permute.xlu0 %4599 }
 0x334   : > { %v4245_v60 = vpop.f32.mrb[2].mxu0 }
 0x335   : > { %v7012_v29 = vadd.f32 %v4245_v60, %v9692_v31  ;;  %v6891_v30 = vpop.f32.mrb[3].mxu0  ;;  %v4860_v33 = vmul.f32 %v7011_v28, %v4772_v50 }
 0x337   : > { %4486 = vst [vmem:[%s9790_s16 + $0x8] sm:$0xff] %v7012_v29  ;;  %v4773_v32 = vmul.f32 %v7012_v29, %v4575_v48 }
 0x338   : > { %v4250_v9 = vpop.f32.mrb[4].mxu0 }
 0x339   : > { %v4813_v13 = vadd.f32 %v4773_v32, %v4772_v50  ;;  %v4861_v35 = vmul.f32 %v7012_v29, %v4773_v32  ;;  %v7013_v36 = vadd.f32 %v4250_v9, %v9702_v34  ;;  %v6894_v0 = vpop.f32.mrb[5].mxu0  ;;  %v4605_v29 = vpop.permute.xlu1 %4604 }
 0x33b   : > { %v4901_v37 = vadd.f32 %v4861_v35, %v4860_v33  ;;  %4487 = vst [vmem:[%s9790_s16 + $0x10] sm:$0xff] %v7013_v36  ;;  %v4774_v52 = vmul.f32 %v7013_v36, %v4580_v5  ;;  %v4610_v35 = vpop.permute.xlu0 %4609 }
 0x33c   : > { %v4255_v21 = vpop.f32.mrb[6].mxu0 }
 0x33d   : > { %v4814_v25 = vadd.f32 %v4813_v13, %v4774_v52  ;;  %v4862_v31 = vmul.f32 %v7013_v36, %v4774_v52  ;;  %v7014_v39 = vadd.f32 %v4255_v21, %v9712_v17  ;;  %v6897_v55 = vpop.f32.mrb[7].mxu0 }
 0x33f   : > { %v4902_v40 = vadd.f32 %v4901_v37, %v4862_v31  ;;  %4488 = vst [vmem:[%s9790_s16 + $0x18] sm:$0xff] %v7014_v39  ;;  %v4775_v62 = vmul.f32 %v7014_v39, %v4585_v54 }
 0x340   : > { %v4260_v3 = vpop.f32.mrb[8].mxu0 }
 0x341   : > { %v4815_v63 = vadd.f32 %v4814_v25, %v4775_v62  ;;  %v4863_v4 = vmul.f32 %v7014_v39, %v4775_v62  ;;  %v7015_v34 = vadd.f32 %v4260_v3, %v9722_v38  ;;  %v6900_v12 = vpop.f32.mrb[9].mxu0  ;;  %v4615_v25 = vpop.permute.xlu1 %4614 }
 0x343   : > { %v4903_v41 = vadd.f32 %v4902_v40, %v4863_v4  ;;  %4489 = vst [vmem:[%s9790_s16 + $0x20] sm:$0xff] %v7015_v34  ;;  %v4776_v7 = vmul.f32 %v7015_v34, %v4590_v16 }
 0x344   : > { %v4265_v42 = vpop.f32.mrb[10].mxu0 }
 0x345   : > { %v4816_v19 = vadd.f32 %v4815_v63, %v4776_v7  ;;  %v4864_v23 = vmul.f32 %v7015_v34, %v4776_v7  ;;  %v7016_v17 = vadd.f32 %v4265_v42, %v9732_v58  ;;  %v6903_v53 = vpop.f32.mrb[11].mxu0  ;;  %v4620_v63 = vpop.permute.xlu0 %4619 }
 0x346   : > { %v4625_v42 = vpop.permute.xlu1 %4624 }
 0x347   : > { %v4904_v45 = vadd.f32 %v4903_v41, %v4864_v23  ;;  %4490 = vst [vmem:[%s9790_s16 + $0x28] sm:$0xff] %v7016_v17  ;;  %v4777_v6 = vmul.f32 %v7016_v17, %v4595_v57 }
 0x348   : > { %v4270_v10 = vpop.f32.mrb[12].mxu0 }
 0x349   : > { %v4817_v49 = vadd.f32 %v4816_v19, %v4777_v6  ;;  %v4865_v38 = vmul.f32 %v7016_v17, %v4777_v6  ;;  %v7017_v22 = vadd.f32 %v4270_v10, %v9742_v59  ;;  %v6906_v26 = vpop.f32.mrb[13].mxu0  ;;  %v4630_v6 = vpop.permute.xlu0 %4629 }
 0x34b   : > { %v4905_v56 = vadd.f32 %v4904_v45, %v4865_v38  ;;  %4491 = vst [vmem:[%s9790_s16 + $0x30] sm:$0xff] %v7017_v22  ;;  %v4778_v28 = vmul.f32 %v7017_v22, %v4600_v27 }
 0x34c   : > { %v4275_v46 = vpop.f32.mrb[14].mxu0 }
 0x34d   : > { %v4818_v60 = vadd.f32 %v4817_v49, %v4778_v28  ;;  %v4866_v58 = vmul.f32 %v7017_v22, %v4778_v28  ;;  %v7018_v48 = vadd.f32 %v4275_v46, %v9752_v8  ;;  %v6909_v50 = vpop.f32.mrb[15].mxu0 }
 0x34f   : > { %v4906_v30 = vadd.f32 %v4905_v56, %v4866_v58  ;;  %4492 = vst [vmem:[%s9790_s16 + $0x38] sm:$0xff] %v7018_v48  ;;  %v4779_v5 = vmul.f32 %v7018_v48, %v4605_v29  ;;  %v4635_v56 = vpop.permute.xlu1 %4634  ;;  %v4640_v29 = vpop.permute.xlu0 %4639 }
 0x350   : > { %v4280_v32 = vpop.f32.mrb[16].mxu0 }
 0x351   : > { %v4819_v9 = vadd.f32 %v4818_v60, %v4779_v5  ;;  %v4867_v59 = vmul.f32 %v7018_v48, %v4779_v5  ;;  %v7019_v33 = vadd.f32 %v4280_v32, %v9759_v20  ;;  %v6912_v13 = vpop.f32.mrb[17].mxu0 }
 0x353   : > { %v4907_v36 = vadd.f32 %v4906_v30, %v4867_v59  ;;  %4493 = vst [vmem:[%s9790_s16 + $0x40] sm:$0xff] %v7019_v33  ;;  %v4780_v0 = vmul.f32 %v7019_v33, %v4610_v35  ;;  %v4645_v13 = vpop.permute.xlu1 %4644 }
 0x354   : > { %v4285_v37 = vpop.f32.mrb[18].mxu0 }
 0x355   : > { %v4820_v52 = vadd.f32 %v4819_v9, %v4780_v0  ;;  %v4868_v8 = vmul.f32 %v7019_v33, %v4780_v0  ;;  %v7020_v21 = vadd.f32 %v4285_v37, %v9762_v24  ;;  %v6915_v54 = vpop.f32.mrb[19].mxu0 }
 0x357   : > { %v4908_v31 = vadd.f32 %v4907_v36, %v4868_v8  ;;  %4494 = vst [vmem:[%s9790_s16 + $0x48] sm:$0xff] %v7020_v21  ;;  %v4781_v39 = vmul.f32 %v7020_v21, %v4615_v25 }
 0x358   : > { %v4290_v55 = vpop.f32.mrb[20].mxu0 }
 0x359   : > { %v4821_v40 = vadd.f32 %v4820_v52, %v4781_v39  ;;  %v4869_v20 = vmul.f32 %v7020_v21, %v4781_v39  ;;  %v7021_v62 = vadd.f32 %v4290_v55, %v9764_v11  ;;  %v6918_v3 = vpop.f32.mrb[21].mxu0  ;;  %v4650_v21 = vpop.permute.xlu0 %4649 }
 0x35b   : > { %v4909_v4 = vadd.f32 %v4908_v31, %v4869_v20  ;;  %4495 = vst [vmem:[%s9790_s16 + $0x50] sm:$0xff] %v7021_v62  ;;  %v4782_v34 = vmul.f32 %v7021_v62, %v4620_v63  ;;  %v4655_v20 = vpop.permute.xlu1 %4654 }
 0x35c   : > { %v4295_v12 = vpop.f32.mrb[22].mxu0 }
 0x35d   : > { %v4822_v16 = vadd.f32 %v4821_v40, %v4782_v34  ;;  %v4870_v24 = vmul.f32 %v7021_v62, %v4782_v34  ;;  %v7022_v41 = vadd.f32 %v4295_v12, %v9766_v15  ;;  %v6921_v7 = vpop.f32.mrb[23].mxu0 }
 0x35f   : > { %v4910_v19 = vadd.f32 %v4909_v4, %v4870_v24  ;;  %4496 = vst [vmem:[%s9790_s16 + $0x58] sm:$0xff] %v7022_v41  ;;  %v4783_v23 = vmul.f32 %v7022_v41, %v4625_v42 }
 0x360   : > { %v4300_v17 = vpop.f32.mrb[24].mxu0 }
 0x361   : > { %v4823_v53 = vadd.f32 %v4822_v16, %v4783_v23  ;;  %v4871_v11 = vmul.f32 %v7022_v41, %v4783_v23  ;;  %v7023_v57 = vadd.f32 %v4300_v17, %v9768_v43  ;;  %v6924_v45 = vpop.f32.mrb[25].mxu0  ;;  %v4660_v16 = vpop.permute.xlu0 %4659 }
 0x362   : > { %v4665_v17 = vpop.permute.xlu1 %4664 }
 0x363   : > { %v4911_v10 = vadd.f32 %v4910_v19, %v4871_v11  ;;  %4497 = vst [vmem:[%s9790_s16 + $0x60] sm:$0xff] %v7023_v57  ;;  %v4784_v49 = vmul.f32 %v7023_v57, %v4630_v6 }
 0x364   : > { %v4305_v38 = vpop.f32.mrb[26].mxu0 }
 0x365   : > { %v4824_v22 = vadd.f32 %v4823_v53, %v4784_v49  ;;  %v4872_v15 = vmul.f32 %v7023_v57, %v4784_v49  ;;  %v7024_v26 = vadd.f32 %v4305_v38, %v9770_v2  ;;  %v6927_v27 = vpop.f32.mrb[27].mxu0 }
 0x367   : > { %v4912_v28 = vadd.f32 %v4911_v10, %v4872_v15  ;;  %4498 = vst [vmem:[%s9790_s16 + $0x68] sm:$0xff] %v7024_v26  ;;  %v4785_v46 = vmul.f32 %v7024_v26, %v4635_v56 }
 0x368   : > { %v4310_v60 = vpop.f32.mrb[28].mxu0 }
 0x369   : > { %v4825_v58 = vadd.f32 %v4824_v22, %v4785_v46  ;;  %v4873_v43 = vmul.f32 %v7024_v26, %v4785_v46  ;;  %v7025_v48 = vadd.f32 %v4310_v60, %v9772_v44  ;;  %v6930_v50 = vpop.f32.mrb[29].mxu0  ;;  %v4670_v22 = vpop.permute.xlu0 %4669 }
 0x36b   : > { %v4913_v30 = vadd.f32 %v4912_v28, %v4873_v43  ;;  %4499 = vst [vmem:[%s9790_s16 + $0x70] sm:$0xff] %v7025_v48  ;;  %v4786_v5 = vmul.f32 %v7025_v48, %v4640_v29  ;;  %v4675_v43 = vpop.permute.xlu1 %4674 }
 0x36c   : > { %v4315_v32 = vpop.f32.mrb[30].mxu0 }
 0x36d   : > { %v4826_v9 = vadd.f32 %v4825_v58, %v4786_v5  ;;  %v4874_v2 = vmul.f32 %v7025_v48, %v4786_v5  ;;  %v7026_v59 = vadd.f32 %v4315_v32, %v9774_v61  ;;  %v6933_v33 = vpop.f32.mrb[31].mxu0 }
 0x36f   : > { %v4914_v35 = vadd.f32 %v4913_v30, %v4874_v2  ;;  %4500 = vst [vmem:[%s9790_s16 + $0x78] sm:$0xff] %v7026_v59  ;;  %v4787_v36 = vmul.f32 %v7026_v59, %v4645_v13 }
 0x370   : > { %v4320_v0 = vpop.f32.mrb[32].mxu0 }
 0x371   : > { %v4827_v37 = vadd.f32 %v4826_v9, %v4787_v36  ;;  %v4875_v44 = vmul.f32 %v7026_v59, %v4787_v36  ;;  %v7027_v52 = vadd.f32 %v4320_v0, %v9776_v1  ;;  %v6936_v8 = vpop.f32.mrb[33].mxu0  ;;  %v4680_v59 = vpop.permute.xlu0 %4679 }
 0x373   : > { %v4915_v54 = vadd.f32 %v4914_v35, %v4875_v44  ;;  %4501 = vst [vmem:[%s9790_s16 + $0x80] sm:$0xff] %v7027_v52  ;;  %v4788_v25 = vmul.f32 %v7027_v52, %v4650_v21  ;;  %v4685_v21 = vpop.permute.xlu1 %4684 }
 0x374   : > { %v4325_v31 = vpop.f32.mrb[34].mxu0 }
 0x375   : > { %v4828_v39 = vadd.f32 %v4827_v37, %v4788_v25  ;;  %v4876_v61 = vmul.f32 %v7027_v52, %v4788_v25  ;;  %v7028_v55 = vadd.f32 %v4325_v31, %v9778_v47  ;;  %v6939_v40 = vpop.f32.mrb[35].mxu0 }
 0x377   : > { %v4916_v62 = vadd.f32 %v4915_v54, %v4876_v61  ;;  %4502 = vst [vmem:[%s9790_s16 + $0x88] sm:$0xff] %v7028_v55  ;;  %v4789_v3 = vmul.f32 %v7028_v55, %v4655_v20 }
 0x378   : > { %v4330_v63 = vpop.f32.mrb[36].mxu0 }
 0x379   : > { %v4829_v4 = vadd.f32 %v4828_v39, %v4789_v3  ;;  %v4877_v1 = vmul.f32 %v7028_v55, %v4789_v3  ;;  %v7029_v34 = vadd.f32 %v4330_v63, %v9780_v14  ;;  %v6942_v12 = vpop.f32.mrb[37].mxu0  ;;  %v4690_v3 = vpop.permute.xlu0 %4689 }
 0x37b   : > { %v4917_v24 = vadd.f32 %v4916_v62, %v4877_v1  ;;  %4503 = vst [vmem:[%s9790_s16 + $0x90] sm:$0xff] %v7029_v34  ;;  %v4790_v41 = vmul.f32 %v7029_v34, %v4660_v16 }
 0x37c   : > { %v4335_v7 = vpop.f32.mrb[38].mxu0 }
 0x37d   : > { %v4830_v42 = vadd.f32 %v4829_v4, %v4790_v41  ;;  %v4878_v19 = vmul.f32 %v7029_v34, %v4790_v41  ;;  %v7030_v47 = vadd.f32 %v4335_v7, %v9782_v18  ;;  %v6945_v23 = vpop.f32.mrb[39].mxu0 }
 0x37f   : > { %v4918_v53 = vadd.f32 %v4917_v24, %v4878_v19  ;;  %4504 = vst [vmem:[%s9790_s16 + $0x98] sm:$0xff] %v7030_v47  ;;  %v4791_v11 = vmul.f32 %v7030_v47, %v4665_v17 }
 0x380   : > { %v2425_v57 = vpop.f32.mrb[42].mxu1  ;;  %v4340_v45 = vpop.f32.mrb[40].mxu0 }
 0x381   : > { %v4831_v6 = vadd.f32 %v4830_v42, %v4791_v11  ;;  %v4879_v14 = vmul.f32 %v7030_v47, %v4791_v11  ;;  %v7031_v10 = vadd.f32 %v4340_v45, %v9784_v51  ;;  %v6451_v49 = vpop.f32.mrb[43].mxu1  ;;  %v6948_v38 = vpop.f32.mrb[41].mxu0 }
 0x382   : > { %v4695_v42 = vpop.permute.xlu1 %4694 }
 0x383   : > { %v4919_v15 = vadd.f32 %v4918_v53, %v4879_v14  ;;  %4505 = vst [vmem:[%s9790_s16 + $0xa0] sm:$0xff] %v7031_v10  ;;  %v4792_v26 = vmul.f32 %v7031_v10, %v4670_v22  ;;  %v4700_v14 = vpop.permute.xlu0 %4699 }
 0x384   : > { %v2430_v27 = vpop.f32.mrb[44].mxu1  ;;  %v4345_v18 = vpop.f32.mrb[42].mxu0 }
 0x385   : > { %v4832_v56 = vadd.f32 %v4831_v6, %v4792_v26  ;;  %v4880_v28 = vmul.f32 %v7031_v10, %v4792_v26  ;;  %v7032_v46 = vadd.f32 %v4345_v18, %v2425_v57  ;;  %v6454_v60 = vpop.f32.mrb[45].mxu1  ;;  %v6951_v58 = vpop.f32.mrb[43].mxu0 }
 0x387   : > { %v4920_v48 = vadd.f32 %v4919_v15, %v4880_v28  ;;  %4506 = vst [vmem:[%s9790_s16 + $0xa8] sm:$0xff] %v7032_v46  ;;  %v4793_v50 = vmul.f32 %v7032_v46, %v4675_v43  ;;  %v4705_v28 = vpop.permute.xlu1 %4704 }
 0x388   : > { %v2435_v51 = vpop.f32.mrb[46].mxu1  ;;  %v4350_v29 = vpop.f32.mrb[44].mxu0 }
 0x389   : > { %v4833_v30 = vadd.f32 %v4832_v56, %v4793_v50  ;;  %v4881_v5 = vmul.f32 %v7032_v46, %v4793_v50  ;;  %v7033_v32 = vadd.f32 %v4350_v29, %v2430_v27  ;;  %v6457_v9 = vpop.f32.mrb[47].mxu1  ;;  %v6954_v2 = vpop.f32.mrb[45].mxu0 }
 0x38b   : > { %v4921_v33 = vadd.f32 %v4920_v48, %v4881_v5  ;;  %4507 = vst [vmem:[%s9790_s16 + $0xb0] sm:$0xff] %v7033_v32  ;;  %v4794_v13 = vmul.f32 %v7033_v32, %v4680_v59  ;;  %v4710_v5 = vpop.permute.xlu0 %4709 }
 0x38c   : > { %v2440_v35 = vpop.f32.mrb[48].mxu1  ;;  %v4355_v36 = vpop.f32.mrb[46].mxu0 }
 0x38d   : > { %v4834_v0 = vadd.f32 %v4833_v30, %v4794_v13  ;;  %v4882_v37 = vmul.f32 %v7033_v32, %v4794_v13  ;;  %v7034_v44 = vadd.f32 %v4355_v36, %v2435_v51  ;;  %v6460_v52 = vpop.f32.mrb[49].mxu1  ;;  %v6957_v8 = vpop.f32.mrb[47].mxu0 }
 0x38f   : > { %v4922_v54 = vadd.f32 %v4921_v33, %v4882_v37  ;;  %4508 = vst [vmem:[%s9790_s16 + $0xb8] sm:$0xff] %v7034_v44  ;;  %v4795_v25 = vmul.f32 %v7034_v44, %v4685_v21  ;;  %v4715_v37 = vpop.permute.xlu1 %4714 }
 0x390   : > { %v2445_v31 = vpop.f32.mrb[50].mxu1  ;;  %v4360_v39 = vpop.f32.mrb[48].mxu0 }
 0x391   : > { %v4835_v61 = vadd.f32 %v4834_v0, %v4795_v25  ;;  %v4883_v55 = vmul.f32 %v7034_v44, %v4795_v25  ;;  %v7035_v40 = vadd.f32 %v4360_v39, %v2440_v35  ;;  %v6463_v20 = vpop.f32.mrb[51].mxu1  ;;  %v6960_v62 = vpop.f32.mrb[49].mxu0 }
 0x393   : > { %v4923_v63 = vadd.f32 %v4922_v54, %v4883_v55  ;;  %4509 = vst [vmem:[%s9790_s16 + $0xc0] sm:$0xff] %v7035_v40  ;;  %v4796_v4 = vmul.f32 %v7035_v40, %v4690_v3  ;;  %v4720_v55 = vpop.permute.xlu0 %4719 }
 0x394   : > { %v2450_v1 = vpop.f32.mrb[52].mxu1  ;;  %v4365_v34 = vpop.f32.mrb[50].mxu0 }
 0x395   : > { %v4836_v12 = vadd.f32 %v4835_v61, %v4796_v4  ;;  %v4884_v16 = vmul.f32 %v7035_v40, %v4796_v4  ;;  %v7036_v24 = vadd.f32 %v4365_v34, %v2445_v31  ;;  %v6466_v41 = vpop.f32.mrb[53].mxu1  ;;  %v6963_v7 = vpop.f32.mrb[51].mxu0 }
 0x397   : > { %v4924_v19 = vadd.f32 %v4923_v63, %v4884_v16  ;;  %4510 = vst [vmem:[%s9790_s16 + $0xc8] sm:$0xff] %v7036_v24  ;;  %v4797_v47 = vmul.f32 %v7036_v24, %v4695_v42  ;;  %v4725_v16 = vpop.permute.xlu1 %4724 }
 0x398   : > { %v2455_v23 = vpop.f32.mrb[54].mxu1  ;;  %v4370_v17 = vpop.f32.mrb[52].mxu0 }
 0x399   : > { %v4837_v53 = vadd.f32 %v4836_v12, %v4797_v47  ;;  %v4885_v11 = vmul.f32 %v7036_v24, %v4797_v47  ;;  %v7037_v57 = vadd.f32 %v4370_v17, %v2450_v1  ;;  %v6469_v45 = vpop.f32.mrb[55].mxu1  ;;  %v6966_v6 = vpop.f32.mrb[53].mxu0 }
 0x39b   : > { %v4925_v10 = vadd.f32 %v4924_v19, %v4885_v11  ;;  %4511 = vst [vmem:[%s9790_s16 + $0xd0] sm:$0xff] %v7037_v57  ;;  %v4798_v49 = vmul.f32 %v7037_v57, %v4700_v14  ;;  %v4730_v11 = vpop.permute.xlu0 %4729 }
 0x39c   : > { %v2460_v38 = vpop.f32.mrb[56].mxu1  ;;  %v4375_v22 = vpop.f32.mrb[54].mxu0 }
 0x39d   : > { %v4838_v15 = vadd.f32 %v4837_v53, %v4798_v49  ;;  %v4886_v26 = vmul.f32 %v7037_v57, %v4798_v49  ;;  %v7038_v27 = vadd.f32 %v4375_v22, %v2455_v23  ;;  %v6472_v18 = vpop.f32.mrb[57].mxu1  ;;  %v6969_v56 = vpop.f32.mrb[55].mxu0 }
 0x39f   : > { %v4926_v46 = vadd.f32 %v4925_v10, %v4886_v26  ;;  %4512 = vst [vmem:[%s9790_s16 + $0xd8] sm:$0xff] %v7038_v27  ;;  %v4799_v60 = vmul.f32 %v7038_v27, %v4705_v28  ;;  %v4735_v26 = vpop.permute.xlu1 %4734 }
 0x3a0   : > { %v2465_v58 = vpop.f32.mrb[58].mxu1  ;;  %v4380_v43 = vpop.f32.mrb[56].mxu0 }
 0x3a1   : > { %v4839_v48 = vadd.f32 %v4838_v15, %v4799_v60  ;;  %v4887_v50 = vmul.f32 %v7038_v27, %v4799_v60  ;;  %v7039_v51 = vadd.f32 %v4380_v43, %v2460_v38  ;;  %v6475_v29 = vpop.f32.mrb[59].mxu1  ;;  %v6972_v30 = vpop.f32.mrb[57].mxu0 }
 0x3a3   : > { %v4927_v32 = vadd.f32 %v4926_v46, %v4887_v50  ;;  %4513 = vst [vmem:[%s9790_s16 + $0xe0] sm:$0xff] %v7039_v51  ;;  %v4800_v9 = vmul.f32 %v7039_v51, %v4710_v5  ;;  %v4740_v50 = vpop.permute.xlu0 %4739 }
 0x3a4   : > { %v2470_v2 = vpop.f32.mrb[60].mxu1  ;;  %v4385_v59 = vpop.f32.mrb[58].mxu0 }
 0x3a5   : > { %v4840_v33 = vadd.f32 %v4839_v48, %v4800_v9  ;;  %v4888_v13 = vmul.f32 %v7039_v51, %v4800_v9  ;;  %v7040_v35 = vadd.f32 %v4385_v59, %v2465_v58  ;;  %v6478_v36 = vpop.f32.mrb[61].mxu1  ;;  %v6975_v0 = vpop.f32.mrb[59].mxu0 }
 0x3a7   : > { %v4928_v44 = vadd.f32 %v4927_v32, %v4888_v13  ;;  %4514 = vst [vmem:[%s9790_s16 + $0xe8] sm:$0xff] %v7040_v35  ;;  %v4801_v52 = vmul.f32 %v7040_v35, %v4715_v37  ;;  %v4745_v13 = vpop.permute.xlu1 %4744 }
 0x3a8   : > { %v2475_v8 = vpop.f32.mrb[62].mxu1  ;;  %v4390_v21 = vpop.f32.mrb[60].mxu0 }
 0x3a9   : > { %v4841_v54 = vadd.f32 %v4840_v33, %v4801_v52  ;;  %v4889_v25 = vmul.f32 %v7040_v35, %v4801_v52  ;;  %v7041_v31 = vadd.f32 %v4390_v21, %v2470_v2  ;;  %v6481_v39 = vpop.f32.mrb[63].mxu1  ;;  %v6978_v61 = vpop.f32.mrb[61].mxu0 }
 0x3ab   : > { %v4929_v40 = vadd.f32 %v4928_v44, %v4889_v25  ;;  %4515 = vst [vmem:[%s9790_s16 + $0xf0] sm:$0xff] %v7041_v31  ;;  %v4802_v20 = vmul.f32 %v7041_v31, %v4720_v55  ;;  %v4750_v25 = vpop.permute.xlu0 %4749 }
 0x3ac   : > { %v2480_v62 = vpop.f32.mrb[64].mxu1  ;;  %v4395_v3 = vpop.f32.mrb[62].mxu0 }
 0x3ad   : > { %v4842_v63 = vadd.f32 %v4841_v54, %v4802_v20  ;;  %v4890_v4 = vmul.f32 %v7041_v31, %v4802_v20  ;;  %v7042_v1 = vadd.f32 %v4395_v3, %v2475_v8  ;;  %v6484_v34 = vpop.f32.mrb[65].mxu1  ;;  %v6981_v12 = vpop.f32.mrb[63].mxu0 }
 0x3af   : > { %v4930_v24 = vadd.f32 %v4929_v40, %v4890_v4  ;;  %4516 = vst [vmem:[%s9790_s16 + $0xf8] sm:$0xff] %v7042_v1  ;;  %v4803_v41 = vmul.f32 %v7042_v1, %v4725_v16  ;;  %v4755_v4 = vpop.permute.xlu1 %4754 }
 0x3b0   : > { %v2485_v7 = vpop.f32.mrb[66].mxu1  ;;  %v4400_v42 = vpop.f32.mrb[64].mxu0 }
 0x3b1   : > { %v4843_v19 = vadd.f32 %v4842_v63, %v4803_v41  ;;  %v4891_v47 = vmul.f32 %v7042_v1, %v4803_v41  ;;  %v7043_v23 = vadd.f32 %v4400_v42, %v2480_v62  ;;  %v6487_v17 = vpop.f32.mrb[67].mxu1  ;;  %v6984_v53 = vpop.f32.mrb[65].mxu0 }
 0x3b3   : > { %v4931_v57 = vadd.f32 %v4930_v24, %v4891_v47  ;;  %4517 = vst [vmem:[%s9790_s16 + $0x100] sm:$0xff] %v7043_v23  ;;  %v4804_v45 = vmul.f32 %v7043_v23, %v4730_v11  ;;  %v4760_v47 = vpop.permute.xlu0 %4759 }
 0x3b4   : > { %v2490_v6 = vpop.f32.mrb[68].mxu1  ;;  %v4405_v14 = vpop.f32.mrb[66].mxu0 }
 0x3b5   : > { %v4844_v10 = vadd.f32 %v4843_v19, %v4804_v45  ;;  %v4892_v49 = vmul.f32 %v7043_v23, %v4804_v45  ;;  %v7044_v38 = vadd.f32 %v4405_v14, %v2485_v7  ;;  %v6490_v22 = vpop.f32.mrb[69].mxu1  ;;  %v6987_v15 = vpop.f32.mrb[67].mxu0 }
 0x3b7   : > { %v4932_v27 = vadd.f32 %v4931_v57, %v4892_v49  ;;  %4518 = vst [vmem:[%s9790_s16 + $0x108] sm:$0xff] %v7044_v38  ;;  %v4805_v18 = vmul.f32 %v7044_v38, %v4735_v26  ;;  %v4765_v49 = vpop.permute.xlu1 %4764 }
 0x3b8   : > { %v2495_v56 = vpop.f32.mrb[70].mxu1  ;;  %v4410_v28 = vpop.f32.mrb[68].mxu0 }
 0x3b9   : > { %v4845_v46 = vadd.f32 %v4844_v10, %v4805_v18  ;;  %v4893_v60 = vmul.f32 %v7044_v38, %v4805_v18  ;;  %v7045_v58 = vadd.f32 %v4410_v28, %v2490_v6  ;;  %v6493_v43 = vpop.f32.mrb[71].mxu1  ;;  %v6990_v48 = vpop.f32.mrb[69].mxu0 }
 0x3ba   : > { %v4770_v28 = vpop.permute.xlu0 %4769 }
 0x3bb   : > { %v4933_v51 = vadd.f32 %v4932_v27, %v4893_v60  ;;  %4519 = vst [vmem:[%s9790_s16 + $0x110] sm:$0xff] %v7045_v58  ;;  %v4806_v29 = vmul.f32 %v7045_v58, %v4740_v50 }
 0x3bc   : > { %v2500_v30 = vpop.f32.mrb[72].mxu1  ;;  %v4415_v5 = vpop.f32.mrb[70].mxu0 }
 0x3bd   : > { %v4846_v32 = vadd.f32 %v4845_v46, %v4806_v29  ;;  %v4894_v9 = vmul.f32 %v7045_v58, %v4806_v29  ;;  %v7046_v2 = vadd.f32 %v4415_v5, %v2495_v56  ;;  %v6496_v59 = vpop.f32.mrb[73].mxu1  ;;  %v6993_v33 = vpop.f32.mrb[71].mxu0 }
 0x3bf   : > { %v4934_v35 = vadd.f32 %v4933_v51, %v4894_v9  ;;  %4520 = vst [vmem:[%s9790_s16 + $0x118] sm:$0xff] %v7046_v2  ;;  %v4807_v36 = vmul.f32 %v7046_v2, %v4745_v13 }
 0x3c0   : > { %v2505_v0 = vpop.f32.mrb[74].mxu1  ;;  %v4420_v37 = vpop.f32.mrb[72].mxu0 }
 0x3c1   : > { %v4847_v44 = vadd.f32 %v4846_v32, %v4807_v36  ;;  %v4895_v52 = vmul.f32 %v7046_v2, %v4807_v36  ;;  %v7047_v8 = vadd.f32 %v4420_v37, %v2500_v30  ;;  %v6499_v21 = vpop.f32.mrb[75].mxu1  ;;  %v6996_v54 = vpop.f32.mrb[73].mxu0 }
 0x3c3   : > { %v4935_v31 = vadd.f32 %v4934_v35, %v4895_v52  ;;  %4521 = vst [vmem:[%s9790_s16 + $0x120] sm:$0xff] %v7047_v8  ;;  %v4808_v39 = vmul.f32 %v7047_v8, %v4750_v25 }
 0x3c4   : > { %v2510_v61 = vpop.f32.mrb[76].mxu1  ;;  %v4425_v55 = vpop.f32.mrb[74].mxu0 }
 0x3c5   : > { %v4848_v40 = vadd.f32 %v4847_v44, %v4808_v39  ;;  %v4896_v20 = vmul.f32 %v7047_v8, %v4808_v39  ;;  %v7048_v62 = vadd.f32 %v4425_v55, %v2505_v0  ;;  %v6502_v3 = vpop.f32.mrb[77].mxu1  ;;  %v6999_v63 = vpop.f32.mrb[75].mxu0 }
 0x3c7   : > { %v4936_v1 = vadd.f32 %v4935_v31, %v4896_v20  ;;  %4522 = vst [vmem:[%s9790_s16 + $0x128] sm:$0xff] %v7048_v62  ;;  %v4809_v34 = vmul.f32 %v7048_v62, %v4755_v4 }
 0x3c8   : > { %v2515_v12 = vpop.f32.mrb[78].mxu1  ;;  %v4430_v16 = vpop.f32.mrb[76].mxu0 }
 0x3c9   : > { %v4849_v24 = vadd.f32 %v4848_v40, %v4809_v34  ;;  %v4897_v41 = vmul.f32 %v7048_v62, %v4809_v34  ;;  %v7049_v7 = vadd.f32 %v4430_v16, %v2510_v61  ;;  %v6505_v42 = vpop.f32.mrb[79].mxu1  ;;  %v7002_v19 = vpop.f32.mrb[77].mxu0 }
 0x3cb   : > { %v4937_v23 = vadd.f32 %v4936_v1, %v4897_v41  ;;  %4523 = vst [vmem:[%s9790_s16 + $0x130] sm:$0xff] %v7049_v7  ;;  %v4810_v17 = vmul.f32 %v7049_v7, %v4760_v47 }
 0x3cc   : > { %v2520_v53 = vpop.f32.mrb[80].mxu1  ;;  %v4435_v11 = vpop.f32.mrb[78].mxu0 }
 0x3cd   : > { %v4850_v57 = vadd.f32 %v4849_v24, %v4810_v17  ;;  %v4898_v45 = vmul.f32 %v7049_v7, %v4810_v17  ;;  %v7050_v6 = vadd.f32 %v4435_v11, %v2515_v12  ;;  %v6508_v14 = vpop.f32.mrb[81].mxu1  ;;  %v7005_v10 = vpop.f32.mrb[79].mxu0 }
 0x3cf   : > { %v4938_v38 = vadd.f32 %v4937_v23, %v4898_v45  ;;  %4524 = vst [vmem:[%s9790_s16 + $0x138] sm:$0xff] %v7050_v6  ;;  %v4811_v22 = vmul.f32 %v7050_v6, %v4765_v49 }
 0x3d0   : > { %v4440_v15 = vpop.f32.mrb[80].mxu0 }
 0x3d1   : > { %v4851_v26 = vadd.f32 %v4850_v57, %v4811_v22  ;;  %v4899_v27 = vmul.f32 %v7050_v6, %v4811_v22  ;;  %v7051_v18 = vadd.f32 %v4440_v15, %v2520_v53  ;;  %v7008_v56 = vpop.f32.mrb[81].mxu0 }
 0x3d3   : > { %v4939_v46 = vadd.f32 %v4938_v38, %v4899_v27  ;;  %4525 = vst [vmem:[%s9790_s16 + $0x140] sm:$0xf] %v7051_v18  ;;  %v4812_v60 = vmul.f32 %v7051_v18, %v4770_v28  ;;  %s7682_s16 = sshll.u32 %s7777_s15, 4  ;;  %s7683_s16 = int_to_ptr.vmem [resolvable:$false] %s7682_s16 }
 0x3d4   : > { %s7684_s17 = scalar_lea.vmem %s7683_s16, 256  ;;  %p7685_p0 = scmp.lt.s32.totalorder %s9869_s26, %s7683_s16 }
 0x3d5   : > { %v4852_v58 = vsel %vm455_vm0, %v4812_v60, 0.0  ;;  %v4900_v43 = vmul.f32 %v7051_v18, %v4812_v60  ;;  %p7686_p1 = scmp.lt.s32.totalorder %s7684_s17, %s7678_s14 }
 0x3d6   : > { %v4853_v48 = vadd.f32 %v4852_v58, %v4851_v26 }
 0x3d7   : > { %v4940_v50 = vsel %vm455_vm0, %v4900_v43, 0.0  ;;  %p7687_p2 = por %p7686_p1, %p7685_p0 }
 0x3d8   : > { %v4854_v51 = vrot.slane %v4853_v48, 4  ;;  %v4941_v29 = vadd.f32 %v4940_v50, %v4939_v46 }
 0x3d9   : > { %p7688_p3 = pnand %p7687_p2, %p7681_p13 }
 0x3da   : > { %v4942_v30 = vrot.slane %v4941_v29, 4  ;;  %v4855_v5 = vadd.f32 %v4854_v51, %v4853_v48 }
 0x3dc   : > { %v4856_v32 = vrot.slane %v4855_v5, 2  ;;  %v4943_v9 = vadd.f32 %v4942_v30, %v4941_v29 }
 0x3de   : > { %v4857_v2 = vadd.f32 %v4856_v32, %v4855_v5  ;;  %v4944_v59 = vrot.slane %v4943_v9, 2 }
 0x3e0   : > { %v4858_v33 = vrot.slane %v4857_v2, 1  ;;  %v4945_v13 = vadd.f32 %v4944_v59, %v4943_v9 }
 0x3e2   : > { %v4859_v35 = vadd.f32 %v4858_v33, %v4857_v2  ;;  %v4946_v36 = vrot.slane %v4945_v13, 1 }
 0x3e4   : > { %4948 = vst [vmem:[%s228_s25] sm:$0xff] %v4859_v35  ;;  %v4947_v0 = vadd.f32 %v4946_v36, %v4945_v13 }
 0x3e5   : > { %7691 = shalt.err (!%p7688_p3)
}
 0x3e6   : > { %s7692_s23 = scalar_lea.hbm %s9867_s10, 128  ;;  %s7696_s8 = scalar_lea.hbm %s9944_s4, 256 }
 0x3e7   : > { %p7693_p4 = scmp.ne.s32.totalorder %s9867_s10, %s7692_s23  ;;  %p7697_p9 = scmp.lt.u32.totalorder %s9867_s10, %s9944_s4 }
 0x3e8   : > { %p7698_p10 = scmp.lt.u32.totalorder %s7696_s8, %s7692_s23  ;;  %p7700_p12 = scmp.lt.u32.totalorder %s7692_s23, %s9867_s10 }
 0x3e9   : > { %p7694_p7 = pnand %p7693_p4, %p7847_p5 }
 0x3ea   : > { %p7699_p11 = por %p7698_p10, %p7697_p9 }
 0x3eb   : > { %p7695_p8 = pneg %p7694_p7 }
 0x3ec   : > { %p7701_p13 = por %p7700_p12, %p7699_p11 }
 0x3ee   : > { %p7702_p0 = pnand %p7701_p13, %p7695_p8 }
 0x3f0   : > { %7705 = shalt.err (!%p7702_p0)
}
 0x3f1   : > { %7628 = dma.vmem_to_hbm [thread:$0]  (%p7847_p5), %s9869_s26, 128, %s9867_s10, %s4956_s13   ;;  %4949 = vst [vmem:[%s9861_s30] sm:$0xff] %v4947_v0 }
 0x3f2   : > { %s4961_s14 = scalar_lea.sflag [#allocation5], %s9856_s9  ;;  %s7706_s15 = scalar_lea.vmem %s9876_s6, 128 }
 0x3f3   : > { %p7707_p1 = scmp.ne.s32.totalorder %s9876_s6, %s7706_s15  ;;  %s7778_s16 = smov [#allocation4]  }
 0x3f4   : > { %s7710_s17 = sshll.u32 %s7778_s16, 4  ;;  %s7711_s17 = int_to_ptr.vmem [resolvable:$false] %s7710_s17 }
 0x3f5   : > { %p7708_p2 = pnand %p7707_p1, %p7847_p5  ;;  %s7712_s23 = scalar_lea.vmem %s7711_s17, 256 }
 0x3f6   : > { %p7713_p4 = scmp.lt.s32.totalorder %s9876_s6, %s7711_s17  ;;  %p7714_p7 = scmp.lt.s32.totalorder %s7712_s23, %s7706_s15 }
 0x3f7   : > { %p7709_p3 = pneg %p7708_p2 }
 0x3f8   : > { %p7715_p8 = por %p7714_p7, %p7713_p4 }
 0x3fa   : > { %p7716_p9 = pnand %p7715_p8, %p7709_p3 }
 0x3fc   : > { %7719 = shalt.err (!%p7716_p9)
}
 0x3fd   : > { %s7720_s9 = scalar_lea.hbm %s9874_s12, 128  ;;  %s7724_s10 = scalar_lea.hbm %s9945_s5, 256 }
 0x3fe   : > { %p7721_p10 = scmp.ne.s32.totalorder %s9874_s12, %s7720_s9  ;;  %p7725_p13 = scmp.lt.u32.totalorder %s9874_s12, %s9945_s5 }
 0x3ff   : > { %p7726_p0 = scmp.lt.u32.totalorder %s7724_s10, %s7720_s9  ;;  %p7728_p2 = scmp.lt.u32.totalorder %s7720_s9, %s9874_s12 }
 0x400   : > { %p7722_p11 = pnand %p7721_p10, %p7847_p5 }
 0x401   : > { %p7727_p1 = por %p7726_p0, %p7725_p13 }
 0x402   : > { %p7723_p12 = pneg %p7722_p11 }
 0x403   : > { %p7729_p3 = por %p7728_p2, %p7727_p1 }
 0x405   : > { %p7730_p4 = pnand %p7729_p3, %p7723_p12 }
 0x407   : > { %7733 = shalt.err (!%p7730_p4)
}
 0x408   : > { %7629 = dma.vmem_to_hbm [thread:$0]  (%p7847_p5), %s9876_s6, 128, %s9874_s12, %s4961_s14  }
 0x409 PF: > { %p7639_p7 = scmp.ge.s32.totalorder %s7772_s21, 2  ;;  %s5010_s7 = sand.u32 1, %s7760_s18  }
 0x40a   : > { %s5011_s8 = scalar_lea.sflag [#allocation3], %s5010_s7 }
 0x40b   : > { %p7633_p8 = pnand %p7639_p7, %p7851_p6 }
 0x40d   : > { %7751 = dma.done.wait (!%p7633_p8), %s5011_s8, 128  }
 0x40e   : > { %7753 = vsyncadd (!%p7633_p8), %s5011_s8, 4294967168  ;;  %s5020_s22 = scalar_lea.sflag [#allocation5], %s5010_s7 }
 0x40f   : > { %7755 = dma.done.wait (!%p7633_p8), %s5020_s22, 128  }
 0x410   : > { %7757 = vsyncadd (!%p7633_p8), %s5020_s22, 4294967168  ;;  %p19_p5 = scmp.ge.s32.totalorder %s7834_s24, 4   ;;  %s9948_s18 = smov %s7764_s19 }
 0x411   : > { %s9949_s19 = smov %s7768_s20  ;;  %s9950_s20 = smov %s7845_s27 }
 0x412   : > { %s9951_s21 = smov %s7834_s24  ;;  %21 = sbr.rel (!%p19_p5) target bundleno = 5 (0x5), region = 104 }
 0x419   :  { %5025 = vsyncpa [#allocation3], 1 }
 0x41a   :  { %5027 = vsyncpa [#allocation3 + $0x1], 1 }
 0x41b   :  { %5028 = vsyncpa [#allocation5], 1 }
 0x41c   :  { %5030 = vsyncpa [#allocation5 + $0x1], 1 }

</bundles_post_ra>
